<compile_context>
chip_gen: v7x
topology: tpu7x:2x2x1
jax: 0.10.0
libtpu: 0.0.40
codegen_flags: <defaults>
</compile_context>

<pallas_src>
import functools
import math

import jax
import jax.numpy as jnp
from jax.experimental import pallas as pl
from jax.experimental.pallas import tpu as pltpu


# ---------------------------------------------------------------------------
# kernels
# ---------------------------------------------------------------------------

def _upsample_kernel(xa_ref, xh_ref, w_ref, b_ref, o_ref, *, th, wo, cin, cout):
    """Fused nearest-2x upsample + Conv2d(3, padding=1), one input-row tile.

    xa_ref: (1, th, Wp, Cin)        padded-input rows [r*th, r*th+th)
    xh_ref: (1, 2,  Wp, Cin)        halo rows         [r*th+th, r*th+th+2)
    w_ref : (16, Cin, Cout)         folded 2x2 sub-pixel weights (ry,rx,a,b)
    b_ref : (1, Cout)               f32 bias
    o_ref : (1, th, 2, Wo, 2*Cout)  parity-interleaved output (free reshape)
    """
    xa = xa_ref[0]                                       # (th, Wp, Cin)
    xh = xh_ref[0]                                       # (2,  Wp, Cin)
    bias = b_ref[...].astype(jnp.float32)                # (1, Cout)

    # Three column-shifted working slabs (th+2, Wo, Cin) -- the only relayout
    # copies in the kernel.  Every tap window below is a sublane-aligned
    # leading-dim view of one of them.
    cs = [jnp.concatenate([xa[:, q:q + wo, :], xh[:, q:q + wo, :]], axis=0)
          for q in range(3)]

    def win(p, q):                  # rows [p, p+th) of column-shift q
        return cs[q][p:p + th].reshape(th * wo, cin)

    def tap(ry, rx, a, b):
        k = ((ry * 2 + rx) * 2 + a) * 2 + b
        return jnp.dot(win(ry + a, rx + b), w_ref[k],
                       preferred_element_type=jnp.float32)

    # four output parities (ry, rx); each is a 2x2 conv on the original grid
    for ry in range(2):
        res = []
        for rx in range(2):
            acc = (tap(ry, rx, 0, 0) + tap(ry, rx, 0, 1)
                   + tap(ry, rx, 1, 0) + tap(ry, rx, 1, 1))
            res.append((acc + bias).reshape(th, wo, cout).astype(o_ref.dtype))
        # one contiguous 2*Cout-wide store per ry (no masked lane-slice stores)
        o_ref[0, :, ry, :, :] = jnp.concatenate(res, axis=-1)


def _downsample_kernel(xa_ref, xh_ref, w_ref, b_ref, o_ref, *,
                       tho, wo, cin2, cout):
    """ZeroPad2d((0,1,0,1)) + Conv2d(3, stride=2), one output-row tile.

    Column pairs are pre-folded into channels by a free wrapper reshape:
        x[n, h, p, j, :] == xpad[n, 2h+p, 2j:2j+2, :] flattened.

    xa_ref: (1, tho, 2, Wq, 2*Cin)   half-rows [r*tho, r*tho+tho)
    xh_ref: (1, 1,  2, Wq, 2*Cin)    halo half-row r*tho+tho
    w_ref : (6, 2*Cin, Cout)         (dy, col-shift) folded weights
    b_ref : (1, Cout)                f32 bias
    o_ref : (1, tho, Wo, Cout)
    """
    xa = xa_ref[0]                                       # (tho, 2, Wq, 2Cin)
    xh = xh_ref[0]                                       # (1,   2, Wq, 2Cin)
    bias = b_ref[...].astype(jnp.float32)

    # Column-shifted working slabs; only the parity-0 slabs need the halo row.
    cs0 = [jnp.concatenate([xa[:, 0, s:s + wo, :], xh[:, 0, s:s + wo, :]],
                           axis=0) for s in range(2)]    # (tho+1, Wo, 2Cin)
    cs1 = [xa[:, 1, s:s + wo, :] for s in range(2)]      # (tho,   Wo, 2Cin)

    def dot(lhs3, k):
        return jnp.dot(lhs3.reshape(tho * wo, cin2), w_ref[k],
                       preferred_element_type=jnp.float32)

    acc = dot(cs0[0][0:tho], 0) + dot(cs0[1][0:tho], 1)                # dy = 0
    acc = acc + dot(cs1[0], 2) + dot(cs1[1], 3)                        # dy = 1
    acc = acc + dot(cs0[0][1:tho + 1], 4) + dot(cs0[1][1:tho + 1], 5)  # dy = 2
    acc = acc + bias
    o_ref[0] = acc.reshape(tho, wo, cout).astype(o_ref.dtype)


# ---------------------------------------------------------------------------
# wrappers
# ---------------------------------------------------------------------------

def _round_up(x, m):
    return -(-x // m) * m


def _pick_row_tile(rows, batch, footprint_fn, *, budget, even=False, cap=64):
    """Largest row tile whose estimated per-step VMEM footprint fits `budget`;
    prefers a tile dividing `rows` (no padded/cropped output rows) and keeps
    at least two grid steps when batch == 1 (v7x has 2 TensorCores)."""
    step = 2 if even else 1
    t = min(cap, max(rows, step))
    if even and t % 2:
        t -= 1
    t = max(t, step)
    while t > step and footprint_fn(t) > budget:
        t -= step
    if batch == 1 and rows >= 2 * step:
        half = rows // 2
        if even and half % 2:
            half -= 1
        t = min(t, max(half, step))
    for d in range(t, max(t // 2, step - 1), -1):
        if rows % d == 0 and d % step == 0:
            return d
    return t


def _vmem_limit(footprint_bytes):
    # raise v5e's 16 MiB scoped default when needed, stay well inside
    # v7x's 64 MiB physical VMEM.
    return int(min(max(footprint_bytes * 2, 32 << 20), 48 << 20))


def _upsample_conv(x_nhwc, w_hwio, bias, out_dtype):
    n, h, w, cin = x_nhwc.shape
    cout = w_hwio.shape[-1]
    dtype = x_nhwc.dtype
    isz = jnp.dtype(dtype).itemsize

    wo = _round_up(w, 8)             # sublane-aligned compute width
    wp = wo + 2                      # padded input width (1 left + >=1 right)

    def footprint(th):               # per-grid-step VMEM estimate (bytes)
        inp = 2 * (th + 2) * wp * cin * isz                  # in blocks, 2x buffered
        wts = 2 * (16 * cin * cout * isz + 4 * cout)         # weight + bias blocks
        out = 2 * th * 2 * wo * 2 * cout * isz               # out block, 2x buffered
        slabs = 3 * (th + 2) * wo * cin * isz                # column-shifted slabs
        accs = 3 * th * wo * cout * 4                        # live f32 accum/results
        return inp + wts + out + slabs + accs

    th = _pick_row_tile(h, n, footprint, budget=20 << 20, even=True)
    assert th % 2 == 0, "upsample halo index_map requires an even row tile"
    hm = _round_up(h, th)

    # zero-pad: 1 top, (hm+1-h) bottom, 1 left, (wo+1-w) right; extra rows /
    # cols only feed outputs that are cropped away.
    xp = jnp.pad(x_nhwc, ((0, 0), (1, hm + 1 - h), (1, wo + 1 - w), (0, 0)))

    # fold the 3x3 kernel on the 2x-nearest-upsampled grid into four 2x2
    # kernels on the original grid (sub-pixel decomposition), in x's dtype.
    dsel = {(0, 0): (0,), (0, 1): (1, 2), (1, 0): (0, 1), (1, 1): (2,)}
    taps = []
    for ry in range(2):
        for rx in range(2):
            for a in range(2):
                for b in range(2):
                    taps.append(sum(w_hwio[dy, dx]
                                    for dy in dsel[(ry, a)]
                                    for dx in dsel[(rx, b)]))
    weff = jnp.stack(taps, axis=0).astype(dtype)      # (16, Cin, Cout)
    b2 = bias.reshape(1, cout).astype(jnp.float32)

    cost = pl.CostEstimate(
        flops=int(2 * 16 * n * hm * wo * cin * cout),
        transcendentals=0,
        bytes_accessed=int(xp.size * isz + weff.size * isz
                           + n * hm * 2 * wo * 2 * cout
                           * jnp.dtype(out_dtype).itemsize))

    kernel = functools.partial(_upsample_kernel, th=th, wo=wo, cin=cin, cout=cout)
    out5 = pl.pallas_call(
        kernel,
        out_shape=jax.ShapeDtypeStruct((n, hm, 2, wo, 2 * cout), out_dtype),
        grid=(n, hm // th),
        in_specs=[
            pl.BlockSpec((1, th, wp, cin), lambda i, r: (i, r, 0, 0)),
            # halo block is 2 rows -> block index (r+1)*th/2 (th asserted even)
            pl.BlockSpec((1, 2, wp, cin),
                         lambda i, r: (i, (r + 1) * (th // 2), 0, 0)),
            pl.BlockSpec((16, cin, cout), lambda i, r: (0, 0, 0)),
            pl.BlockSpec((1, cout), lambda i, r: (0, 0)),
        ],
        out_specs=pl.BlockSpec((1, th, 2, wo, 2 * cout),
                               lambda i, r: (i, r, 0, 0, 0)),
        compiler_params=pltpu.CompilerParams(
            dimension_semantics=("parallel", "parallel"),
            vmem_limit_bytes=_vmem_limit(footprint(th))),
        cost_estimate=cost,
    )(xp, xp, weff, b2)
    # crop padded rows/cols (no-op when th | h and w % 8 == 0), then
    # (N, H, 2, W, 2*C) -> (N, 2H, 2W, C) is a free (metadata-only) reshape.
    out5 = out5[:, :h, :, :w, :]
    return out5.reshape(n, 2 * h, 2 * w, cout)


def _downsample_conv(x_nhwc, w_hwio, bias, out_dtype):
    n, h, w, cin = x_nhwc.shape
    cout = w_hwio.shape[-1]
    dtype = x_nhwc.dtype
    isz = jnp.dtype(dtype).itemsize

    ho = (h - 2) // 2 + 1            # ZeroPad2d((0,1,0,1)) + 3x3 stride 2
    wo = (w - 2) // 2 + 1
    wo8 = _round_up(wo, 8)           # sublane-aligned compute width
    wq = wo8 + 1                     # half-row width after column-pair fold
    cin2 = 2 * cin

    def footprint(tho):
        inp = 2 * (tho + 1) * 2 * wq * cin2 * isz
        wts = 2 * (6 * cin2 * cout * isz + 4 * cout)
        out = 2 * tho * wo8 * cout * isz
        slabs = 4 * (tho + 1) * wo8 * cin2 * isz
        accs = 2 * tho * wo8 * cout * 4
        return inp + wts + out + slabs + accs

    tho = _pick_row_tile(ho, n, footprint, budget=20 << 20)
    hom = _round_up(ho, tho)
    hp, wpad = 2 * hom + 2, 2 * wq
    xp = jnp.pad(x_nhwc, ((0, 0), (0, hp - h), (0, wpad - w), (0, 0)))
    # free reshape: fold column pairs into channels, expose row parity.
    xr = xp.reshape(n, hp // 2, 2, wq, cin2)

    # fold the stride-2 column taps into the 2*Cin contraction axis (x dtype).
    zeros = jnp.zeros_like(w_hwio[0, 0])
    wtaps = []
    for dy in range(3):
        wtaps.append(jnp.concatenate([w_hwio[dy, 0], w_hwio[dy, 1]], axis=0))
        wtaps.append(jnp.concatenate([w_hwio[dy, 2], zeros], axis=0))
    wd = jnp.stack(wtaps, axis=0).astype(dtype)       # (6, 2*Cin, Cout)
    b2 = bias.reshape(1, cout).astype(jnp.float32)

    cost = pl.CostEstimate(
        flops=int(2 * 6 * n * hom * wo8 * cin2 * cout),
        transcendentals=0,
        bytes_accessed=int(xr.size * isz + wd.size * isz
                           + n * hom * wo8 * cout
                           * jnp.dtype(out_dtype).itemsize))

    kernel = functools.partial(_downsample_kernel, tho=tho, wo=wo8,
                               cin2=cin2, cout=cout)
    out = pl.pallas_call(
        kernel,
        out_shape=jax.ShapeDtypeStruct((n, hom, wo8, cout), out_dtype),
        grid=(n, hom // tho),
        in_specs=[
            pl.BlockSpec((1, tho, 2, wq, cin2), lambda i, r: (i, r, 0, 0, 0)),
            pl.BlockSpec((1, 1, 2, wq, cin2),
                         lambda i, r: (i, (r + 1) * tho, 0, 0, 0)),
            pl.BlockSpec((6, cin2, cout), lambda i, r: (0, 0, 0)),
            pl.BlockSpec((1, cout), lambda i, r: (0, 0)),
        ],
        out_specs=pl.BlockSpec((1, tho, wo8, cout), lambda i, r: (i, r, 0, 0)),
        compiler_params=pltpu.CompilerParams(
            dimension_semantics=("parallel", "parallel"),
            vmem_limit_bytes=_vmem_limit(footprint(tho))),
        cost_estimate=cost,
    )(xr, xr, wd, b2)
    return out[:, :ho, :wo]


# ---------------------------------------------------------------------------
# module-level API
# ---------------------------------------------------------------------------

def init_resample_params(key, dim, mode):
    """Deterministic synthetic Conv2d(dim, dim, 3) params (PyTorch OIHW)."""
    if mode == 'none':
        return None
    kw, kb = jax.random.split(key)
    fan_in = dim * 3 * 3
    bound = 1.0 / math.sqrt(fan_in)
    w_oihw = jax.random.uniform(kw, (dim, dim, 3, 3), jnp.float32,
                                minval=-bound, maxval=bound)
    b = jax.random.uniform(kb, (dim,), jnp.float32,
                           minval=-bound, maxval=bound)
    return w_oihw, b


def resample_forward(x_nchw, params, mode):
    """Matches Resample.forward semantics; input/output are NCHW."""
    assert mode in ('none', 'upsample', 'downsample')
    if mode == 'none':
        return x_nchw                            # nn.Identity
    w_oihw, b = params
    w_hwio = jnp.transpose(w_oihw, (2, 3, 1, 0))  # (3, 3, Cin, Cout)
    x = jnp.transpose(x_nchw, (0, 2, 3, 1))       # NCHW -> NHWC
    if mode == 'upsample':
        y = _upsample_conv(x, w_hwio, b, x_nchw.dtype)
    else:
        y = _downsample_conv(x, w_hwio, b, x_nchw.dtype)
    return jnp.transpose(y, (0, 3, 1, 2))         # NHWC -> NCHW


def _reference(x_nchw, params, mode):
    """Pure-JAX (XLA conv) reference for correctness checking."""
    if mode == 'none':
        return x_nchw
    w, b = params
    if mode == 'upsample':
        x = jnp.repeat(jnp.repeat(x_nchw, 2, axis=2), 2, axis=3)
        pad, stride = [(1, 1), (1, 1)], (1, 1)
    else:
        x = x_nchw
        pad, stride = [(0, 1), (0, 1)], (2, 2)
    y = jax.lax.conv_general_dilated(
        x, w, stride, pad, dimension_numbers=('NCHW', 'OIHW', 'NCHW'))
    return y + b.reshape(1, -1, 1, 1)


if __name__ == "__main__":
    key = jax.random.PRNGKey(0)
    kx, kp = jax.random.split(key)

    dim = 4
    x = jax.random.normal(kx, (2, dim, 16, 16), dtype=jnp.float32)  # NCHW

    ok = True
    for mode in ('none', 'upsample', 'downsample'):
        params = init_resample_params(kp, dim, mode)
        out = jax.block_until_ready(resample_forward(x, params, mode))
        ref = jax.block_until_ready(_reference(x, params, mode))
        if out.shape != ref.shape or not bool(
                jnp.allclose(out, ref, atol=1e-4, rtol=1e-4)):
            ok = False
            print(f"MISMATCH in mode={mode}: {out.shape} vs {ref.shape}")

    if ok:
        print("KERNEL_OK")
</pallas_src>

<mosaic_0001>
module attributes {stable_mosaic.version = 11 : i64} {
  func.func @_upsample_kernel(%arg0: i32, %arg1: i32, %arg2: memref<1x16x18x4xf32, #tpu.memory_space<vmem>>, %arg3: memref<1x2x18x4xf32, #tpu.memory_space<vmem>>, %arg4: memref<16x4x4xf32, #tpu.memory_space<vmem>>, %arg5: memref<1x4xf32, #tpu.memory_space<vmem>>, %arg6: memref<1x16x2x16x8xf32, #tpu.memory_space<vmem>>) attributes {dimension_semantics = [#tpu.dimension_semantics<parallel>, #tpu.dimension_semantics<parallel>], iteration_bounds = array<i64: 2, 1>, scalar_prefetch = 0 : i64, scratch_operands = 0 : i64, tpu.core_type = #tpu.core_type<tc>, window_params = [{transform_indices = @transform_0, window_bounds = array<i64: 1, 16, 18, 4>}, {transform_indices = @transform_1, window_bounds = array<i64: 1, 2, 18, 4>}, {pipeline_mode = #tpu.pipeline_mode<synchronous>, transform_indices = @transform_2, window_bounds = array<i64: 16, 4, 4>}, {pipeline_mode = #tpu.pipeline_mode<synchronous>, transform_indices = @transform_3, window_bounds = array<i64: 1, 4>}, {transform_indices = @transform_4, window_bounds = array<i64: 1, 16, 2, 16, 8>}]} {
    %c0 = arith.constant 0 : index
    %c0_0 = arith.constant 0 : index
    %c0_1 = arith.constant 0 : index
    %c0_2 = arith.constant 0 : index
    %0 = vector.load %arg2[%c0, %c0_0, %c0_1, %c0_2] : memref<1x16x18x4xf32, #tpu.memory_space<vmem>>, vector<1x16x18x4xf32>
    %1 = vector.shape_cast %0 : vector<1x16x18x4xf32> to vector<16x18x4xf32>
    %c0_3 = arith.constant 0 : index
    %c0_4 = arith.constant 0 : index
    %c0_5 = arith.constant 0 : index
    %c0_6 = arith.constant 0 : index
    %2 = vector.load %arg3[%c0_3, %c0_4, %c0_5, %c0_6] : memref<1x2x18x4xf32, #tpu.memory_space<vmem>>, vector<1x2x18x4xf32>
    %3 = vector.shape_cast %2 : vector<1x2x18x4xf32> to vector<2x18x4xf32>
    %c0_7 = arith.constant 0 : index
    %c0_8 = arith.constant 0 : index
    %4 = vector.load %arg5[%c0_7, %c0_8] : memref<1x4xf32, #tpu.memory_space<vmem>>, vector<1x4xf32>
    %5 = vector.extract_strided_slice %1 {offsets = [0, 0, 0], sizes = [16, 16, 4], strides = [1, 1, 1]} : vector<16x18x4xf32> to vector<16x16x4xf32>
    %6 = vector.extract_strided_slice %3 {offsets = [0, 0, 0], sizes = [2, 16, 4], strides = [1, 1, 1]} : vector<2x18x4xf32> to vector<2x16x4xf32>
    %7 = tpu.concatenate %5, %6 in 0 : vector<16x16x4xf32>, vector<2x16x4xf32> -> vector<18x16x4xf32>
    %8 = vector.extract_strided_slice %1 {offsets = [0, 1, 0], sizes = [16, 16, 4], strides = [1, 1, 1]} : vector<16x18x4xf32> to vector<16x16x4xf32>
    %9 = vector.extract_strided_slice %3 {offsets = [0, 1, 0], sizes = [2, 16, 4], strides = [1, 1, 1]} : vector<2x18x4xf32> to vector<2x16x4xf32>
    %10 = tpu.concatenate %8, %9 in 0 : vector<16x16x4xf32>, vector<2x16x4xf32> -> vector<18x16x4xf32>
    %11 = vector.extract_strided_slice %1 {offsets = [0, 2, 0], sizes = [16, 16, 4], strides = [1, 1, 1]} : vector<16x18x4xf32> to vector<16x16x4xf32>
    %12 = vector.extract_strided_slice %3 {offsets = [0, 2, 0], sizes = [2, 16, 4], strides = [1, 1, 1]} : vector<2x18x4xf32> to vector<2x16x4xf32>
    %13 = tpu.concatenate %11, %12 in 0 : vector<16x16x4xf32>, vector<2x16x4xf32> -> vector<18x16x4xf32>
    %14 = vector.extract_strided_slice %7 {offsets = [0, 0, 0], sizes = [16, 16, 4], strides = [1, 1, 1]} : vector<18x16x4xf32> to vector<16x16x4xf32>
    %15 = vector.shape_cast %14 : vector<16x16x4xf32> to vector<256x4xf32>
    %c0_9 = arith.constant 0 : index
    %c0_10 = arith.constant 0 : index
    %c0_11 = arith.constant 0 : index
    %16 = vector.load %arg4[%c0_9, %c0_10, %c0_11] : memref<16x4x4xf32, #tpu.memory_space<vmem>>, vector<1x4x4xf32>
    %17 = vector.shape_cast %16 : vector<1x4x4xf32> to vector<4x4xf32>
    %cst = arith.constant dense<0.000000e+00> : vector<256x4xf32>
    %18 = tpu.matmul %15, %17, %cst {dimension_numbers = #tpu.dot_dimension_numbers<[1], [0], [0], [1], [0, 0, 1, 1], [], []>} : vector<256x4xf32>, vector<4x4xf32>, vector<256x4xf32> -> vector<256x4xf32>
    %19 = vector.extract_strided_slice %10 {offsets = [0, 0, 0], sizes = [16, 16, 4], strides = [1, 1, 1]} : vector<18x16x4xf32> to vector<16x16x4xf32>
    %20 = vector.shape_cast %19 : vector<16x16x4xf32> to vector<256x4xf32>
    %c1 = arith.constant 1 : index
    %c0_12 = arith.constant 0 : index
    %c0_13 = arith.constant 0 : index
    %21 = vector.load %arg4[%c1, %c0_12, %c0_13] : memref<16x4x4xf32, #tpu.memory_space<vmem>>, vector<1x4x4xf32>
    %22 = vector.shape_cast %21 : vector<1x4x4xf32> to vector<4x4xf32>
    %cst_14 = arith.constant dense<0.000000e+00> : vector<256x4xf32>
    %23 = tpu.matmul %20, %22, %cst_14 {dimension_numbers = #tpu.dot_dimension_numbers<[1], [0], [0], [1], [0, 0, 1, 1], [], []>} : vector<256x4xf32>, vector<4x4xf32>, vector<256x4xf32> -> vector<256x4xf32>
    %24 = arith.addf %18, %23 : vector<256x4xf32>
    %25 = vector.extract_strided_slice %7 {offsets = [1, 0, 0], sizes = [16, 16, 4], strides = [1, 1, 1]} : vector<18x16x4xf32> to vector<16x16x4xf32>
    %26 = vector.shape_cast %25 : vector<16x16x4xf32> to vector<256x4xf32>
    %c2 = arith.constant 2 : index
    %c0_15 = arith.constant 0 : index
    %c0_16 = arith.constant 0 : index
    %27 = vector.load %arg4[%c2, %c0_15, %c0_16] : memref<16x4x4xf32, #tpu.memory_space<vmem>>, vector<1x4x4xf32>
    %28 = vector.shape_cast %27 : vector<1x4x4xf32> to vector<4x4xf32>
    %cst_17 = arith.constant dense<0.000000e+00> : vector<256x4xf32>
    %29 = tpu.matmul %26, %28, %cst_17 {dimension_numbers = #tpu.dot_dimension_numbers<[1], [0], [0], [1], [0, 0, 1, 1], [], []>} : vector<256x4xf32>, vector<4x4xf32>, vector<256x4xf32> -> vector<256x4xf32>
    %30 = arith.addf %24, %29 : vector<256x4xf32>
    %31 = vector.extract_strided_slice %10 {offsets = [1, 0, 0], sizes = [16, 16, 4], strides = [1, 1, 1]} : vector<18x16x4xf32> to vector<16x16x4xf32>
    %32 = vector.shape_cast %31 : vector<16x16x4xf32> to vector<256x4xf32>
    %c3 = arith.constant 3 : index
    %c0_18 = arith.constant 0 : index
    %c0_19 = arith.constant 0 : index
    %33 = vector.load %arg4[%c3, %c0_18, %c0_19] : memref<16x4x4xf32, #tpu.memory_space<vmem>>, vector<1x4x4xf32>
    %34 = vector.shape_cast %33 : vector<1x4x4xf32> to vector<4x4xf32>
    %cst_20 = arith.constant dense<0.000000e+00> : vector<256x4xf32>
    %35 = tpu.matmul %32, %34, %cst_20 {dimension_numbers = #tpu.dot_dimension_numbers<[1], [0], [0], [1], [0, 0, 1, 1], [], []>} : vector<256x4xf32>, vector<4x4xf32>, vector<256x4xf32> -> vector<256x4xf32>
    %36 = arith.addf %30, %35 : vector<256x4xf32>
    %37 = vector.broadcast %4 : vector<1x4xf32> to vector<256x4xf32>
    %38 = arith.addf %36, %37 : vector<256x4xf32>
    %39 = vector.shape_cast %38 : vector<256x4xf32> to vector<16x16x4xf32>
    %40 = vector.extract_strided_slice %10 {offsets = [0, 0, 0], sizes = [16, 16, 4], strides = [1, 1, 1]} : vector<18x16x4xf32> to vector<16x16x4xf32>
    %41 = vector.shape_cast %40 : vector<16x16x4xf32> to vector<256x4xf32>
    %c4 = arith.constant 4 : index
    %c0_21 = arith.constant 0 : index
    %c0_22 = arith.constant 0 : index
    %42 = vector.load %arg4[%c4, %c0_21, %c0_22] : memref<16x4x4xf32, #tpu.memory_space<vmem>>, vector<1x4x4xf32>
    %43 = vector.shape_cast %42 : vector<1x4x4xf32> to vector<4x4xf32>
    %cst_23 = arith.constant dense<0.000000e+00> : vector<256x4xf32>
    %44 = tpu.matmul %41, %43, %cst_23 {dimension_numbers = #tpu.dot_dimension_numbers<[1], [0], [0], [1], [0, 0, 1, 1], [], []>} : vector<256x4xf32>, vector<4x4xf32>, vector<256x4xf32> -> vector<256x4xf32>
    %45 = vector.extract_strided_slice %13 {offsets = [0, 0, 0], sizes = [16, 16, 4], strides = [1, 1, 1]} : vector<18x16x4xf32> to vector<16x16x4xf32>
    %46 = vector.shape_cast %45 : vector<16x16x4xf32> to vector<256x4xf32>
    %c5 = arith.constant 5 : index
    %c0_24 = arith.constant 0 : index
    %c0_25 = arith.constant 0 : index
    %47 = vector.load %arg4[%c5, %c0_24, %c0_25] : memref<16x4x4xf32, #tpu.memory_space<vmem>>, vector<1x4x4xf32>
    %48 = vector.shape_cast %47 : vector<1x4x4xf32> to vector<4x4xf32>
    %cst_26 = arith.constant dense<0.000000e+00> : vector<256x4xf32>
    %49 = tpu.matmul %46, %48, %cst_26 {dimension_numbers = #tpu.dot_dimension_numbers<[1], [0], [0], [1], [0, 0, 1, 1], [], []>} : vector<256x4xf32>, vector<4x4xf32>, vector<256x4xf32> -> vector<256x4xf32>
    %50 = arith.addf %44, %49 : vector<256x4xf32>
    %51 = vector.extract_strided_slice %10 {offsets = [1, 0, 0], sizes = [16, 16, 4], strides = [1, 1, 1]} : vector<18x16x4xf32> to vector<16x16x4xf32>
    %52 = vector.shape_cast %51 : vector<16x16x4xf32> to vector<256x4xf32>
    %c6 = arith.constant 6 : index
    %c0_27 = arith.constant 0 : index
    %c0_28 = arith.constant 0 : index
    %53 = vector.load %arg4[%c6, %c0_27, %c0_28] : memref<16x4x4xf32, #tpu.memory_space<vmem>>, vector<1x4x4xf32>
    %54 = vector.shape_cast %53 : vector<1x4x4xf32> to vector<4x4xf32>
    %cst_29 = arith.constant dense<0.000000e+00> : vector<256x4xf32>
    %55 = tpu.matmul %52, %54, %cst_29 {dimension_numbers = #tpu.dot_dimension_numbers<[1], [0], [0], [1], [0, 0, 1, 1], [], []>} : vector<256x4xf32>, vector<4x4xf32>, vector<256x4xf32> -> vector<256x4xf32>
    %56 = arith.addf %50, %55 : vector<256x4xf32>
    %57 = vector.extract_strided_slice %13 {offsets = [1, 0, 0], sizes = [16, 16, 4], strides = [1, 1, 1]} : vector<18x16x4xf32> to vector<16x16x4xf32>
    %58 = vector.shape_cast %57 : vector<16x16x4xf32> to vector<256x4xf32>
    %c7 = arith.constant 7 : index
    %c0_30 = arith.constant 0 : index
    %c0_31 = arith.constant 0 : index
    %59 = vector.load %arg4[%c7, %c0_30, %c0_31] : memref<16x4x4xf32, #tpu.memory_space<vmem>>, vector<1x4x4xf32>
    %60 = vector.shape_cast %59 : vector<1x4x4xf32> to vector<4x4xf32>
    %cst_32 = arith.constant dense<0.000000e+00> : vector<256x4xf32>
    %61 = tpu.matmul %58, %60, %cst_32 {dimension_numbers = #tpu.dot_dimension_numbers<[1], [0], [0], [1], [0, 0, 1, 1], [], []>} : vector<256x4xf32>, vector<4x4xf32>, vector<256x4xf32> -> vector<256x4xf32>
    %62 = arith.addf %56, %61 : vector<256x4xf32>
    %63 = vector.broadcast %4 : vector<1x4xf32> to vector<256x4xf32>
    %64 = arith.addf %62, %63 : vector<256x4xf32>
    %65 = vector.shape_cast %64 : vector<256x4xf32> to vector<16x16x4xf32>
    %66 = tpu.concatenate %39, %65 in 2 : vector<16x16x4xf32>, vector<16x16x4xf32> -> vector<16x16x8xf32>
    %c0_33 = arith.constant 0 : index
    %c0_34 = arith.constant 0 : index
    %c0_35 = arith.constant 0 : index
    %c0_36 = arith.constant 0 : index
    %c0_37 = arith.constant 0 : index
    %67 = vector.load %arg6[%c0_33, %c0_34, %c0_35, %c0_36, %c0_37] : memref<1x16x2x16x8xf32, #tpu.memory_space<vmem>>, vector<1x16x1x16x8xf32>
    %68 = vector.shape_cast %67 : vector<1x16x1x16x8xf32> to vector<16x16x8xf32>
    %69 = vector.shape_cast %66 : vector<16x16x8xf32> to vector<1x16x1x16x8xf32>
    tpu.vector_store %arg6[%c0_33, %c0_34, %c0_35, %c0_36, %c0_37], %69 {strides = array<i32>} : memref<1x16x2x16x8xf32, #tpu.memory_space<vmem>>, vector<1x16x1x16x8xf32>,
    %70 = vector.extract_strided_slice %7 {offsets = [1, 0, 0], sizes = [16, 16, 4], strides = [1, 1, 1]} : vector<18x16x4xf32> to vector<16x16x4xf32>
    %71 = vector.shape_cast %70 : vector<16x16x4xf32> to vector<256x4xf32>
    %c8 = arith.constant 8 : index
    %c0_38 = arith.constant 0 : index
    %c0_39 = arith.constant 0 : index
    %72 = vector.load %arg4[%c8, %c0_38, %c0_39] : memref<16x4x4xf32, #tpu.memory_space<vmem>>, vector<1x4x4xf32>
    %73 = vector.shape_cast %72 : vector<1x4x4xf32> to vector<4x4xf32>
    %cst_40 = arith.constant dense<0.000000e+00> : vector<256x4xf32>
    %74 = tpu.matmul %71, %73, %cst_40 {dimension_numbers = #tpu.dot_dimension_numbers<[1], [0], [0], [1], [0, 0, 1, 1], [], []>} : vector<256x4xf32>, vector<4x4xf32>, vector<256x4xf32> -> vector<256x4xf32>
    %75 = vector.extract_strided_slice %10 {offsets = [1, 0, 0], sizes = [16, 16, 4], strides = [1, 1, 1]} : vector<18x16x4xf32> to vector<16x16x4xf32>
    %76 = vector.shape_cast %75 : vector<16x16x4xf32> to vector<256x4xf32>
    %c9 = arith.constant 9 : index
    %c0_41 = arith.constant 0 : index
    %c0_42 = arith.constant 0 : index
    %77 = vector.load %arg4[%c9, %c0_41, %c0_42] : memref<16x4x4xf32, #tpu.memory_space<vmem>>, vector<1x4x4xf32>
    %78 = vector.shape_cast %77 : vector<1x4x4xf32> to vector<4x4xf32>
    %cst_43 = arith.constant dense<0.000000e+00> : vector<256x4xf32>
    %79 = tpu.matmul %76, %78, %cst_43 {dimension_numbers = #tpu.dot_dimension_numbers<[1], [0], [0], [1], [0, 0, 1, 1], [], []>} : vector<256x4xf32>, vector<4x4xf32>, vector<256x4xf32> -> vector<256x4xf32>
    %80 = arith.addf %74, %79 : vector<256x4xf32>
    %81 = vector.extract_strided_slice %7 {offsets = [2, 0, 0], sizes = [16, 16, 4], strides = [1, 1, 1]} : vector<18x16x4xf32> to vector<16x16x4xf32>
    %82 = vector.shape_cast %81 : vector<16x16x4xf32> to vector<256x4xf32>
    %c10 = arith.constant 10 : index
    %c0_44 = arith.constant 0 : index
    %c0_45 = arith.constant 0 : index
    %83 = vector.load %arg4[%c10, %c0_44, %c0_45] : memref<16x4x4xf32, #tpu.memory_space<vmem>>, vector<1x4x4xf32>
    %84 = vector.shape_cast %83 : vector<1x4x4xf32> to vector<4x4xf32>
    %cst_46 = arith.constant dense<0.000000e+00> : vector<256x4xf32>
    %85 = tpu.matmul %82, %84, %cst_46 {dimension_numbers = #tpu.dot_dimension_numbers<[1], [0], [0], [1], [0, 0, 1, 1], [], []>} : vector<256x4xf32>, vector<4x4xf32>, vector<256x4xf32> -> vector<256x4xf32>
    %86 = arith.addf %80, %85 : vector<256x4xf32>
    %87 = vector.extract_strided_slice %10 {offsets = [2, 0, 0], sizes = [16, 16, 4], strides = [1, 1, 1]} : vector<18x16x4xf32> to vector<16x16x4xf32>
    %88 = vector.shape_cast %87 : vector<16x16x4xf32> to vector<256x4xf32>
    %c11 = arith.constant 11 : index
    %c0_47 = arith.constant 0 : index
    %c0_48 = arith.constant 0 : index
    %89 = vector.load %arg4[%c11, %c0_47, %c0_48] : memref<16x4x4xf32, #tpu.memory_space<vmem>>, vector<1x4x4xf32>
    %90 = vector.shape_cast %89 : vector<1x4x4xf32> to vector<4x4xf32>
    %cst_49 = arith.constant dense<0.000000e+00> : vector<256x4xf32>
    %91 = tpu.matmul %88, %90, %cst_49 {dimension_numbers = #tpu.dot_dimension_numbers<[1], [0], [0], [1], [0, 0, 1, 1], [], []>} : vector<256x4xf32>, vector<4x4xf32>, vector<256x4xf32> -> vector<256x4xf32>
    %92 = arith.addf %86, %91 : vector<256x4xf32>
    %93 = vector.broadcast %4 : vector<1x4xf32> to vector<256x4xf32>
    %94 = arith.addf %92, %93 : vector<256x4xf32>
    %95 = vector.shape_cast %94 : vector<256x4xf32> to vector<16x16x4xf32>
    %96 = vector.extract_strided_slice %10 {offsets = [1, 0, 0], sizes = [16, 16, 4], strides = [1, 1, 1]} : vector<18x16x4xf32> to vector<16x16x4xf32>
    %97 = vector.shape_cast %96 : vector<16x16x4xf32> to vector<256x4xf32>
    %c12 = arith.constant 12 : index
    %c0_50 = arith.constant 0 : index
    %c0_51 = arith.constant 0 : index
    %98 = vector.load %arg4[%c12, %c0_50, %c0_51] : memref<16x4x4xf32, #tpu.memory_space<vmem>>, vector<1x4x4xf32>
    %99 = vector.shape_cast %98 : vector<1x4x4xf32> to vector<4x4xf32>
    %cst_52 = arith.constant dense<0.000000e+00> : vector<256x4xf32>
    %100 = tpu.matmul %97, %99, %cst_52 {dimension_numbers = #tpu.dot_dimension_numbers<[1], [0], [0], [1], [0, 0, 1, 1], [], []>} : vector<256x4xf32>, vector<4x4xf32>, vector<256x4xf32> -> vector<256x4xf32>
    %101 = vector.extract_strided_slice %13 {offsets = [1, 0, 0], sizes = [16, 16, 4], strides = [1, 1, 1]} : vector<18x16x4xf32> to vector<16x16x4xf32>
    %102 = vector.shape_cast %101 : vector<16x16x4xf32> to vector<256x4xf32>
    %c13 = arith.constant 13 : index
    %c0_53 = arith.constant 0 : index
    %c0_54 = arith.constant 0 : index
    %103 = vector.load %arg4[%c13, %c0_53, %c0_54] : memref<16x4x4xf32, #tpu.memory_space<vmem>>, vector<1x4x4xf32>
    %104 = vector.shape_cast %103 : vector<1x4x4xf32> to vector<4x4xf32>
    %cst_55 = arith.constant dense<0.000000e+00> : vector<256x4xf32>
    %105 = tpu.matmul %102, %104, %cst_55 {dimension_numbers = #tpu.dot_dimension_numbers<[1], [0], [0], [1], [0, 0, 1, 1], [], []>} : vector<256x4xf32>, vector<4x4xf32>, vector<256x4xf32> -> vector<256x4xf32>
    %106 = arith.addf %100, %105 : vector<256x4xf32>
    %107 = vector.extract_strided_slice %10 {offsets = [2, 0, 0], sizes = [16, 16, 4], strides = [1, 1, 1]} : vector<18x16x4xf32> to vector<16x16x4xf32>
    %108 = vector.shape_cast %107 : vector<16x16x4xf32> to vector<256x4xf32>
    %c14 = arith.constant 14 : index
    %c0_56 = arith.constant 0 : index
    %c0_57 = arith.constant 0 : index
    %109 = vector.load %arg4[%c14, %c0_56, %c0_57] : memref<16x4x4xf32, #tpu.memory_space<vmem>>, vector<1x4x4xf32>
    %110 = vector.shape_cast %109 : vector<1x4x4xf32> to vector<4x4xf32>
    %cst_58 = arith.constant dense<0.000000e+00> : vector<256x4xf32>
    %111 = tpu.matmul %108, %110, %cst_58 {dimension_numbers = #tpu.dot_dimension_numbers<[1], [0], [0], [1], [0, 0, 1, 1], [], []>} : vector<256x4xf32>, vector<4x4xf32>, vector<256x4xf32> -> vector<256x4xf32>
    %112 = arith.addf %106, %111 : vector<256x4xf32>
    %113 = vector.extract_strided_slice %13 {offsets = [2, 0, 0], sizes = [16, 16, 4], strides = [1, 1, 1]} : vector<18x16x4xf32> to vector<16x16x4xf32>
    %114 = vector.shape_cast %113 : vector<16x16x4xf32> to vector<256x4xf32>
    %c15 = arith.constant 15 : index
    %c0_59 = arith.constant 0 : index
    %c0_60 = arith.constant 0 : index
    %115 = vector.load %arg4[%c15, %c0_59, %c0_60] : memref<16x4x4xf32, #tpu.memory_space<vmem>>, vector<1x4x4xf32>
    %116 = vector.shape_cast %115 : vector<1x4x4xf32> to vector<4x4xf32>
    %cst_61 = arith.constant dense<0.000000e+00> : vector<256x4xf32>
    %117 = tpu.matmul %114, %116, %cst_61 {dimension_numbers = #tpu.dot_dimension_numbers<[1], [0], [0], [1], [0, 0, 1, 1], [], []>} : vector<256x4xf32>, vector<4x4xf32>, vector<256x4xf32> -> vector<256x4xf32>
    %118 = arith.addf %112, %117 : vector<256x4xf32>
    %119 = vector.broadcast %4 : vector<1x4xf32> to vector<256x4xf32>
    %120 = arith.addf %118, %119 : vector<256x4xf32>
    %121 = vector.shape_cast %120 : vector<256x4xf32> to vector<16x16x4xf32>
    %122 = tpu.concatenate %95, %121 in 2 : vector<16x16x4xf32>, vector<16x16x4xf32> -> vector<16x16x8xf32>
    %c0_62 = arith.constant 0 : index
    %c0_63 = arith.constant 0 : index
    %c1_64 = arith.constant 1 : index
    %c0_65 = arith.constant 0 : index
    %c0_66 = arith.constant 0 : index
    %123 = vector.load %arg6[%c0_62, %c0_63, %c1_64, %c0_65, %c0_66] : memref<1x16x2x16x8xf32, #tpu.memory_space<vmem>>, vector<1x16x1x16x8xf32>
    %124 = vector.shape_cast %123 : vector<1x16x1x16x8xf32> to vector<16x16x8xf32>
    %125 = vector.shape_cast %122 : vector<16x16x8xf32> to vector<1x16x1x16x8xf32>
    tpu.vector_store %arg6[%c0_62, %c0_63, %c1_64, %c0_65, %c0_66], %125 {strides = array<i32>} : memref<1x16x2x16x8xf32, #tpu.memory_space<vmem>>, vector<1x16x1x16x8xf32>,
    return
  }
  func.func @transform_0(%arg0: i32, %arg1: i32) -> (i32, i32, i32, i32) {
    %c0_i32 = arith.constant 0 : i32
    %c0_i32_0 = arith.constant 0 : i32
    %c0_i32_1 = arith.constant 0 : i32
    return %arg0, %arg1, %c0_i32, %c0_i32_0 : i32, i32, i32, i32
  }
  func.func @transform_1(%arg0: i32, %arg1: i32) -> (i32, i32, i32, i32) {
    %c1_i32 = arith.constant 1 : i32
    %0 = arith.addi %arg1, %c1_i32 : i32
    %c8_i32 = arith.constant 8 : i32
    %1 = arith.muli %0, %c8_i32 : i32
    %c0_i32 = arith.constant 0 : i32
    %c0_i32_0 = arith.constant 0 : i32
    %c0_i32_1 = arith.constant 0 : i32
    return %arg0, %1, %c0_i32, %c0_i32_0 : i32, i32, i32, i32
  }
  func.func @transform_2(%arg0: i32, %arg1: i32) -> (i32, i32, i32) {
    %c0_i32 = arith.constant 0 : i32
    %c0_i32_0 = arith.constant 0 : i32
    %c0_i32_1 = arith.constant 0 : i32
    %c0_i32_2 = arith.constant 0 : i32
    return %c0_i32, %c0_i32_0, %c0_i32_1 : i32, i32, i32
  }
  func.func @transform_3(%arg0: i32, %arg1: i32) -> (i32, i32) {
    %c0_i32 = arith.constant 0 : i32
    %c0_i32_0 = arith.constant 0 : i32
    %c0_i32_1 = arith.constant 0 : i32
    return %c0_i32, %c0_i32_0 : i32, i32
  }
  func.func @transform_4(%arg0: i32, %arg1: i32) -> (i32, i32, i32, i32, i32) {
    %c0_i32 = arith.constant 0 : i32
    %c0_i32_0 = arith.constant 0 : i32
    %c0_i32_1 = arith.constant 0 : i32
    %c0_i32_2 = arith.constant 0 : i32
    return %arg0, %arg1, %c0_i32, %c0_i32_0, %c0_i32_1 : i32, i32, i32, i32, i32
  }
}

</mosaic_0001>

<bundles_post_ra>
// kernel: tpu_custom_call.1
= control target key start
LH: loop header
LB: loop body
LE: loop exit
PB: predicated region body
PF: predicated region fallthrough
CT: control target
= control target key end

     0   :  { %s7812_s15 = smov 0   ;;  %s7814_s16 = smov 0   ;;  %s10043_s0 = inlined_call_operand.vmem [shape: f32[2,18,18,4], index: 0, kind: input, shape index: {}]   ;;  %s10044_s1 = inlined_call_operand.vmem [shape: f32[2,18,18,4], index: 1, kind: input, shape index: {}]   ;;  %s10045_s2 = inlined_call_operand.vmem [shape: f32[16,4,4], index: 2, kind: input, shape index: {}]   ;;  %s10046_s3 = inlined_call_operand.vmem [shape: f32[1,4], index: 3, kind: input, shape index: {}]   ;;  %s10047_s4 = inlined_call_operand.vmem [shape: f32[2,16,2,16,8], index: 4, kind: output, shape index: {}]  }
   0x1   :  { %s7816_s17 = smov 0  }
   0x2 LB: > { %s26_s18 = sadd.s32 1, %s7780_s16  ;;  %p5405_p0 = scmp.ge.s32.totalorder %s7784_s17, 1  ;;  %s7784_s17 = sphi %s7816_s17, %s14_s17   ;;  %s7780_s16 = sphi %s7814_s16, %s10365_s16   ;;  %s7776_s15 = sphi %s7812_s15, %s10364_s15  }
   0x3   : > { %p28_p1 = scmp.ge.s32.totalorder %s26_s18, 2  ;;  %p220_p2 = scmp.lt.s32.totalorder %s7784_s17, 3 }
   0x5   : > { %s10367_s18 = smov (%p28_p1, %s26_s18), 0  ;;  %p221_p3 = pnand %p5405_p0, %p220_p2 }
   0x7   : > { %224 = sbr.rel (%p221_p3) target bundleno = 865 (0x361), region = 36 }
   0xe   : > { %vm572_vm0 = vcmask 1043456   ;;  %v5547_v0 = vld [vmem:[%s10045_s2 + $0x14] sm:$0xf]  ;;  %v5410_v1 = vld [vmem:[%s10045_s2 + $0x4] sm:$0xf]  ;;  %p279_p4 = scmp.lt.s32.totalorder %s7776_s15, 1 }
   0xf   : > { %6719 = vmatprep.subr.msk.mxu1 %vm572_vm0, %v5547_v0  ;;  %6519 = vmatprep.subr.msk.mxu0 %vm572_vm0, %v5410_v1  ;;  %v5546_v2 = vld [vmem:[%s10045_s2 + $0x10] sm:$0xf]  ;;  %v375_v3 = vld [vmem:[%s10045_s2] sm:$0xf]  ;;  %vm424_vm1 = vcmask 1046528   ;;  %vm507_vm2 = vcmask 31744  }
  0x10   : > { %6720 = vmatpush3.msk.msra.mxu1 %vm572_vm0, %v5547_v0  ;;  %6520 = vmatpush3.msk.msra.mxu0 %vm572_vm0, %v5410_v1  ;;  %s10369_s15 = smov (!%p279_p4, %s7776_s15), 1  ;;  %vm1673_vm3 = vcmask 1045504   ;;  %v7918_v35 = vld [vmem:[%s10045_s2 + $0x18] sm:$0xf]  ;;  %s7786_s14 = smov 4   ;;  %vm3001_vm4 = vcmask 64512  }
  0x11   : > { %6769 = vmatprep.subr.msk.mxu1 %vm572_vm0, %v5546_v2  ;;  %6569 = vmatprep.subr.msk.mxu0 %vm572_vm0, %v375_v3  ;;  %s7703_s27 = smul.u32 432, %s10369_s15 }
  0x13   : > { %s7856_s30 = scalar_lea.vmem %s10043_s0, %s7703_s27  ;;  %s5989_s21 = sadd.s32 384, %s7703_s27 }
  0x14   : > { %v7859_v4 = vld [vmem:[%s7856_s30] sm:$0xff]  ;;  %v7862_v5 = vld [vmem:[%s7856_s30 + $0x8] sm:$0xff]  ;;  %v322_v6 = vld [vmem:[%s7856_s30 + $0x10] sm:$0x3]  ;;  %s8629_s24 = scalar_lea.vmem %s10044_s1, %s5989_s21 }
  0x15   : > { %v425_v7 = vrot.slane %v7859_v4, 1  ;;  %v426_v8 = vrot.slane %v7862_v5, 1  ;;  %v1674_v9 = vrot.slane %v7859_v4, 2  ;;  %v1675_v10 = vrot.slane %v7862_v5, 2  ;;  %v7870_v11 = vld [vmem:[%s7856_s30 + $0x18] sm:$0xff]  ;;  %v7873_v12 = vld [vmem:[%s7856_s30 + $0x20] sm:$0xff] }
  0x16   : > { %v428_v13 = vrot.slane %v322_v6, 1  ;;  %v1677_v14 = vrot.slane %v322_v6, 2  ;;  %v430_v15 = vrot.slane %v7870_v11, 1  ;;  %v431_v16 = vrot.slane %v7873_v12, 1  ;;  %v325_v17 = vld [vmem:[%s7856_s30 + $0x28] sm:$0x3] }
  0x17   : > { %v7879_v18 = vsel %vm424_vm1, %v425_v7, %v426_v8  ;;  %v1676_v19 = vsel %vm1673_vm3, %v1674_v9, %v1675_v10  ;;  %v1679_v20 = vrot.slane %v7870_v11, 2  ;;  %v1680_v21 = vrot.slane %v7873_v12, 2  ;;  %v7885_v22 = vld [vmem:[%s7856_s30 + $0x30] sm:$0xff]  ;;  %v7888_v23 = vld [vmem:[%s7856_s30 + $0x38] sm:$0xff]  ;;  %v328_v24 = vld [vmem:[%s7856_s30 + $0x40] sm:$0x3] }
  0x18   : > { %6521 = vmatprep.mubr.msk.f32.mxu0 %vm507_vm2, %v7879_v18  ;;  %6721 = vmatprep.mubr.msk.f32.mxu1 %vm507_vm2, %v1676_v19  ;;  %v7895_v25 = vsel %vm424_vm1, %v426_v8, %v428_v13  ;;  %v1678_v26 = vsel %vm1673_vm3, %v1675_v10, %v1677_v14  ;;  %v7899_v27 = vsel %vm424_vm1, %v430_v15, %v431_v16  ;;  %v433_v28 = vrot.slane %v325_v17, 1  ;;  %v7902_v29 = vld [vmem:[%s7856_s30 + $0x48] sm:$0xff]  ;;  %v7913_v34 = vld [vmem:[%s7856_s30 + $0x50] sm:$0xff]  ;;  %v331_v40 = vld [vmem:[%s7856_s30 + $0x58] sm:$0x3] }
  0x19   : > { %6522 = vmatmul.mubr.msk.f32.vlgmr.msra.gmra.mrb[0].mxu0 %vm507_vm2, %v7895_v25  ;;  %6722 = vmatmul.mubr.msk.f32.vlgmr.msra.gmra.mrb[0].mxu1 %vm507_vm2, %v1678_v26  ;;  %v7908_v30 = vsel %vm1673_vm3, %v1679_v20, %v1680_v21  ;;  %v1682_v31 = vrot.slane %v325_v17, 2  ;;  %v435_v32 = vrot.slane %v7885_v22, 1  ;;  %v436_v33 = vrot.slane %v7888_v23, 1  ;;  %v7939_v45 = vld [vmem:[%s7856_s30 + $0x60] sm:$0xff]  ;;  %v7942_v46 = vld [vmem:[%s7856_s30 + $0x68] sm:$0xff]  ;;  %v7979_v62 = vld [vmem:[%s7856_s30 + $0x78] sm:$0xff] }
  0x1a   : > { %10180 = vst [vmem:[#allocation2_spill] sm:$0xff] %v7908_v30  ;;  %6770 = vmatpush3.msk.msra.mxu1 %vm572_vm0, %v5546_v2  ;;  %6524 = vmatprep.mubr.msk.f32.mxu0 %vm507_vm2, %v7899_v27  ;;  %v7924_v36 = vsel %vm424_vm1, %v431_v16, %v433_v28  ;;  %v1684_v37 = vrot.slane %v7885_v22, 2  ;;  %v1685_v38 = vrot.slane %v7888_v23, 2  ;;  %v438_v39 = vrot.slane %v328_v24, 1  ;;  %v334_v61 = vld [vmem:[%s7856_s30 + $0x70] sm:$0x3] }
  0x1b   : > { %6724 = vmatprep.mubr.msk.f32.mxu1 %vm507_vm2, %v7908_v30  ;;  %v7932_v41 = vsel %vm1673_vm3, %v1680_v21, %v1682_v31  ;;  %v7935_v42 = vsel %vm424_vm1, %v435_v32, %v436_v33  ;;  %v1687_v43 = vrot.slane %v328_v24, 2  ;;  %v440_v44 = vrot.slane %v7902_v29, 1  ;;  %6570 = vmatpush3.msk.msra.mxu0 %vm572_vm0, %v375_v3  ;;  %v7982_v63 = vld [vmem:[%s7856_s30 + $0x80] sm:$0xff]  ;;  %v337_v8 = vld [vmem:[%s7856_s30 + $0x88] sm:$0x3]  ;;  %v8010_v15 = vld [vmem:[%s7856_s30 + $0x90] sm:$0xff] }
  0x1c   : > { %10181 = vst [vmem:[#allocation3_spill] sm:$0xff] %v7932_v41  ;;  %v7946_v47 = vsel %vm1673_vm3, %v1684_v37, %v1685_v38  ;;  %v441_v48 = vrot.slane %v7913_v34, 1  ;;  %v1689_v49 = vrot.slane %v7902_v29, 2  ;;  %6819 = vmatprep.subr.msk.mxu1 %vm572_vm0, %v7918_v35  ;;  %v1690_v50 = vrot.slane %v7913_v34, 2  ;;  %10187 = vst [vmem:[#allocation9_spill] sm:$0xff] %v8010_v15  ;;  %v8013_v16 = vld [vmem:[%s7856_s30 + $0x98] sm:$0xff] }
  0x1d   : > { %10182 = vst [vmem:[#allocation4_spill] sm:$0xff] %v7946_v47  ;;  %6525 = vmatmul.mubr.msk.f32.gmra.mrb[2].mxu0 %vm507_vm2, %v7924_v36  ;;  %6725 = vmatmul.mubr.msk.f32.gmra.mrb[2].mxu1 %vm507_vm2, %v7932_v41  ;;  %v443_v51 = vrot.slane %v331_v40, 1  ;;  %v1692_v52 = vrot.slane %v331_v40, 2  ;;  %v7962_v53 = vsel %vm424_vm1, %v436_v33, %v438_v39  ;;  %v7965_v54 = vsel %vm1673_vm3, %v1685_v38, %v1687_v43  ;;  %v340_v28 = vld [vmem:[%s7856_s30 + $0xa0] sm:$0x3]  ;;  %v8041_v38 = vld [vmem:[%s7856_s30 + $0xa8] sm:$0xff] }
  0x1e   : > { %6527 = vmatprep.mubr.msk.f32.mxu0 %vm507_vm2, %v7935_v42  ;;  %6727 = vmatprep.mubr.msk.f32.mxu1 %vm507_vm2, %v7946_v47  ;;  %10183 = vst [vmem:[#allocation5_spill] sm:$0xff] %v7965_v54  ;;  %v445_v55 = vrot.slane %v7939_v45, 1  ;;  %v446_v56 = vrot.slane %v7942_v46, 1  ;;  %v7970_v57 = vsel %vm424_vm1, %v440_v44, %v441_v48  ;;  %v7973_v58 = vsel %vm1673_vm3, %v1689_v49, %v1690_v50  ;;  %v8046_v39 = vld [vmem:[%s10045_s2 + $0x8] sm:$0xf]  ;;  %v8049_v40 = vld [vmem:[%s7856_s30 + $0xb0] sm:$0xff] }
  0x1f   : > { %10184 = vst [vmem:[#allocation6_spill] sm:$0xff] %v7973_v58  ;;  %v1694_v59 = vrot.slane %v7939_v45, 2  ;;  %v1695_v60 = vrot.slane %v7942_v46, 2  ;;  %v7989_v0 = vsel %vm424_vm1, %v441_v48, %v443_v51  ;;  %v7992_v1 = vsel %vm1673_vm3, %v1690_v50, %v1692_v52  ;;  %10190 = vst [vmem:[#allocation12_spill] sm:$0xff] %v8041_v38  ;;  %6619 = vmatprep.subr.msk.mxu0 %vm572_vm0, %v8046_v39  ;;  %v343_v52 = vld [vmem:[%s7856_s30 + $0xb8] sm:$0x3] }
  0x20   : > { %10185 = vst [vmem:[#allocation7_spill] sm:$0xff] %v7992_v1  ;;  %v7999_v2 = vsel %vm424_vm1, %v445_v55, %v446_v56  ;;  %v448_v3 = vrot.slane %v334_v61, 1  ;;  %v1697_v6 = vrot.slane %v334_v61, 2  ;;  %v450_v7 = vrot.slane %v7979_v62, 1  ;;  %10191 = vst [vmem:[#allocation13_spill] sm:$0xff] %v8049_v40  ;;  %v8079_v61 = vld [vmem:[%s7856_s30 + $0xc0] sm:$0xff] }
  0x21   : > { %6528 = vmatmul.mubr.msk.f32.gmra.mrb[4].mxu0 %vm507_vm2, %v7962_v53  ;;  %6728 = vmatmul.mubr.msk.f32.gmra.mrb[4].mxu1 %vm507_vm2, %v7965_v54  ;;  %v8004_v9 = vsel %vm1673_vm3, %v1694_v59, %v1695_v60  ;;  %v451_v10 = vrot.slane %v7982_v63, 1  ;;  %v1699_v13 = vrot.slane %v7979_v62, 2  ;;  %v1700_v14 = vrot.slane %v7982_v63, 2  ;;  %10194 = vst [vmem:[#allocation16_spill] sm:$0xff] %v8079_v61  ;;  %v8203_v41 = vld [vmem:[%s7856_s30 + $0x120] sm:$0xff] }
  0x22   : > { %6530 = vmatprep.mubr.msk.f32.mxu0 %vm507_vm2, %v7970_v57  ;;  %6730 = vmatprep.mubr.msk.f32.mxu1 %vm507_vm2, %v7973_v58  ;;  %10186 = vst [vmem:[#allocation8_spill] sm:$0xff] %v8004_v9  ;;  %v453_v17 = vrot.slane %v337_v8, 1  ;;  %v1702_v19 = vrot.slane %v337_v8, 2  ;;  %v8024_v20 = vsel %vm424_vm1, %v446_v56, %v448_v3  ;;  %v8027_v21 = vsel %vm1673_vm3, %v1695_v60, %v1697_v6  ;;  %v8082_v3 = vld [vmem:[%s7856_s30 + $0xc8] sm:$0xff] }
  0x23   : > { %10188 = vst [vmem:[#allocation10_spill] sm:$0xff] %v8027_v21  ;;  %v455_v24 = vrot.slane %v8010_v15, 1  ;;  %v456_v26 = vrot.slane %v8013_v16, 1  ;;  %v8033_v31 = vsel %vm424_vm1, %v450_v7, %v451_v10  ;;  %v8036_v32 = vsel %vm1673_vm3, %v1699_v13, %v1700_v14  ;;  %10195 = vst [vmem:[#allocation17_spill] sm:$0xff] %v8082_v3 }
  0x24   : > { %10189 = vst [vmem:[#allocation11_spill] sm:$0xff] %v8036_v32  ;;  %v1704_v33 = vrot.slane %v8010_v15, 2  ;;  %v1705_v37 = vrot.slane %v8013_v16, 2  ;;  %v8058_v43 = vsel %vm424_vm1, %v451_v10, %v453_v17  ;;  %v8061_v44 = vsel %vm1673_vm3, %v1700_v14, %v1702_v19  ;;  %10211 = vst [vmem:[#allocation33_spill] sm:$0xff] %v8203_v41 }
  0x25   : > { %6531 = vmatmul.mubr.msk.f32.gmra.mrb[6].mxu0 %vm507_vm2, %v7989_v0  ;;  %6731 = vmatmul.mubr.msk.f32.gmra.mrb[6].mxu1 %vm507_vm2, %v7992_v1  ;;  %10192 = vst [vmem:[#allocation14_spill] sm:$0xff] %v8061_v44  ;;  %v8068_v48 = vsel %vm424_vm1, %v455_v24, %v456_v26  ;;  %v458_v49 = vrot.slane %v340_v28, 1  ;;  %v1707_v50 = vrot.slane %v340_v28, 2  ;;  %v460_v51 = vrot.slane %v8041_v38, 1 }
  0x26   : > { %6533 = vmatprep.mubr.msk.f32.mxu0 %vm507_vm2, %v7999_v2  ;;  %6733 = vmatprep.mubr.msk.f32.mxu1 %vm507_vm2, %v8004_v9  ;;  %v8073_v55 = vsel %vm1673_vm3, %v1704_v33, %v1705_v37  ;;  %v461_v56 = vrot.slane %v8049_v40, 1  ;;  %v1709_v59 = vrot.slane %v8041_v38, 2  ;;  %v1710_v60 = vrot.slane %v8049_v40, 2  ;;  %v8110_v33 = vld [vmem:[%s7856_s30 + $0xd8] sm:$0xff] }
  0x27   : > { %10193 = vst [vmem:[#allocation15_spill] sm:$0xff] %v8073_v55  ;;  %v463_v6 = vrot.slane %v343_v52, 1  ;;  %v1712_v7 = vrot.slane %v343_v52, 2  ;;  %v8093_v8 = vsel %vm424_vm1, %v456_v26, %v458_v49  ;;  %v8096_v10 = vsel %vm1673_vm3, %v1705_v37, %v1707_v50  ;;  %v346_v26 = vld [vmem:[%s7856_s30 + $0xd0] sm:$0x3]  ;;  %10198 = vst [vmem:[#allocation20_spill] sm:$0xff] %v8110_v33 }
  0x28   : > { %10196 = vst [vmem:[#allocation18_spill] sm:$0xff] %v8096_v10  ;;  %v465_v13 = vrot.slane %v8079_v61, 1  ;;  %v466_v14 = vrot.slane %v8082_v3, 1  ;;  %v8101_v17 = vsel %vm424_vm1, %v460_v51, %v461_v56  ;;  %v8104_v19 = vsel %vm1673_vm3, %v1709_v59, %v1710_v60  ;;  %v8113_v37 = vld [vmem:[%s7856_s30 + $0xe0] sm:$0xff] }
  0x29   : > { %6534 = vmatmul.mubr.msk.f32.gmra.mrb[8].mxu0 %vm507_vm2, %v8024_v20  ;;  %6734 = vmatmul.mubr.msk.f32.gmra.mrb[8].mxu1 %vm507_vm2, %v8027_v21  ;;  %10197 = vst [vmem:[#allocation19_spill] sm:$0xff] %v8104_v19  ;;  %v1714_v24 = vrot.slane %v8079_v61, 2  ;;  %v1715_v28 = vrot.slane %v8082_v3, 2  ;;  %10199 = vst [vmem:[#allocation21_spill] sm:$0xff] %v8113_v37  ;;  %v8120_v49 = vsel %vm424_vm1, %v461_v56, %v463_v6  ;;  %v468_v52 = vrot.slane %v346_v26, 1 }
  0x2a   : > { %6536 = vmatprep.mubr.msk.f32.mxu0 %vm507_vm2, %v8033_v31  ;;  %6736 = vmatprep.mubr.msk.f32.mxu1 %vm507_vm2, %v8036_v32  ;;  %v8123_v50 = vsel %vm1673_vm3, %v1710_v60, %v1712_v7  ;;  %v8130_v51 = vsel %vm424_vm1, %v465_v13, %v466_v14  ;;  %v1717_v59 = vrot.slane %v346_v26, 2  ;;  %v471_v60 = vrot.slane %v8113_v37, 1 }
  0x2b   : > { %10200 = vst [vmem:[#allocation22_spill] sm:$0xff] %v8123_v50  ;;  %v8135_v56 = vsel %vm1673_vm3, %v1714_v24, %v1715_v28  ;;  %v1719_v6 = vrot.slane %v8110_v33, 2  ;;  %v1720_v7 = vrot.slane %v8113_v37, 2  ;;  %v8155_v26 = vsel %vm424_vm1, %v466_v14, %v468_v52  ;;  %v352_v14 = vld [vmem:[%s7856_s30 + $0x100] sm:$0x3]  ;;  %v8172_v52 = vld [vmem:[%s7856_s30 + $0x108] sm:$0xff] }
  0x2c   : > { %10201 = vst [vmem:[#allocation23_spill] sm:$0xff] %v8135_v56  ;;  %v8158_v32 = vsel %vm1673_vm3, %v1715_v28, %v1717_v59  ;;  %10206 = vst [vmem:[#allocation28_spill] sm:$0xff] %v8172_v52  ;;  %v8175_v28 = vld [vmem:[%s7856_s30 + $0x110] sm:$0xff]  ;;  %v478_v58 = vrot.slane %v352_v14, 1  ;;  %v1727_v54 = vrot.slane %v352_v14, 2  ;;  %v480_v47 = vrot.slane %v8172_v52, 1 }
  0x2d   : > { %6537 = vmatmul.mubr.msk.f32.gmra.mrb[10].mxu0 %vm507_vm2, %v8058_v43  ;;  %6737 = vmatmul.mubr.msk.f32.gmra.mrb[10].mxu1 %vm507_vm2, %v8061_v44  ;;  %v8141_v44 = vld [vmem:[%s7856_s30 + $0xf0] sm:$0xff]  ;;  %10204 = vst [vmem:[#allocation26_spill] sm:$0xff] %v8158_v32  ;;  %10207 = vst [vmem:[#allocation29_spill] sm:$0xff] %v8175_v28 }
  0x2e   : > { %6539 = vmatprep.mubr.msk.f32.mxu0 %vm507_vm2, %v8068_v48  ;;  %6739 = vmatprep.mubr.msk.f32.mxu1 %vm507_vm2, %v8073_v55  ;;  %v470_v55 = vrot.slane %v8110_v33, 1  ;;  %10202 = vst [vmem:[#allocation24_spill] sm:$0xff] %v8141_v44  ;;  %v475_v21 = vrot.slane %v8141_v44, 1  ;;  %v1724_v1 = vrot.slane %v8141_v44, 2 }
  0x31   : > { %6540 = vmatmul.mubr.msk.f32.gmra.mrb[12].mxu0 %vm507_vm2, %v8093_v8  ;;  %6740 = vmatmul.mubr.msk.f32.gmra.mrb[12].mxu1 %vm507_vm2, %v8096_v10  ;;  %v349_v10 = vld [vmem:[%s7856_s30 + $0xe8] sm:$0x3] }
  0x32   : > { %6542 = vmatprep.mubr.msk.f32.mxu0 %vm507_vm2, %v8101_v17  ;;  %6742 = vmatprep.mubr.msk.f32.mxu1 %vm507_vm2, %v8104_v19  ;;  %v8144_v19 = vld [vmem:[%s7856_s30 + $0xf8] sm:$0xff]  ;;  %v473_v13 = vrot.slane %v349_v10, 1  ;;  %v1722_v24 = vrot.slane %v349_v10, 2  ;;  %v8166_v10 = vsel %vm1673_vm3, %v1719_v6, %v1720_v7 }
  0x33   : > { %10203 = vst [vmem:[#allocation25_spill] sm:$0xff] %v8144_v19  ;;  %v476_v9 = vrot.slane %v8144_v19, 1  ;;  %10205 = vst [vmem:[#allocation27_spill] sm:$0xff] %v8166_v10 }
  0x34   : > { %v8185_v59 = vsel %vm1673_vm3, %v1720_v7, %v1722_v24  ;;  %v481_v7 = vrot.slane %v8175_v28, 1  ;;  %v1730_v24 = vrot.slane %v8175_v28, 2  ;;  %v485_v28 = vrot.slane %v8203_v41, 1 }
  0x35   : > { %6543 = vmatmul.mubr.msk.f32.gmra.mrb[14].mxu0 %vm507_vm2, %v8120_v49  ;;  %6743 = vmatmul.mubr.msk.f32.gmra.mrb[14].mxu1 %vm507_vm2, %v8123_v50  ;;  %v8163_v50 = vsel %vm424_vm1, %v470_v55, %v471_v60  ;;  %v8182_v55 = vsel %vm424_vm1, %v471_v60, %v473_v13  ;;  %10208 = vst [vmem:[#allocation30_spill] sm:$0xff] %v8185_v59  ;;  %v1729_v13 = vrot.slane %v8172_v52, 2 }
  0x36   : > { %6545 = vmatprep.mubr.msk.f32.mxu0 %vm507_vm2, %v8130_v51  ;;  %6745 = vmatprep.mubr.msk.f32.mxu1 %vm507_vm2, %v8135_v56  ;;  %v1725_v56 = vrot.slane %v8144_v19, 2  ;;  %v8192_v6 = vsel %vm424_vm1, %v475_v21, %v476_v9  ;;  %v8217_v14 = vsel %vm424_vm1, %v476_v9, %v478_v58  ;;  %v1734_v19 = vrot.slane %v8203_v41, 2  ;;  %v358_v58 = vld [vmem:[%s7856_s30 + $0x130] sm:$0x3]  ;;  %v8234_v9 = vld [vmem:[%s7856_s30 + $0x138] sm:$0xff] }
  0x37   : > { %10209 = vst [vmem:[#allocation31_spill] sm:$0xff] %v8192_v6  ;;  %10213 = vst [vmem:[#allocation35_spill] sm:$0xff] %v8217_v14  ;;  %v1737_v41 = vrot.slane %v358_v58, 2 }
  0x38   : > { %v8197_v60 = vsel %vm1673_vm3, %v1724_v1, %v1725_v56  ;;  %v8220_v30 = vsel %vm1673_vm3, %v1725_v56, %v1727_v54  ;;  %10217 = vst [vmem:[#allocation39_spill] sm:$0xff] %v8234_v9  ;;  %v8237_v54 = vld [vmem:[%s7856_s30 + $0x140] sm:$0xff] }
  0x39   : > { %6546 = vmatmul.mubr.msk.f32.gmra.mrb[16].mxu0 %vm507_vm2, %v8155_v26  ;;  %6746 = vmatmul.mubr.msk.f32.gmra.mrb[16].mxu1 %vm507_vm2, %v8158_v32  ;;  %v355_v32 = vld [vmem:[%s7856_s30 + $0x118] sm:$0x3]  ;;  %10210 = vst [vmem:[#allocation32_spill] sm:$0xff] %v8197_v60  ;;  %10214 = vst [vmem:[#allocation36_spill] sm:$0xff] %v8220_v30 }
  0x3a   : > { %6548 = vmatprep.mubr.msk.f32.mxu0 %vm507_vm2, %v8163_v50  ;;  %6748 = vmatprep.mubr.msk.f32.mxu1 %vm507_vm2, %v8166_v10  ;;  %v8206_v10 = vld [vmem:[%s7856_s30 + $0x128] sm:$0xff]  ;;  %v483_v1 = vrot.slane %v355_v32, 1  ;;  %v1732_v21 = vrot.slane %v355_v32, 2  ;;  %v8228_v32 = vsel %vm1673_vm3, %v1729_v13, %v1730_v24  ;;  %10218 = vst [vmem:[#allocation40_spill] sm:$0xff] %v8237_v54 }
  0x3b   : > { %10212 = vst [vmem:[#allocation34_spill] sm:$0xff] %v8206_v10  ;;  %v486_v52 = vrot.slane %v8206_v10, 1  ;;  %10216 = vst [vmem:[#allocation38_spill] sm:$0xff] %v8228_v32 }
  0x3c   : > { %v8247_v56 = vsel %vm1673_vm3, %v1730_v24, %v1732_v21  ;;  %v491_v24 = vrot.slane %v8237_v54, 1  ;;  %v1740_v21 = vrot.slane %v8237_v54, 2 }
  0x3d   : > { %6549 = vmatmul.mubr.msk.f32.gmra.mrb[18].mxu0 %vm507_vm2, %v8182_v55  ;;  %6749 = vmatmul.mubr.msk.f32.gmra.mrb[18].mxu1 %vm507_vm2, %v8185_v59  ;;  %v8225_v59 = vsel %vm424_vm1, %v480_v47, %v481_v7  ;;  %v8244_v47 = vsel %vm424_vm1, %v481_v7, %v483_v1  ;;  %10220 = vst [vmem:[#allocation42_spill] sm:$0xff] %v8247_v56  ;;  %v1739_v1 = vrot.slane %v8234_v9, 2 }
  0x3e   : > { %6551 = vmatprep.mubr.msk.f32.mxu0 %vm507_vm2, %v8192_v6  ;;  %6751 = vmatprep.mubr.msk.f32.mxu1 %vm507_vm2, %v8197_v60  ;;  %10215 = vst [vmem:[#allocation37_spill] sm:$0xff] %v8225_v59  ;;  %v1735_v60 = vrot.slane %v8206_v10, 2  ;;  %10219 = vst [vmem:[#allocation41_spill] sm:$0xff] %v8244_v47  ;;  %v8254_v13 = vsel %vm424_vm1, %v485_v28, %v486_v52  ;;  %v488_v10 = vrot.slane %v358_v58, 1  ;;  %v364_v6 = vld [vmem:[%s7856_s30 + $0x160] sm:$0x3] }
  0x3f   : > { %10221 = vst [vmem:[#allocation43_spill] sm:$0xff] %v8254_v13 }
  0x40   : > { %v8259_v7 = vsel %vm1673_vm3, %v1734_v19, %v1735_v60  ;;  %v8279_v58 = vsel %vm424_vm1, %v486_v52, %v488_v10  ;;  %v8282_v54 = vsel %vm1673_vm3, %v1735_v60, %v1737_v41  ;;  %v8296_v10 = vld [vmem:[%s7856_s30 + $0x168] sm:$0xff]  ;;  %v8299_v41 = vld [vmem:[%s7856_s30 + $0x170] sm:$0xff] }
  0x41   : > { %6552 = vmatmul.mubr.msk.f32.gmra.mrb[20].mxu0 %vm507_vm2, %v8217_v14  ;;  %6752 = vmatmul.mubr.msk.f32.gmra.mrb[20].mxu1 %vm507_vm2, %v8220_v30  ;;  %v490_v14 = vrot.slane %v8234_v9, 1  ;;  %v361_v30 = vld [vmem:[%s7856_s30 + $0x148] sm:$0x3]  ;;  %10222 = vst [vmem:[#allocation44_spill] sm:$0xff] %v8259_v7  ;;  %10225 = vst [vmem:[#allocation47_spill] sm:$0xff] %v8279_v58 }
  0x42   : > { %6554 = vmatprep.mubr.msk.f32.mxu0 %vm507_vm2, %v8225_v59  ;;  %6754 = vmatprep.mubr.msk.f32.mxu1 %vm507_vm2, %v8228_v32  ;;  %v8265_v59 = vld [vmem:[%s7856_s30 + $0x150] sm:$0xff]  ;;  %v8268_v32 = vld [vmem:[%s7856_s30 + $0x158] sm:$0xff]  ;;  %v493_v19 = vrot.slane %v361_v30, 1  ;;  %v1742_v28 = vrot.slane %v361_v30, 2  ;;  %10226 = vst [vmem:[#allocation48_spill] sm:$0xff] %v8282_v54  ;;  %v8290_v30 = vsel %vm1673_vm3, %v1739_v1, %v1740_v21  ;;  %10228 = vst [vmem:[#allocation50_spill] sm:$0xff] %v8296_v10 }
  0x43   : > { %10223 = vst [vmem:[#allocation45_spill] sm:$0xff] %v8265_v59  ;;  %10224 = vst [vmem:[#allocation46_spill] sm:$0xff] %v8268_v32  ;;  %v495_v9 = vrot.slane %v8265_v59, 1  ;;  %v498_v1 = vrot.slane %v364_v6, 1 }
  0x44   : > { %10227 = vst [vmem:[#allocation49_spill] sm:$0xff] %v8290_v30  ;;  %10229 = vst [vmem:[#allocation51_spill] sm:$0xff] %v8299_v41  ;;  %v8306_v52 = vsel %vm424_vm1, %v491_v24, %v493_v19  ;;  %v8309_v60 = vsel %vm1673_vm3, %v1740_v21, %v1742_v28  ;;  %v1749_v21 = vrot.slane %v8296_v10, 2  ;;  %v1750_v19 = vrot.slane %v8299_v41, 2  ;;  %v367_v28 = vld [vmem:[%s7856_s30 + $0x178] sm:$0x3] }
  0x45   : > { %6555 = vmatmul.mubr.msk.f32.gmra.mrb[22].mxu0 %vm507_vm2, %v8244_v47  ;;  %6755 = vmatmul.mubr.msk.f32.gmra.mrb[22].mxu1 %vm507_vm2, %v8247_v56  ;;  %v496_v47 = vrot.slane %v8268_v32, 1  ;;  %v8287_v56 = vsel %vm424_vm1, %v490_v14, %v491_v24  ;;  %10230 = vst [vmem:[#allocation52_spill] sm:$0xff] %v8309_v60  ;;  %v501_v24 = vrot.slane %v8299_v41, 1 }
  0x46   : > { %6557 = vmatprep.mubr.msk.f32.mxu0 %vm507_vm2, %v8254_v13  ;;  %6757 = vmatprep.mubr.msk.f32.mxu1 %vm507_vm2, %v8259_v7  ;;  %v1744_v13 = vrot.slane %v8265_v59, 2  ;;  %v1745_v7 = vrot.slane %v8268_v32, 2  ;;  %v1747_v32 = vrot.slane %v364_v6, 2  ;;  %v500_v59 = vrot.slane %v8296_v10, 1 }
  0x47   : > { %v8316_v14 = vsel %vm424_vm1, %v495_v9, %v496_v47  ;;  %v8335_v6 = vsel %vm424_vm1, %v496_v47, %v498_v1  ;;  %v8344_v10 = vsel %vm1673_vm3, %v1749_v21, %v1750_v19  ;;  %v8375_v47 = vld [vmem:[%s10045_s2 + $0x1c] sm:$0xf]  ;;  %v10245_v21 = vld [vmem:[#allocation34_spill] sm:$0xff] }
  0x48   : > { %10231 = vst [vmem:[#allocation53_spill] sm:$0xff] %v8316_v14  ;;  %v8338_v9 = vsel %vm1673_vm3, %v1745_v7, %v1747_v32  ;;  %v8341_v41 = vsel %vm424_vm1, %v500_v59, %v501_v24  ;;  %10234 = vst [vmem:[#allocation56_spill] sm:$0xff] %v8344_v10  ;;  %v10243_v1 = vld [vmem:[#allocation33_spill] sm:$0xff] }
  0x49   : > { %6558 = vmatmul.mubr.msk.f32.gmra.mrb[24].mxu0 %vm507_vm2, %v8279_v58  ;;  %6758 = vmatmul.mubr.msk.f32.gmra.mrb[24].mxu1 %vm507_vm2, %v8282_v54  ;;  %v8320_v54 = vsel %vm1673_vm3, %v1744_v13, %v1745_v7  ;;  %10233 = vst [vmem:[#allocation55_spill] sm:$0xff] %v8338_v9  ;;  %v503_v13 = vrot.slane %v367_v28, 1  ;;  %v8380_v7 = vld [vmem:[%s10045_s2 + $0xc] sm:$0xf] }
  0x4a   : > { %6560 = vmatprep.mubr.msk.f32.mxu0 %vm507_vm2, %v8287_v56  ;;  %6760 = vmatprep.mubr.msk.f32.mxu1 %vm507_vm2, %v8290_v30  ;;  %10232 = vst [vmem:[#allocation54_spill] sm:$0xff] %v8320_v54  ;;  %v1752_v30 = vrot.slane %v367_v28, 2  ;;  %v10247_v28 = vld [vmem:[#allocation40_spill] sm:$0xff] }
  0x4b   : > { %v8355_v32 = vsel %vm424_vm1, %v501_v24, %v503_v13  ;;  %v10244_v24 = vld [vmem:[#allocation43_spill] sm:$0xff]  ;;  %v10248_v13 = vld [vmem:[#allocation45_spill] sm:$0xff] }
  0x4c   : > { %v8358_v59 = vsel %vm1673_vm3, %v1750_v19, %v1752_v30  ;;  %v10242_v30 = vld [vmem:[#allocation41_spill] sm:$0xff]  ;;  %v10246_v19 = vld [vmem:[#allocation39_spill] sm:$0xff] }
  0x4d   : > { %6561 = vmatmul.mubr.msk.f32.gmra.mrb[26].mxu0 %vm507_vm2, %v8306_v52  ;;  %6761 = vmatmul.mubr.msk.f32.gmra.mrb[26].mxu1 %vm507_vm2, %v8309_v60  ;;  %10235 = vst [vmem:[#allocation57_spill] sm:$0xff] %v8358_v59  ;;  %v8526_v60 = vld [vmem:[%s10045_s2 + $0x24] sm:$0xf] }
  0x4e   : > { %6563 = vmatprep.mubr.msk.f32.mxu0 %vm507_vm2, %v8316_v14  ;;  %6763 = vmatprep.mubr.msk.f32.mxu1 %vm507_vm2, %v8320_v54  ;;  %v8521_v54 = vld [vmem:[%s10045_s2 + $0x34] sm:$0xf] }
  0x51   : > { %6564 = vmatmul.mubr.msk.f32.gmra.mrb[28].mxu0 %vm507_vm2, %v8335_v6  ;;  %6764 = vmatmul.mubr.msk.f32.gmra.mrb[28].mxu1 %vm507_vm2, %v8338_v9  ;;  %v10251_v9 = vld [vmem:[#allocation51_spill] sm:$0xff] }
  0x52   : > { %6566 = vmatprep.mubr.msk.f32.mxu0 %vm507_vm2, %v8341_v41  ;;  %6766 = vmatprep.mubr.msk.f32.mxu1 %vm507_vm2, %v8344_v10  ;;  %v10250_v10 = vld [vmem:[#allocation50_spill] sm:$0xff] }
  0x55   : > { %6567 = vmatmul.mubr.msk.f32.gmra.mrb[30].mxu0 %vm507_vm2, %v8355_v32  ;;  %6767 = vmatmul.mubr.msk.f32.gmra.mrb[30].mxu1 %vm507_vm2, %v8358_v59  ;;  %v10249_v59 = vld [vmem:[#allocation46_spill] sm:$0xff] }
  0x56   : > { %6571 = vmatprep.mubr.msk.f32.mxu0 %vm507_vm2, %v7859_v4  ;;  %6771 = vmatprep.mubr.msk.f32.mxu1 %vm507_vm2, %v7879_v18  ;;  %v10236_v4 = vld [vmem:[#allocation31_spill] sm:$0xff] }
  0x57   : > { %v10238_v18 = vld [vmem:[#allocation35_spill] sm:$0xff] }
  0x59   : > { %6572 = vmatmul.mubr.msk.f32.vlgmr.msra.gmra.mrb[0].mxu0 %vm507_vm2, %v7862_v5  ;;  %6772 = vmatmul.mubr.msk.f32.vlgmr.msra.gmra.mrb[0].mxu1 %vm507_vm2, %v7895_v25  ;;  %v10237_v5 = vld [vmem:[#allocation25_spill] sm:$0xff]  ;;  %v10239_v25 = vld [vmem:[#allocation28_spill] sm:$0xff] }
  0x5a   : > { %6820 = vmatpush3.msk.msra.mxu1 %vm572_vm0, %v7918_v35  ;;  %6574 = vmatprep.mubr.msk.f32.mxu0 %vm507_vm2, %v7870_v11  ;;  %v10240_v35 = vld [vmem:[#allocation37_spill] sm:$0xff] }
  0x5b   : > { %6774 = vmatprep.mubr.msk.f32.mxu1 %vm507_vm2, %v7899_v27  ;;  %6620 = vmatpush3.msk.msra.mxu0 %vm572_vm0, %v8046_v39  ;;  %v10241_v39 = vld [vmem:[#allocation29_spill] sm:$0xff] }
  0x5c   : > { %6869 = vmatprep.subr.msk.mxu1 %vm572_vm0, %v8375_v47  ;;  %6669 = vmatprep.subr.msk.mxu0 %vm572_vm0, %v8380_v7 }
  0x5d   : > { %6575 = vmatmul.mubr.msk.f32.gmra.mrb[2].mxu0 %vm507_vm2, %v7873_v12  ;;  %6775 = vmatmul.mubr.msk.f32.gmra.mrb[2].mxu1 %vm507_vm2, %v7924_v36 }
  0x5e   : > { %6577 = vmatprep.mubr.msk.f32.mxu0 %vm507_vm2, %v7885_v22  ;;  %6777 = vmatprep.mubr.msk.f32.mxu1 %vm507_vm2, %v7935_v42 }
  0x61   : > { %6578 = vmatmul.mubr.msk.f32.gmra.mrb[4].mxu0 %vm507_vm2, %v7888_v23  ;;  %6778 = vmatmul.mubr.msk.f32.gmra.mrb[4].mxu1 %vm507_vm2, %v7962_v53 }
  0x62   : > { %6580 = vmatprep.mubr.msk.f32.mxu0 %vm507_vm2, %v7902_v29  ;;  %6780 = vmatprep.mubr.msk.f32.mxu1 %vm507_vm2, %v7970_v57 }
  0x65   : > { %6581 = vmatmul.mubr.msk.f32.gmra.mrb[6].mxu0 %vm507_vm2, %v7913_v34  ;;  %6781 = vmatmul.mubr.msk.f32.gmra.mrb[6].mxu1 %vm507_vm2, %v7989_v0 }
  0x66   : > { %6583 = vmatprep.mubr.msk.f32.mxu0 %vm507_vm2, %v7939_v45  ;;  %6783 = vmatprep.mubr.msk.f32.mxu1 %vm507_vm2, %v7999_v2 }
  0x69   : > { %6584 = vmatmul.mubr.msk.f32.gmra.mrb[8].mxu0 %vm507_vm2, %v7942_v46  ;;  %6784 = vmatmul.mubr.msk.f32.gmra.mrb[8].mxu1 %vm507_vm2, %v8024_v20 }
  0x6a   : > { %6586 = vmatprep.mubr.msk.f32.mxu0 %vm507_vm2, %v7979_v62  ;;  %6786 = vmatprep.mubr.msk.f32.mxu1 %vm507_vm2, %v8033_v31 }
  0x6d   : > { %6587 = vmatmul.mubr.msk.f32.gmra.mrb[10].mxu0 %vm507_vm2, %v7982_v63  ;;  %6787 = vmatmul.mubr.msk.f32.gmra.mrb[10].mxu1 %vm507_vm2, %v8058_v43 }
  0x6e   : > { %6589 = vmatprep.mubr.msk.f32.mxu0 %vm507_vm2, %v8010_v15  ;;  %6789 = vmatprep.mubr.msk.f32.mxu1 %vm507_vm2, %v8068_v48 }
  0x71   : > { %6590 = vmatmul.mubr.msk.f32.gmra.mrb[12].mxu0 %vm507_vm2, %v8013_v16  ;;  %6790 = vmatmul.mubr.msk.f32.gmra.mrb[12].mxu1 %vm507_vm2, %v8093_v8 }
  0x72   : > { %6592 = vmatprep.mubr.msk.f32.mxu0 %vm507_vm2, %v8041_v38  ;;  %6792 = vmatprep.mubr.msk.f32.mxu1 %vm507_vm2, %v8101_v17 }
  0x75   : > { %6593 = vmatmul.mubr.msk.f32.gmra.mrb[14].mxu0 %vm507_vm2, %v8049_v40  ;;  %6793 = vmatmul.mubr.msk.f32.gmra.mrb[14].mxu1 %vm507_vm2, %v8120_v49 }
  0x76   : > { %6595 = vmatprep.mubr.msk.f32.mxu0 %vm507_vm2, %v8079_v61  ;;  %6795 = vmatprep.mubr.msk.f32.mxu1 %vm507_vm2, %v8130_v51 }
  0x79   : > { %6596 = vmatmul.mubr.msk.f32.gmra.mrb[16].mxu0 %vm507_vm2, %v8082_v3  ;;  %6796 = vmatmul.mubr.msk.f32.gmra.mrb[16].mxu1 %vm507_vm2, %v8155_v26 }
  0x7a   : > { %6598 = vmatprep.mubr.msk.f32.mxu0 %vm507_vm2, %v8110_v33  ;;  %6798 = vmatprep.mubr.msk.f32.mxu1 %vm507_vm2, %v8163_v50 }
  0x7d   : > { %6599 = vmatmul.mubr.msk.f32.gmra.mrb[18].mxu0 %vm507_vm2, %v8113_v37  ;;  %6799 = vmatmul.mubr.msk.f32.gmra.mrb[18].mxu1 %vm507_vm2, %v8182_v55 }
  0x7e   : > { %6601 = vmatprep.mubr.msk.f32.mxu0 %vm507_vm2, %v8141_v44  ;;  %6801 = vmatprep.mubr.msk.f32.mxu1 %vm507_vm2, %v10236_v4 }
  0x81   : > { %6602 = vmatmul.mubr.msk.f32.gmra.mrb[20].mxu0 %vm507_vm2, %v10237_v5  ;;  %6802 = vmatmul.mubr.msk.f32.gmra.mrb[20].mxu1 %vm507_vm2, %v10238_v18 }
  0x82   : > { %6604 = vmatprep.mubr.msk.f32.mxu0 %vm507_vm2, %v10239_v25  ;;  %6804 = vmatprep.mubr.msk.f32.mxu1 %vm507_vm2, %v10240_v35 }
  0x85   : > { %6605 = vmatmul.mubr.msk.f32.gmra.mrb[22].mxu0 %vm507_vm2, %v10241_v39  ;;  %6805 = vmatmul.mubr.msk.f32.gmra.mrb[22].mxu1 %vm507_vm2, %v10242_v30 }
  0x86   : > { %6607 = vmatprep.mubr.msk.f32.mxu0 %vm507_vm2, %v10243_v1  ;;  %6807 = vmatprep.mubr.msk.f32.mxu1 %vm507_vm2, %v10244_v24 }
  0x89   : > { %6608 = vmatmul.mubr.msk.f32.gmra.mrb[24].mxu0 %vm507_vm2, %v10245_v21  ;;  %6808 = vmatmul.mubr.msk.f32.gmra.mrb[24].mxu1 %vm507_vm2, %v8279_v58 }
  0x8a   : > { %6610 = vmatprep.mubr.msk.f32.mxu0 %vm507_vm2, %v10246_v19  ;;  %6810 = vmatprep.mubr.msk.f32.mxu1 %vm507_vm2, %v8287_v56 }
  0x8d   : > { %6611 = vmatmul.mubr.msk.f32.gmra.mrb[26].mxu0 %vm507_vm2, %v10247_v28  ;;  %6811 = vmatmul.mubr.msk.f32.gmra.mrb[26].mxu1 %vm507_vm2, %v8306_v52 }
  0x8e   : > { %6613 = vmatprep.mubr.msk.f32.mxu0 %vm507_vm2, %v10248_v13  ;;  %6813 = vmatprep.mubr.msk.f32.mxu1 %vm507_vm2, %v8316_v14 }
  0x91   : > { %6614 = vmatmul.mubr.msk.f32.gmra.mrb[28].mxu0 %vm507_vm2, %v10249_v59  ;;  %6814 = vmatmul.mubr.msk.f32.gmra.mrb[28].mxu1 %vm507_vm2, %v8335_v6 }
  0x92   : > { %6616 = vmatprep.mubr.msk.f32.mxu0 %vm507_vm2, %v10250_v10  ;;  %6816 = vmatprep.mubr.msk.f32.mxu1 %vm507_vm2, %v8341_v41 }
  0x95   : > { %6617 = vmatmul.mubr.msk.f32.gmra.mrb[30].mxu0 %vm507_vm2, %v10251_v9  ;;  %6817 = vmatmul.mubr.msk.f32.gmra.mrb[30].mxu1 %vm507_vm2, %v8355_v32 }
  0x96   : > { %6621 = vmatprep.mubr.msk.f32.mxu0 %vm507_vm2, %v7870_v11  ;;  %6821 = vmatprep.mubr.msk.f32.mxu1 %vm507_vm2, %v7899_v27  ;;  %v8636_v11 = vld [vmem:[%s8629_s24] sm:$0xff] }
  0x97   : > { %10252 = vst [vmem:[#allocation31_spill] sm:$0xff] %v8636_v11 }
  0x99   : > { %6622 = vmatmul.mubr.msk.f32.vlgmr.msra.gmra.mrb[0].mxu0 %vm507_vm2, %v7873_v12  ;;  %6822 = vmatmul.mubr.msk.f32.vlgmr.msra.gmra.mrb[0].mxu1 %vm507_vm2, %v7924_v36  ;;  %v8639_v12 = vld [vmem:[%s8629_s24 + $0x8] sm:$0xff] }
  0x9a   : > { %6870 = vmatpush3.msk.msra.mxu1 %vm572_vm0, %v8375_v47  ;;  %6624 = vmatprep.mubr.msk.f32.mxu0 %vm507_vm2, %v7885_v22  ;;  %10253 = vst [vmem:[#allocation35_spill] sm:$0xff] %v8639_v12  ;;  %v1362_v22 = vrot.slane %v8636_v11, 1  ;;  %v8697_v47 = vld [vmem:[%s10045_s2 + $0x20] sm:$0xf] }
  0x9b   : > { %6824 = vmatprep.mubr.msk.f32.mxu1 %vm507_vm2, %v7935_v42  ;;  %6670 = vmatpush3.msk.msra.mxu0 %vm572_vm0, %v8380_v7  ;;  %v10256_v7 = vld [vmem:[#allocation4_spill] sm:$0xff] }
  0x9c   : > { %7119 = vmatprep.subr.msk.mxu1 %vm572_vm0, %v8521_v54  ;;  %6919 = vmatprep.subr.msk.mxu0 %vm572_vm0, %v8526_v60 }
  0x9d   : > { %6625 = vmatmul.mubr.msk.f32.gmra.mrb[2].mxu0 %vm507_vm2, %v7888_v23  ;;  %6825 = vmatmul.mubr.msk.f32.gmra.mrb[2].mxu1 %vm507_vm2, %v7962_v53  ;;  %v1363_v23 = vrot.slane %v8639_v12, 1 }
  0x9e   : > { %6627 = vmatprep.mubr.msk.f32.mxu0 %vm507_vm2, %v7902_v29  ;;  %6827 = vmatprep.mubr.msk.f32.mxu1 %vm507_vm2, %v7970_v57  ;;  %v8652_v29 = vld [vmem:[%s8629_s24 + $0x10] sm:$0x3] }
  0xa1   : > { %6628 = vmatmul.mubr.msk.f32.gmra.mrb[4].mxu0 %vm507_vm2, %v7913_v34  ;;  %6828 = vmatmul.mubr.msk.f32.gmra.mrb[4].mxu1 %vm507_vm2, %v7989_v0  ;;  %v1365_v34 = vrot.slane %v8652_v29, 1 }
  0xa2   : > { %6630 = vmatprep.mubr.msk.f32.mxu0 %vm507_vm2, %v7939_v45  ;;  %6830 = vmatprep.mubr.msk.f32.mxu1 %vm507_vm2, %v7999_v2  ;;  %v8664_v45 = vsel %vm424_vm1, %v1362_v22, %v1363_v23  ;;  %v10257_v22 = vld [vmem:[#allocation5_spill] sm:$0xff] }
  0xa5   : > { %6631 = vmatmul.mubr.msk.f32.gmra.mrb[6].mxu0 %vm507_vm2, %v7942_v46  ;;  %6831 = vmatmul.mubr.msk.f32.gmra.mrb[6].mxu1 %vm507_vm2, %v8024_v20  ;;  %v8675_v46 = vsel %vm424_vm1, %v1363_v23, %v1365_v34  ;;  %v10260_v23 = vld [vmem:[#allocation8_spill] sm:$0xff]  ;;  %v10261_v34 = vld [vmem:[#allocation10_spill] sm:$0xff] }
  0xa6   : > { %6633 = vmatprep.mubr.msk.f32.mxu0 %vm507_vm2, %v7979_v62  ;;  %6833 = vmatprep.mubr.msk.f32.mxu1 %vm507_vm2, %v8033_v31  ;;  %v10254_v62 = vld [vmem:[#allocation2_spill] sm:$0xff] }
  0xa9   : > { %6634 = vmatmul.mubr.msk.f32.gmra.mrb[8].mxu0 %vm507_vm2, %v7982_v63  ;;  %6834 = vmatmul.mubr.msk.f32.gmra.mrb[8].mxu1 %vm507_vm2, %v8058_v43  ;;  %v10255_v63 = vld [vmem:[#allocation3_spill] sm:$0xff] }
  0xaa   : > { %6636 = vmatprep.mubr.msk.f32.mxu0 %vm507_vm2, %v8010_v15  ;;  %6836 = vmatprep.mubr.msk.f32.mxu1 %vm507_vm2, %v8068_v48  ;;  %v10280_v15 = vld [vmem:[#allocation54_spill] sm:$0xff] }
  0xad   : > { %6637 = vmatmul.mubr.msk.f32.gmra.mrb[10].mxu0 %vm507_vm2, %v8013_v16  ;;  %6837 = vmatmul.mubr.msk.f32.gmra.mrb[10].mxu1 %vm507_vm2, %v8093_v8  ;;  %v8692_v16 = vld [vmem:[%s10045_s2 + $0x30] sm:$0xf] }
  0xae   : > { %6639 = vmatprep.mubr.msk.f32.mxu0 %vm507_vm2, %v8041_v38  ;;  %6839 = vmatprep.mubr.msk.f32.mxu1 %vm507_vm2, %v8101_v17  ;;  %v10279_v38 = vld [vmem:[#allocation52_spill] sm:$0xff] }
  0xb1   : > { %6640 = vmatmul.mubr.msk.f32.gmra.mrb[12].mxu0 %vm507_vm2, %v8049_v40  ;;  %6840 = vmatmul.mubr.msk.f32.gmra.mrb[12].mxu1 %vm507_vm2, %v8120_v49  ;;  %v10278_v40 = vld [vmem:[#allocation49_spill] sm:$0xff] }
  0xb2   : > { %6642 = vmatprep.mubr.msk.f32.mxu0 %vm507_vm2, %v8079_v61  ;;  %6842 = vmatprep.mubr.msk.f32.mxu1 %vm507_vm2, %v8130_v51  ;;  %v10277_v61 = vld [vmem:[#allocation48_spill] sm:$0xff] }
  0xb5   : > { %6643 = vmatmul.mubr.msk.f32.gmra.mrb[14].mxu0 %vm507_vm2, %v8082_v3  ;;  %6843 = vmatmul.mubr.msk.f32.gmra.mrb[14].mxu1 %vm507_vm2, %v8155_v26  ;;  %v10276_v3 = vld [vmem:[#allocation44_spill] sm:$0xff] }
  0xb6   : > { %6645 = vmatprep.mubr.msk.f32.mxu0 %vm507_vm2, %v8110_v33  ;;  %6845 = vmatprep.mubr.msk.f32.mxu1 %vm507_vm2, %v8163_v50  ;;  %v10275_v33 = vld [vmem:[#allocation42_spill] sm:$0xff] }
  0xb9   : > { %6646 = vmatmul.mubr.msk.f32.gmra.mrb[16].mxu0 %vm507_vm2, %v8113_v37  ;;  %6846 = vmatmul.mubr.msk.f32.gmra.mrb[16].mxu1 %vm507_vm2, %v8182_v55  ;;  %v10274_v37 = vld [vmem:[#allocation38_spill] sm:$0xff] }
  0xba   : > { %6648 = vmatprep.mubr.msk.f32.mxu0 %vm507_vm2, %v8141_v44  ;;  %6848 = vmatprep.mubr.msk.f32.mxu1 %vm507_vm2, %v10236_v4  ;;  %v10273_v44 = vld [vmem:[#allocation36_spill] sm:$0xff] }
  0xbd   : > { %6649 = vmatmul.mubr.msk.f32.gmra.mrb[18].mxu0 %vm507_vm2, %v10237_v5  ;;  %6849 = vmatmul.mubr.msk.f32.gmra.mrb[18].mxu1 %vm507_vm2, %v10238_v18  ;;  %v10272_v5 = vld [vmem:[#allocation32_spill] sm:$0xff] }
  0xbe   : > { %6651 = vmatprep.mubr.msk.f32.mxu0 %vm507_vm2, %v10239_v25  ;;  %6851 = vmatprep.mubr.msk.f32.mxu1 %vm507_vm2, %v10240_v35  ;;  %v10271_v25 = vld [vmem:[#allocation30_spill] sm:$0xff] }
  0xc1   : > { %6652 = vmatmul.mubr.msk.f32.gmra.mrb[20].mxu0 %vm507_vm2, %v10241_v39  ;;  %6852 = vmatmul.mubr.msk.f32.gmra.mrb[20].mxu1 %vm507_vm2, %v10242_v30  ;;  %v10270_v39 = vld [vmem:[#allocation27_spill] sm:$0xff] }
  0xc2   : > { %6654 = vmatprep.mubr.msk.f32.mxu0 %vm507_vm2, %v10243_v1  ;;  %6854 = vmatprep.mubr.msk.f32.mxu1 %vm507_vm2, %v10244_v24  ;;  %v10269_v1 = vld [vmem:[#allocation26_spill] sm:$0xff] }
  0xc5   : > { %6655 = vmatmul.mubr.msk.f32.gmra.mrb[22].mxu0 %vm507_vm2, %v10245_v21  ;;  %6855 = vmatmul.mubr.msk.f32.gmra.mrb[22].mxu1 %vm507_vm2, %v8279_v58  ;;  %v10268_v21 = vld [vmem:[#allocation23_spill] sm:$0xff] }
  0xc6   : > { %6657 = vmatprep.mubr.msk.f32.mxu0 %vm507_vm2, %v10246_v19  ;;  %6857 = vmatprep.mubr.msk.f32.mxu1 %vm507_vm2, %v8287_v56  ;;  %v10267_v19 = vld [vmem:[#allocation22_spill] sm:$0xff] }
  0xc9   : > { %6658 = vmatmul.mubr.msk.f32.gmra.mrb[24].mxu0 %vm507_vm2, %v10247_v28  ;;  %6858 = vmatmul.mubr.msk.f32.gmra.mrb[24].mxu1 %vm507_vm2, %v8306_v52  ;;  %v10266_v28 = vld [vmem:[#allocation19_spill] sm:$0xff] }
  0xca   : > { %6660 = vmatprep.mubr.msk.f32.mxu0 %vm507_vm2, %v10248_v13  ;;  %6860 = vmatprep.mubr.msk.f32.mxu1 %vm507_vm2, %v8316_v14  ;;  %v10265_v13 = vld [vmem:[#allocation18_spill] sm:$0xff] }
  0xcd   : > { %6661 = vmatmul.mubr.msk.f32.gmra.mrb[26].mxu0 %vm507_vm2, %v10249_v59  ;;  %6861 = vmatmul.mubr.msk.f32.gmra.mrb[26].mxu1 %vm507_vm2, %v8335_v6  ;;  %v10264_v59 = vld [vmem:[#allocation15_spill] sm:$0xff] }
  0xce   : > { %6663 = vmatprep.mubr.msk.f32.mxu0 %vm507_vm2, %v10250_v10  ;;  %6863 = vmatprep.mubr.msk.f32.mxu1 %vm507_vm2, %v8341_v41  ;;  %v10263_v10 = vld [vmem:[#allocation14_spill] sm:$0xff] }
  0xd1   : > { %6664 = vmatmul.mubr.msk.f32.gmra.mrb[28].mxu0 %vm507_vm2, %v10251_v9  ;;  %6864 = vmatmul.mubr.msk.f32.gmra.mrb[28].mxu1 %vm507_vm2, %v8355_v32  ;;  %v10262_v9 = vld [vmem:[#allocation11_spill] sm:$0xff] }
  0xd2   : > { %6666 = vmatprep.mubr.msk.f32.mxu0 %vm507_vm2, %v8636_v11  ;;  %6866 = vmatprep.mubr.msk.f32.mxu1 %vm507_vm2, %v8664_v45 }
  0xd5   : > { %6667 = vmatmul.mubr.msk.f32.gmra.mrb[30].mxu0 %vm507_vm2, %v8639_v12  ;;  %6867 = vmatmul.mubr.msk.f32.gmra.mrb[30].mxu1 %vm507_vm2, %v8675_v46 }
  0xd6   : > { %6671 = vmatprep.mubr.msk.f32.mxu0 %vm507_vm2, %v7899_v27  ;;  %6871 = vmatprep.mubr.msk.f32.mxu1 %vm507_vm2, %v10254_v62 }
  0xd9   : > { %6672 = vmatmul.mubr.msk.f32.vlgmr.msra.gmra.mrb[0].mxu0 %vm507_vm2, %v7924_v36  ;;  %6872 = vmatmul.mubr.msk.f32.vlgmr.msra.gmra.mrb[0].mxu1 %vm507_vm2, %v10255_v63 }
  0xda   : > { %7120 = vmatpush3.msk.msra.mxu1 %vm572_vm0, %v8521_v54  ;;  %6674 = vmatprep.mubr.msk.f32.mxu0 %vm507_vm2, %v7935_v42  ;;  %v10258_v54 = vld [vmem:[#allocation6_spill] sm:$0xff] }
  0xdb   : > { %6874 = vmatprep.mubr.msk.f32.mxu1 %vm507_vm2, %v10256_v7  ;;  %6920 = vmatpush3.msk.msra.mxu0 %vm572_vm0, %v8526_v60  ;;  %v10259_v60 = vld [vmem:[#allocation7_spill] sm:$0xff] }
  0xdc   : > { %7169 = vmatprep.subr.msk.mxu1 %vm572_vm0, %v8692_v16  ;;  %6969 = vmatprep.subr.msk.mxu0 %vm572_vm0, %v8697_v47 }
  0xdd   : > { %6675 = vmatmul.mubr.msk.f32.gmra.mrb[2].mxu0 %vm507_vm2, %v7962_v53  ;;  %6875 = vmatmul.mubr.msk.f32.gmra.mrb[2].mxu1 %vm507_vm2, %v10257_v22 }
  0xde   : > { %6677 = vmatprep.mubr.msk.f32.mxu0 %vm507_vm2, %v7970_v57  ;;  %6877 = vmatprep.mubr.msk.f32.mxu1 %vm507_vm2, %v10258_v54 }
  0xe1   : > { %6678 = vmatmul.mubr.msk.f32.gmra.mrb[4].mxu0 %vm507_vm2, %v7989_v0  ;;  %6878 = vmatmul.mubr.msk.f32.gmra.mrb[4].mxu1 %vm507_vm2, %v10259_v60 }
  0xe2   : > { %6680 = vmatprep.mubr.msk.f32.mxu0 %vm507_vm2, %v7999_v2  ;;  %6880 = vmatprep.mubr.msk.f32.mxu1 %vm507_vm2, %v10260_v23 }
  0xe5   : > { %6681 = vmatmul.mubr.msk.f32.gmra.mrb[6].mxu0 %vm507_vm2, %v8024_v20  ;;  %6881 = vmatmul.mubr.msk.f32.gmra.mrb[6].mxu1 %vm507_vm2, %v10261_v34 }
  0xe6   : > { %6683 = vmatprep.mubr.msk.f32.mxu0 %vm507_vm2, %v8033_v31  ;;  %6883 = vmatprep.mubr.msk.f32.mxu1 %vm507_vm2, %v10262_v9 }
  0xe9   : > { %6684 = vmatmul.mubr.msk.f32.gmra.mrb[8].mxu0 %vm507_vm2, %v8058_v43  ;;  %6884 = vmatmul.mubr.msk.f32.gmra.mrb[8].mxu1 %vm507_vm2, %v10263_v10 }
  0xea   : > { %6686 = vmatprep.mubr.msk.f32.mxu0 %vm507_vm2, %v8068_v48  ;;  %6886 = vmatprep.mubr.msk.f32.mxu1 %vm507_vm2, %v10264_v59 }
  0xed   : > { %6687 = vmatmul.mubr.msk.f32.gmra.mrb[10].mxu0 %vm507_vm2, %v8093_v8  ;;  %6887 = vmatmul.mubr.msk.f32.gmra.mrb[10].mxu1 %vm507_vm2, %v10265_v13 }
  0xee   : > { %6689 = vmatprep.mubr.msk.f32.mxu0 %vm507_vm2, %v8101_v17  ;;  %6889 = vmatprep.mubr.msk.f32.mxu1 %vm507_vm2, %v10266_v28 }
  0xf1   : > { %6690 = vmatmul.mubr.msk.f32.gmra.mrb[12].mxu0 %vm507_vm2, %v8120_v49  ;;  %6890 = vmatmul.mubr.msk.f32.gmra.mrb[12].mxu1 %vm507_vm2, %v10267_v19 }
  0xf2   : > { %6692 = vmatprep.mubr.msk.f32.mxu0 %vm507_vm2, %v8130_v51  ;;  %6892 = vmatprep.mubr.msk.f32.mxu1 %vm507_vm2, %v10268_v21 }
  0xf5   : > { %6693 = vmatmul.mubr.msk.f32.gmra.mrb[14].mxu0 %vm507_vm2, %v8155_v26  ;;  %6893 = vmatmul.mubr.msk.f32.gmra.mrb[14].mxu1 %vm507_vm2, %v10269_v1 }
  0xf6   : > { %6695 = vmatprep.mubr.msk.f32.mxu0 %vm507_vm2, %v8163_v50  ;;  %6895 = vmatprep.mubr.msk.f32.mxu1 %vm507_vm2, %v10270_v39 }
  0xf9   : > { %6696 = vmatmul.mubr.msk.f32.gmra.mrb[16].mxu0 %vm507_vm2, %v8182_v55  ;;  %6896 = vmatmul.mubr.msk.f32.gmra.mrb[16].mxu1 %vm507_vm2, %v10271_v25 }
  0xfa   : > { %6698 = vmatprep.mubr.msk.f32.mxu0 %vm507_vm2, %v10236_v4  ;;  %6898 = vmatprep.mubr.msk.f32.mxu1 %vm507_vm2, %v10272_v5 }
  0xfd   : > { %6699 = vmatmul.mubr.msk.f32.gmra.mrb[18].mxu0 %vm507_vm2, %v10238_v18  ;;  %6899 = vmatmul.mubr.msk.f32.gmra.mrb[18].mxu1 %vm507_vm2, %v10273_v44 }
  0xfe   : > { %6701 = vmatprep.mubr.msk.f32.mxu0 %vm507_vm2, %v10240_v35  ;;  %6901 = vmatprep.mubr.msk.f32.mxu1 %vm507_vm2, %v10274_v37 }
 0x101   : > { %6702 = vmatmul.mubr.msk.f32.gmra.mrb[20].mxu0 %vm507_vm2, %v10242_v30  ;;  %6902 = vmatmul.mubr.msk.f32.gmra.mrb[20].mxu1 %vm507_vm2, %v10275_v33 }
 0x102   : > { %6704 = vmatprep.mubr.msk.f32.mxu0 %vm507_vm2, %v10244_v24  ;;  %6904 = vmatprep.mubr.msk.f32.mxu1 %vm507_vm2, %v10276_v3 }
 0x105   : > { %6705 = vmatmul.mubr.msk.f32.gmra.mrb[22].mxu0 %vm507_vm2, %v8279_v58  ;;  %6905 = vmatmul.mubr.msk.f32.gmra.mrb[22].mxu1 %vm507_vm2, %v10277_v61  ;;  %v2538_v61 = vrot.slane %v8636_v11, 2  ;;  %v2539_v58 = vrot.slane %v8639_v12, 2  ;;  %v10284_v12 = vld [vmem:[#allocation57_spill] sm:$0xff] }
 0x106   : > { %6707 = vmatprep.mubr.msk.f32.mxu0 %vm507_vm2, %v8287_v56  ;;  %6907 = vmatprep.mubr.msk.f32.mxu1 %vm507_vm2, %v10278_v40  ;;  %v10281_v40 = vld [vmem:[#allocation55_spill] sm:$0xff] }
 0x109   : > { %6708 = vmatmul.mubr.msk.f32.gmra.mrb[24].mxu0 %vm507_vm2, %v8306_v52  ;;  %6908 = vmatmul.mubr.msk.f32.gmra.mrb[24].mxu1 %vm507_vm2, %v10279_v38  ;;  %v10282_v38 = vld [vmem:[#allocation56_spill] sm:$0xff] }
 0x10a   : > { %6710 = vmatprep.mubr.msk.f32.mxu0 %vm507_vm2, %v8316_v14  ;;  %6910 = vmatprep.mubr.msk.f32.mxu1 %vm507_vm2, %v10280_v15  ;;  %v2541_v14 = vrot.slane %v8652_v29, 2  ;;  %v8819_v15 = vsel %vm1673_vm3, %v2538_v61, %v2539_v58  ;;  %v8847_v61 = vld [vmem:[%s10045_s2 + $0x38] sm:$0xf]  ;;  %v10287_v29 = vld [vmem:[#allocation48_spill] sm:$0xff] }
 0x10b   : > { %10283 = vst [vmem:[#allocation37_spill] sm:$0xff] %v8819_v15 }
 0x10c   : > { %v8830_v11 = vsel %vm1673_vm3, %v2539_v58, %v2541_v14  ;;  %v8852_v58 = vld [vmem:[%s10045_s2 + $0x28] sm:$0xf] }
 0x10d   : > { %6711 = vmatmul.mubr.msk.f32.gmra.mrb[26].mxu0 %vm507_vm2, %v8335_v6  ;;  %6911 = vmatmul.mubr.msk.f32.gmra.mrb[26].mxu1 %vm507_vm2, %v10281_v40  ;;  %10285 = vst [vmem:[#allocation41_spill] sm:$0xff] %v8830_v11  ;;  %v10286_v14 = vld [vmem:[#allocation47_spill] sm:$0xff] }
 0x10e   : > { %6713 = vmatprep.mubr.msk.f32.mxu0 %vm507_vm2, %v8341_v41  ;;  %6913 = vmatprep.mubr.msk.f32.mxu1 %vm507_vm2, %v10282_v38 }
 0x111   : > { %6714 = vmatmul.mubr.msk.f32.gmra.mrb[28].mxu0 %vm507_vm2, %v8355_v32  ;;  %6914 = vmatmul.mubr.msk.f32.gmra.mrb[28].mxu1 %vm507_vm2, %v10284_v12 }
 0x112   : > { %6716 = vmatprep.mubr.msk.f32.mxu0 %vm507_vm2, %v8664_v45  ;;  %6916 = vmatprep.mubr.msk.f32.mxu1 %vm507_vm2, %v8819_v15 }
 0x115   : > { %6717 = vmatmul.mubr.msk.f32.gmra.mrb[30].mxu0 %vm507_vm2, %v8675_v46  ;;  %6917 = vmatmul.mubr.msk.f32.gmra.mrb[30].mxu1 %vm507_vm2, %v8830_v11 }
 0x116   : > { %6921 = vmatprep.mubr.msk.f32.mxu0 %vm507_vm2, %v7899_v27  ;;  %7121 = vmatprep.mubr.msk.f32.mxu1 %vm507_vm2, %v10254_v62  ;;  %v10288_v62 = vld [vmem:[#allocation49_spill] sm:$0xff] }
 0x119   : > { %6922 = vmatmul.mubr.msk.f32.vlgmr.msra.gmra.mrb[32].mxu0 %vm507_vm2, %v7924_v36  ;;  %7122 = vmatmul.mubr.msk.f32.vlgmr.msra.gmra.mrb[32].mxu1 %vm507_vm2, %v10255_v63  ;;  %v10289_v63 = vld [vmem:[#allocation52_spill] sm:$0xff] }
 0x11a   : > { %7170 = vmatpush3.msk.msra.mxu1 %vm572_vm0, %v8692_v16  ;;  %6924 = vmatprep.mubr.msk.f32.mxu0 %vm507_vm2, %v7935_v42  ;;  %v10290_v16 = vld [vmem:[#allocation53_spill] sm:$0xff] }
 0x11b   : > { %7124 = vmatprep.mubr.msk.f32.mxu1 %vm507_vm2, %v10256_v7  ;;  %6970 = vmatpush3.msk.msra.mxu0 %vm572_vm0, %v8697_v47  ;;  %v10291_v47 = vld [vmem:[#allocation54_spill] sm:$0xff] }
 0x11c   : > { %7219 = vmatprep.subr.msk.mxu1 %vm572_vm0, %v8847_v61  ;;  %7019 = vmatprep.subr.msk.mxu0 %vm572_vm0, %v8852_v58 }
 0x11d   : > { %6925 = vmatmul.mubr.msk.f32.gmra.mrb[34].mxu0 %vm507_vm2, %v7962_v53  ;;  %7125 = vmatmul.mubr.msk.f32.gmra.mrb[34].mxu1 %vm507_vm2, %v10257_v22 }
 0x11e   : > { %6927 = vmatprep.mubr.msk.f32.mxu0 %vm507_vm2, %v7970_v57  ;;  %7127 = vmatprep.mubr.msk.f32.mxu1 %vm507_vm2, %v10258_v54 }
 0x121   : > { %6928 = vmatmul.mubr.msk.f32.gmra.mrb[36].mxu0 %vm507_vm2, %v7989_v0  ;;  %7128 = vmatmul.mubr.msk.f32.gmra.mrb[36].mxu1 %vm507_vm2, %v10259_v60 }
 0x122   : > { %6930 = vmatprep.mubr.msk.f32.mxu0 %vm507_vm2, %v7999_v2  ;;  %7130 = vmatprep.mubr.msk.f32.mxu1 %vm507_vm2, %v10260_v23 }
 0x125   : > { %6931 = vmatmul.mubr.msk.f32.gmra.mrb[38].mxu0 %vm507_vm2, %v8024_v20  ;;  %7131 = vmatmul.mubr.msk.f32.gmra.mrb[38].mxu1 %vm507_vm2, %v10261_v34 }
 0x126   : > { %6933 = vmatprep.mubr.msk.f32.mxu0 %vm507_vm2, %v8033_v31  ;;  %7133 = vmatprep.mubr.msk.f32.mxu1 %vm507_vm2, %v10262_v9 }
 0x129   : > { %6934 = vmatmul.mubr.msk.f32.gmra.mrb[40].mxu0 %vm507_vm2, %v8058_v43  ;;  %7134 = vmatmul.mubr.msk.f32.gmra.mrb[40].mxu1 %vm507_vm2, %v10263_v10 }
 0x12a   : > { %6936 = vmatprep.mubr.msk.f32.mxu0 %vm507_vm2, %v8068_v48  ;;  %7136 = vmatprep.mubr.msk.f32.mxu1 %vm507_vm2, %v10264_v59 }
 0x12d   : > { %6937 = vmatmul.mubr.msk.f32.gmra.mrb[42].mxu0 %vm507_vm2, %v8093_v8  ;;  %7137 = vmatmul.mubr.msk.f32.gmra.mrb[42].mxu1 %vm507_vm2, %v10265_v13 }
 0x12e   : > { %6939 = vmatprep.mubr.msk.f32.mxu0 %vm507_vm2, %v8101_v17  ;;  %7139 = vmatprep.mubr.msk.f32.mxu1 %vm507_vm2, %v10266_v28 }
 0x131   : > { %6940 = vmatmul.mubr.msk.f32.gmra.mrb[44].mxu0 %vm507_vm2, %v8120_v49  ;;  %7140 = vmatmul.mubr.msk.f32.gmra.mrb[44].mxu1 %vm507_vm2, %v10267_v19 }
 0x132   : > { %6942 = vmatprep.mubr.msk.f32.mxu0 %vm507_vm2, %v8130_v51  ;;  %7142 = vmatprep.mubr.msk.f32.mxu1 %vm507_vm2, %v10268_v21 }
 0x135   : > { %6943 = vmatmul.mubr.msk.f32.gmra.mrb[46].mxu0 %vm507_vm2, %v8155_v26  ;;  %7143 = vmatmul.mubr.msk.f32.gmra.mrb[46].mxu1 %vm507_vm2, %v10269_v1  ;;  %v10312_v1 = vld [vmem:[#allocation35_spill] sm:$0xff] }
 0x136   : > { %6945 = vmatprep.mubr.msk.f32.mxu0 %vm507_vm2, %v8163_v50  ;;  %7145 = vmatprep.mubr.msk.f32.mxu1 %vm507_vm2, %v10270_v39 }
 0x139   : > { %6946 = vmatmul.mubr.msk.f32.gmra.mrb[48].mxu0 %vm507_vm2, %v8182_v55  ;;  %7146 = vmatmul.mubr.msk.f32.gmra.mrb[48].mxu1 %vm507_vm2, %v10271_v25 }
 0x13a   : > { %6948 = vmatprep.mubr.msk.f32.mxu0 %vm507_vm2, %v10236_v4  ;;  %7148 = vmatprep.mubr.msk.f32.mxu1 %vm507_vm2, %v10272_v5 }
 0x13d   : > { %6949 = vmatmul.mubr.msk.f32.gmra.mrb[50].mxu0 %vm507_vm2, %v10238_v18  ;;  %7149 = vmatmul.mubr.msk.f32.gmra.mrb[50].mxu1 %vm507_vm2, %v10273_v44 }
 0x13e   : > { %6951 = vmatprep.mubr.msk.f32.mxu0 %vm507_vm2, %v10240_v35  ;;  %7151 = vmatprep.mubr.msk.f32.mxu1 %vm507_vm2, %v10274_v37  ;;  %v9147_v37 = vld [vmem:[%s8629_s24 + $0x20] sm:$0xff] }
 0x13f   : > { %v4789_v5 = vrot.slane %v9147_v37, 2 }
 0x141   : > { %6952 = vmatmul.mubr.msk.f32.gmra.mrb[52].mxu0 %vm507_vm2, %v10242_v30  ;;  %7152 = vmatmul.mubr.msk.f32.gmra.mrb[52].mxu1 %vm507_vm2, %v10275_v33  ;;  %v10296_v33 = vld [vmem:[#allocation17_spill] sm:$0xff] }
 0x142   : > { %6954 = vmatprep.mubr.msk.f32.mxu0 %vm507_vm2, %v10244_v24  ;;  %7154 = vmatprep.mubr.msk.f32.mxu1 %vm507_vm2, %v10276_v3  ;;  %v10294_v3 = vld [vmem:[#allocation13_spill] sm:$0xff] }
 0x145   : > { %6955 = vmatmul.mubr.msk.f32.gmra.mrb[54].mxu0 %vm507_vm2, %v10286_v14  ;;  %7155 = vmatmul.mubr.msk.f32.gmra.mrb[54].mxu1 %vm507_vm2, %v10287_v29  ;;  %v10293_v29 = vld [vmem:[#allocation12_spill] sm:$0xff] }
 0x146   : > { %6957 = vmatprep.mubr.msk.f32.mxu0 %vm507_vm2, %v8287_v56  ;;  %7157 = vmatprep.mubr.msk.f32.mxu1 %vm507_vm2, %v10288_v62  ;;  %v9069_v62 = vld [vmem:[%s7856_s30 + $0x98] sm:$0xff] }
 0x149   : > { %6958 = vmatmul.mubr.msk.f32.gmra.mrb[56].mxu0 %vm507_vm2, %v8306_v52  ;;  %7158 = vmatmul.mubr.msk.f32.gmra.mrb[56].mxu1 %vm507_vm2, %v10289_v63  ;;  %v10292_v63 = vld [vmem:[#allocation9_spill] sm:$0xff] }
 0x14a   : > { %6960 = vmatprep.mubr.msk.f32.mxu0 %vm507_vm2, %v10290_v16  ;;  %7160 = vmatprep.mubr.msk.f32.mxu1 %vm507_vm2, %v10291_v47  ;;  %v9058_v47 = vld [vmem:[%s7856_s30 + $0x80] sm:$0xff] }
 0x14d   : > { %6961 = vmatmul.mubr.msk.f32.gmra.mrb[58].mxu0 %vm507_vm2, %v8335_v6  ;;  %7161 = vmatmul.mubr.msk.f32.gmra.mrb[58].mxu1 %vm507_vm2, %v10281_v40  ;;  %v9051_v40 = vld [vmem:[%s7856_s30 + $0x78] sm:$0xff] }
 0x14e   : > { %6963 = vmatprep.mubr.msk.f32.mxu0 %vm507_vm2, %v8341_v41  ;;  %7163 = vmatprep.mubr.msk.f32.mxu1 %vm507_vm2, %v10282_v38  ;;  %v7731_v38 = vld [vmem:[%s7856_s30 + $0x18] sm:$0xff] }
 0x151   : > { %6964 = vmatmul.mubr.msk.f32.gmra.mrb[60].mxu0 %vm507_vm2, %v8355_v32  ;;  %7164 = vmatmul.mubr.msk.f32.gmra.mrb[60].mxu1 %vm507_vm2, %v10284_v12  ;;  %v7732_v12 = vld [vmem:[%s7856_s30 + $0x20] sm:$0xff] }
 0x152   : > { %6966 = vmatprep.mubr.msk.f32.mxu0 %vm507_vm2, %v8664_v45  ;;  %7166 = vmatprep.mubr.msk.f32.mxu1 %vm507_vm2, %v8819_v15  ;;  %v8993_v15 = vld [vmem:[%s10045_s2 + $0x3c] sm:$0xf] }
 0x155   : > { %6967 = vmatmul.mubr.msk.f32.gmra.mrb[62].mxu0 %vm507_vm2, %v8675_v46  ;;  %7167 = vmatmul.mubr.msk.f32.gmra.mrb[62].mxu1 %vm507_vm2, %v8830_v11  ;;  %v9044_v11 = vld [vmem:[%s7856_s30 + $0x68] sm:$0xff] }
 0x156   : > { %6971 = vmatprep.mubr.msk.f32.mxu0 %vm507_vm2, %v7731_v38  ;;  %7171 = vmatprep.mubr.msk.f32.mxu1 %vm507_vm2, %v7899_v27  ;;  %v8998_v38 = vld [vmem:[%s10045_s2 + $0x2c] sm:$0xf]  ;;  %v9003_v27 = vld [vmem:[%s7856_s30 + $0x30] sm:$0xff] }
 0x159   : > { %6972 = vmatmul.mubr.msk.f32.vlgmr.msra.gmra.mrb[32].mxu0 %vm507_vm2, %v7732_v12  ;;  %7172 = vmatmul.mubr.msk.f32.vlgmr.msra.gmra.mrb[32].mxu1 %vm507_vm2, %v7924_v36  ;;  %v9016_v36 = vld [vmem:[%s7856_s30 + $0x38] sm:$0xff]  ;;  %v9023_v12 = vld [vmem:[%s7856_s30 + $0x48] sm:$0xff] }
 0x15a   : > { %7220 = vmatpush3.msk.msra.mxu1 %vm572_vm0, %v8847_v61  ;;  %6974 = vmatprep.mubr.msk.f32.mxu0 %vm507_vm2, %v9003_v27  ;;  %v9030_v61 = vld [vmem:[%s7856_s30 + $0x50] sm:$0xff] }
 0x15b   : > { %7174 = vmatprep.mubr.msk.f32.mxu1 %vm507_vm2, %v7935_v42  ;;  %7020 = vmatpush3.msk.msra.mxu0 %vm572_vm0, %v8852_v58  ;;  %v9037_v58 = vld [vmem:[%s7856_s30 + $0x60] sm:$0xff] }
 0x15c   : > { %7269 = vmatprep.subr.msk.mxu1 %vm572_vm0, %v8993_v15  ;;  %7069 = vmatprep.subr.msk.mxu0 %vm572_vm0, %v8998_v38 }
 0x15d   : > { %6975 = vmatmul.mubr.msk.f32.gmra.mrb[34].mxu0 %vm507_vm2, %v9016_v36  ;;  %7175 = vmatmul.mubr.msk.f32.gmra.mrb[34].mxu1 %vm507_vm2, %v7962_v53 }
 0x15e   : > { %6977 = vmatprep.mubr.msk.f32.mxu0 %vm507_vm2, %v9023_v12  ;;  %7177 = vmatprep.mubr.msk.f32.mxu1 %vm507_vm2, %v7970_v57 }
 0x161   : > { %6978 = vmatmul.mubr.msk.f32.gmra.mrb[36].mxu0 %vm507_vm2, %v9030_v61  ;;  %7178 = vmatmul.mubr.msk.f32.gmra.mrb[36].mxu1 %vm507_vm2, %v7989_v0 }
 0x162   : > { %6980 = vmatprep.mubr.msk.f32.mxu0 %vm507_vm2, %v9037_v58  ;;  %7180 = vmatprep.mubr.msk.f32.mxu1 %vm507_vm2, %v7999_v2 }
 0x165   : > { %6981 = vmatmul.mubr.msk.f32.gmra.mrb[38].mxu0 %vm507_vm2, %v9044_v11  ;;  %7181 = vmatmul.mubr.msk.f32.gmra.mrb[38].mxu1 %vm507_vm2, %v8024_v20 }
 0x166   : > { %6983 = vmatprep.mubr.msk.f32.mxu0 %vm507_vm2, %v9051_v40  ;;  %7183 = vmatprep.mubr.msk.f32.mxu1 %vm507_vm2, %v8033_v31 }
 0x169   : > { %6984 = vmatmul.mubr.msk.f32.gmra.mrb[40].mxu0 %vm507_vm2, %v9058_v47  ;;  %7184 = vmatmul.mubr.msk.f32.gmra.mrb[40].mxu1 %vm507_vm2, %v8058_v43 }
 0x16a   : > { %6986 = vmatprep.mubr.msk.f32.mxu0 %vm507_vm2, %v10292_v63  ;;  %7186 = vmatprep.mubr.msk.f32.mxu1 %vm507_vm2, %v8068_v48  ;;  %v10295_v63 = vld [vmem:[#allocation16_spill] sm:$0xff] }
 0x16d   : > { %6987 = vmatmul.mubr.msk.f32.gmra.mrb[42].mxu0 %vm507_vm2, %v9069_v62  ;;  %7187 = vmatmul.mubr.msk.f32.gmra.mrb[42].mxu1 %vm507_vm2, %v8093_v8 }
 0x16e   : > { %6989 = vmatprep.mubr.msk.f32.mxu0 %vm507_vm2, %v10293_v29  ;;  %7189 = vmatprep.mubr.msk.f32.mxu1 %vm507_vm2, %v8101_v17  ;;  %v10297_v29 = vld [vmem:[#allocation20_spill] sm:$0xff] }
 0x171   : > { %6990 = vmatmul.mubr.msk.f32.gmra.mrb[44].mxu0 %vm507_vm2, %v10294_v3  ;;  %7190 = vmatmul.mubr.msk.f32.gmra.mrb[44].mxu1 %vm507_vm2, %v8120_v49  ;;  %v10298_v3 = vld [vmem:[#allocation21_spill] sm:$0xff] }
 0x172   : > { %6992 = vmatprep.mubr.msk.f32.mxu0 %vm507_vm2, %v10295_v63  ;;  %7192 = vmatprep.mubr.msk.f32.mxu1 %vm507_vm2, %v8130_v51  ;;  %v10299_v63 = vld [vmem:[#allocation24_spill] sm:$0xff] }
 0x175   : > { %6993 = vmatmul.mubr.msk.f32.gmra.mrb[46].mxu0 %vm507_vm2, %v10296_v33  ;;  %7193 = vmatmul.mubr.msk.f32.gmra.mrb[46].mxu1 %vm507_vm2, %v8155_v26  ;;  %v10300_v33 = vld [vmem:[#allocation25_spill] sm:$0xff] }
 0x176   : > { %6995 = vmatprep.mubr.msk.f32.mxu0 %vm507_vm2, %v10297_v29  ;;  %7195 = vmatprep.mubr.msk.f32.mxu1 %vm507_vm2, %v8163_v50  ;;  %v10301_v29 = vld [vmem:[#allocation28_spill] sm:$0xff] }
 0x179   : > { %6996 = vmatmul.mubr.msk.f32.gmra.mrb[48].mxu0 %vm507_vm2, %v10298_v3  ;;  %7196 = vmatmul.mubr.msk.f32.gmra.mrb[48].mxu1 %vm507_vm2, %v8182_v55  ;;  %v10302_v3 = vld [vmem:[#allocation29_spill] sm:$0xff] }
 0x17a   : > { %6998 = vmatprep.mubr.msk.f32.mxu0 %vm507_vm2, %v10299_v63  ;;  %7198 = vmatprep.mubr.msk.f32.mxu1 %vm507_vm2, %v10236_v4  ;;  %v10303_v63 = vld [vmem:[#allocation33_spill] sm:$0xff] }
 0x17d   : > { %6999 = vmatmul.mubr.msk.f32.gmra.mrb[50].mxu0 %vm507_vm2, %v10300_v33  ;;  %7199 = vmatmul.mubr.msk.f32.gmra.mrb[50].mxu1 %vm507_vm2, %v10238_v18  ;;  %v10304_v33 = vld [vmem:[#allocation34_spill] sm:$0xff] }
 0x17e   : > { %7001 = vmatprep.mubr.msk.f32.mxu0 %vm507_vm2, %v10301_v29  ;;  %7201 = vmatprep.mubr.msk.f32.mxu1 %vm507_vm2, %v10240_v35  ;;  %v10305_v29 = vld [vmem:[#allocation39_spill] sm:$0xff] }
 0x181   : > { %7002 = vmatmul.mubr.msk.f32.gmra.mrb[52].mxu0 %vm507_vm2, %v10302_v3  ;;  %7202 = vmatmul.mubr.msk.f32.gmra.mrb[52].mxu1 %vm507_vm2, %v10242_v30  ;;  %v10306_v3 = vld [vmem:[#allocation40_spill] sm:$0xff] }
 0x182   : > { %7004 = vmatprep.mubr.msk.f32.mxu0 %vm507_vm2, %v10303_v63  ;;  %7204 = vmatprep.mubr.msk.f32.mxu1 %vm507_vm2, %v10244_v24  ;;  %v10307_v63 = vld [vmem:[#allocation45_spill] sm:$0xff] }
 0x185   : > { %7005 = vmatmul.mubr.msk.f32.gmra.mrb[54].mxu0 %vm507_vm2, %v10304_v33  ;;  %7205 = vmatmul.mubr.msk.f32.gmra.mrb[54].mxu1 %vm507_vm2, %v10286_v14  ;;  %v10308_v33 = vld [vmem:[#allocation46_spill] sm:$0xff] }
 0x186   : > { %7007 = vmatprep.mubr.msk.f32.mxu0 %vm507_vm2, %v10305_v29  ;;  %7207 = vmatprep.mubr.msk.f32.mxu1 %vm507_vm2, %v8287_v56  ;;  %v10309_v29 = vld [vmem:[#allocation50_spill] sm:$0xff] }
 0x189   : > { %7008 = vmatmul.mubr.msk.f32.gmra.mrb[56].mxu0 %vm507_vm2, %v10306_v3  ;;  %7208 = vmatmul.mubr.msk.f32.gmra.mrb[56].mxu1 %vm507_vm2, %v8306_v52  ;;  %v9144_v3 = vld [vmem:[%s8629_s24 + $0x18] sm:$0xff] }
 0x18a   : > { %7010 = vmatprep.mubr.msk.f32.mxu0 %vm507_vm2, %v10307_v63  ;;  %7210 = vmatprep.mubr.msk.f32.mxu1 %vm507_vm2, %v10290_v16  ;;  %v10310_v63 = vld [vmem:[#allocation51_spill] sm:$0xff]  ;;  %v4788_v44 = vrot.slane %v9144_v3, 2 }
 0x18c   : > { %v9164_v39 = vsel %vm1673_vm3, %v4788_v44, %v4789_v5  ;;  %v7743_v44 = vld [vmem:[%s7856_s30 + $0xa8] sm:$0xff] }
 0x18d   : > { %7011 = vmatmul.mubr.msk.f32.gmra.mrb[58].mxu0 %vm507_vm2, %v10308_v33  ;;  %7211 = vmatmul.mubr.msk.f32.gmra.mrb[58].mxu1 %vm507_vm2, %v8335_v6  ;;  %v9154_v33 = vld [vmem:[%s8629_s24 + $0x28] sm:$0x3] }
 0x18e   : > { %7013 = vmatprep.mubr.msk.f32.mxu0 %vm507_vm2, %v10309_v29  ;;  %7213 = vmatprep.mubr.msk.f32.mxu1 %vm507_vm2, %v8341_v41  ;;  %v10311_v29 = vld [vmem:[#allocation31_spill] sm:$0xff]  ;;  %v4791_v25 = vrot.slane %v9154_v33, 2 }
 0x191   : > { %7014 = vmatmul.mubr.msk.f32.gmra.mrb[60].mxu0 %vm507_vm2, %v10310_v63  ;;  %7214 = vmatmul.mubr.msk.f32.gmra.mrb[60].mxu1 %vm507_vm2, %v8355_v32  ;;  %v9167_v63 = vsel %vm1673_vm3, %v4789_v5, %v4791_v25 }
 0x192   : > { %7016 = vmatprep.mubr.msk.f32.mxu0 %vm507_vm2, %v10311_v29  ;;  %7216 = vmatprep.mubr.msk.f32.mxu1 %vm507_vm2, %v8664_v45 }
 0x195   : > { %7017 = vmatmul.mubr.msk.f32.gmra.mrb[62].mxu0 %vm507_vm2, %v10312_v1  ;;  %7217 = vmatmul.mubr.msk.f32.gmra.mrb[62].mxu1 %vm507_vm2, %v8675_v46 }
 0x196   : > { %7021 = vmatprep.mubr.msk.f32.mxu0 %vm507_vm2, %v9003_v27  ;;  %7221 = vmatprep.mubr.msk.f32.mxu1 %vm507_vm2, %v7935_v42  ;;  %v7745_v27 = vld [vmem:[%s7856_s30 + $0xc0] sm:$0xff] }
 0x199   : > { %7022 = vmatmul.mubr.msk.f32.vlgmr.msra.gmra.mrb[32].mxu0 %vm507_vm2, %v9016_v36  ;;  %7222 = vmatmul.mubr.msk.f32.vlgmr.msra.gmra.mrb[32].mxu1 %vm507_vm2, %v7962_v53 }
 0x19a   : > { %7270 = vmatpush3.msk.msra.mxu1 %vm572_vm0, %v8993_v15  ;;  %7024 = vmatprep.mubr.msk.f32.mxu0 %vm507_vm2, %v9023_v12  ;;  %v7742_v15 = vld [vmem:[%s7856_s30 + $0x90] sm:$0xff] }
 0x19b   : > { %7224 = vmatprep.mubr.msk.f32.mxu1 %vm507_vm2, %v7970_v57  ;;  %7070 = vmatpush3.msk.msra.mxu0 %vm572_vm0, %v8998_v38  ;;  %v7744_v38 = vld [vmem:[%s7856_s30 + $0xb0] sm:$0xff] }
 0x19d   : > { %7025 = vmatmul.mubr.msk.f32.gmra.mrb[34].mxu0 %vm507_vm2, %v9030_v61  ;;  %7225 = vmatmul.mubr.msk.f32.gmra.mrb[34].mxu1 %vm507_vm2, %v7989_v0 }
 0x19e   : > { %7027 = vmatprep.mubr.msk.f32.mxu0 %vm507_vm2, %v9037_v58  ;;  %7227 = vmatprep.mubr.msk.f32.mxu1 %vm507_vm2, %v7999_v2 }
 0x1a1   : > { %7028 = vmatmul.mubr.msk.f32.gmra.mrb[36].mxu0 %vm507_vm2, %v9044_v11  ;;  %7228 = vmatmul.mubr.msk.f32.gmra.mrb[36].mxu1 %vm507_vm2, %v8024_v20 }
 0x1a2   : > { %7030 = vmatprep.mubr.msk.f32.mxu0 %vm507_vm2, %v9051_v40  ;;  %7230 = vmatprep.mubr.msk.f32.mxu1 %vm507_vm2, %v8033_v31  ;;  %v9220_v40 = vld [vmem:[%s10046_s3] ss:$0 sm:$0xff] }
 0x1a5   : > { %7031 = vmatmul.mubr.msk.f32.gmra.mrb[38].mxu0 %vm507_vm2, %v9058_v47  ;;  %7231 = vmatmul.mubr.msk.f32.gmra.mrb[38].mxu1 %vm507_vm2, %v8058_v43 }
 0x1a6   : > { %7033 = vmatprep.mubr.msk.f32.mxu0 %vm507_vm2, %v7742_v15  ;;  %7233 = vmatprep.mubr.msk.f32.mxu1 %vm507_vm2, %v8068_v48 }
 0x1a9   : > { %7034 = vmatmul.mubr.msk.f32.gmra.mrb[40].mxu0 %vm507_vm2, %v9069_v62  ;;  %7234 = vmatmul.mubr.msk.f32.gmra.mrb[40].mxu1 %vm507_vm2, %v8093_v8 }
 0x1aa   : > { %7036 = vmatprep.mubr.msk.f32.mxu0 %vm507_vm2, %v7743_v44  ;;  %7236 = vmatprep.mubr.msk.f32.mxu1 %vm507_vm2, %v8101_v17 }
 0x1ac   : > { %v9226_v5 = vpop.f32.mrb[0].mxu0  ;;  %v6873_v25 = vpop.f32.mrb[0].mxu1 }
 0x1ad   : > { %v2810_v11 = vadd.f32 %v6873_v25, %v9220_v40  ;;  %v9229_v62 = vpop.f32.mrb[1].mxu0  ;;  %v2618_v47 = vpop.f32.mrb[1].mxu1  ;;  %7037 = vmatmul.mubr.msk.f32.gmra.mrb[42].mxu0 %vm507_vm2, %v7744_v38  ;;  %7237 = vmatmul.mubr.msk.f32.gmra.mrb[42].mxu1 %vm507_vm2, %v8120_v49  ;;  %v7746_v25 = vld [vmem:[%s7856_s30 + $0xc8] sm:$0xff]  ;;  %v7747_v38 = vld [vmem:[%s7856_s30 + $0xd8] sm:$0xff] }
 0x1ae   : > { %10313 = vst [vmem:[#allocation43_spill] sm:$0xff] %v9229_v62  ;;  %7039 = vmatprep.mubr.msk.f32.mxu0 %vm507_vm2, %v7745_v27  ;;  %7239 = vmatprep.mubr.msk.f32.mxu1 %vm507_vm2, %v8130_v51  ;;  %v2809_v61 = vadd.f32 %v9220_v40, %v2618_v47  ;;  %v7760_v62 = vld [vmem:[%s7856_s30 + $0x170] sm:$0xff] }
 0x1af   : > { %2875 = vrot.lane.b32.xlu0 %v2810_v11, %s7786_s14 }
 0x1b0   : > { %v9240_v36 = vpop.f32.mrb[2].mxu0  ;;  %v6876_v12 = vpop.f32.mrb[2].mxu1 }
 0x1b1   : > { %10314 = vst [vmem:[#allocation2_spill] sm:$0xff] %v9240_v36  ;;  %v2812_v58 = vadd.f32 %v6876_v12, %v9220_v40  ;;  %v9244_v15 = vpop.f32.mrb[3].mxu0  ;;  %v2628_v44 = vpop.f32.mrb[3].mxu1  ;;  %7040 = vmatmul.mubr.msk.f32.gmra.mrb[44].mxu0 %vm507_vm2, %v7746_v25  ;;  %7240 = vmatmul.mubr.msk.f32.gmra.mrb[44].mxu1 %vm507_vm2, %v8155_v26 }
 0x1b2   : > { %10315 = vst [vmem:[#allocation3_spill] sm:$0xff] %v9244_v15  ;;  %7042 = vmatprep.mubr.msk.f32.mxu0 %vm507_vm2, %v7747_v38  ;;  %7242 = vmatprep.mubr.msk.f32.mxu1 %vm507_vm2, %v8163_v50  ;;  %v2811_v27 = vadd.f32 %v9220_v40, %v2628_v44  ;;  %v7748_v15 = vld [vmem:[%s7856_s30 + $0xe0] sm:$0xff] }
 0x1b3   : > { %2873 = vrot.lane.b32.xlu0 %v2809_v61, %s7786_s14  ;;  %2879 = vrot.lane.b32.xlu1 %v2812_v58, %s7786_s14  ;;  %v7749_v61 = vld [vmem:[%s7856_s30 + $0xf0] sm:$0xff] }
 0x1b4   : > { %v9256_v11 = vpop.f32.mrb[4].mxu0  ;;  %v6879_v47 = vpop.f32.mrb[4].mxu1 }
 0x1b5   : > { %10316 = vst [vmem:[#allocation4_spill] sm:$0xff] %v9256_v11  ;;  %v9259_v12 = vpop.f32.mrb[5].mxu0  ;;  %v2638_v25 = vpop.f32.mrb[5].mxu1  ;;  %7043 = vmatmul.mubr.msk.f32.gmra.mrb[46].mxu0 %vm507_vm2, %v7748_v15  ;;  %7243 = vmatmul.mubr.msk.f32.gmra.mrb[46].mxu1 %vm507_vm2, %v8182_v55  ;;  %v2814_v15 = vadd.f32 %v6879_v47, %v9220_v40 }
 0x1b6   : > { %10317 = vst [vmem:[#allocation5_spill] sm:$0xff] %v9259_v12  ;;  %v2813_v38 = vadd.f32 %v9220_v40, %v2638_v25  ;;  %7245 = vmatprep.mubr.msk.f32.mxu1 %vm507_vm2, %v10236_v4  ;;  %7045 = vmatprep.mubr.msk.f32.mxu0 %vm507_vm2, %v7749_v61  ;;  %v7750_v12 = vld [vmem:[%s7856_s30 + $0xf8] sm:$0xff] }
 0x1b7   : > { %2877 = vrot.lane.b32.xlu1 %v2811_v27, %s7786_s14  ;;  %v7751_v27 = vld [vmem:[%s7856_s30 + $0x108] sm:$0xff] }
 0x1b8   : > { %2881 = vrot.lane.b32.xlu0 %v2813_v38, %s7786_s14  ;;  %v9272_v58 = vpop.f32.mrb[6].mxu0  ;;  %v6882_v44 = vpop.f32.mrb[6].mxu1 }
 0x1b9   : > { %10318 = vst [vmem:[#allocation6_spill] sm:$0xff] %v9272_v58  ;;  %v9275_v11 = vpop.f32.mrb[7].mxu0  ;;  %v2648_v25 = vpop.f32.mrb[7].mxu1  ;;  %7046 = vmatmul.mubr.msk.f32.gmra.mrb[48].mxu0 %vm507_vm2, %v7750_v12  ;;  %7246 = vmatmul.mubr.msk.f32.gmra.mrb[48].mxu1 %vm507_vm2, %v10238_v18  ;;  %v2816_v12 = vadd.f32 %v6882_v44, %v9220_v40 }
 0x1ba   : > { %10319 = vst [vmem:[#allocation7_spill] sm:$0xff] %v9275_v11  ;;  %v2815_v61 = vadd.f32 %v9220_v40, %v2648_v25  ;;  %7248 = vmatprep.mubr.msk.f32.mxu1 %vm507_vm2, %v10240_v35  ;;  %7048 = vmatprep.mubr.msk.f32.mxu0 %vm507_vm2, %v7751_v27  ;;  %v7752_v11 = vld [vmem:[%s7856_s30 + $0x110] sm:$0xff] }
 0x1bb   : > { %2883 = vrot.lane.b32.xlu1 %v2814_v15, %s7786_s14  ;;  %v7753_v15 = vld [vmem:[%s7856_s30 + $0x120] sm:$0xff] }
 0x1bc   : > { %2885 = vrot.lane.b32.xlu0 %v2815_v61, %s7786_s14  ;;  %v9288_v47 = vpop.f32.mrb[8].mxu0  ;;  %v6885_v38 = vpop.f32.mrb[8].mxu1 }
 0x1bd   : > { %10320 = vst [vmem:[#allocation8_spill] sm:$0xff] %v9288_v47  ;;  %v9291_v58 = vpop.f32.mrb[9].mxu0  ;;  %v2658_v25 = vpop.f32.mrb[9].mxu1  ;;  %7049 = vmatmul.mubr.msk.f32.gmra.mrb[50].mxu0 %vm507_vm2, %v7752_v11  ;;  %7249 = vmatmul.mubr.msk.f32.gmra.mrb[50].mxu1 %vm507_vm2, %v10242_v30  ;;  %v2818_v11 = vadd.f32 %v6885_v38, %v9220_v40 }
 0x1be   : > { %10321 = vst [vmem:[#allocation10_spill] sm:$0xff] %v9291_v58  ;;  %v2817_v27 = vadd.f32 %v9220_v40, %v2658_v25  ;;  %7251 = vmatprep.mubr.msk.f32.mxu1 %vm507_vm2, %v10244_v24  ;;  %7051 = vmatprep.mubr.msk.f32.mxu0 %vm507_vm2, %v7753_v15  ;;  %v7754_v58 = vld [vmem:[%s7856_s30 + $0x128] sm:$0xff] }
 0x1bf   : > { %2887 = vrot.lane.b32.xlu1 %v2816_v12, %s7786_s14  ;;  %v7755_v12 = vld [vmem:[%s7856_s30 + $0x138] sm:$0xff] }
 0x1c0   : > { %2889 = vrot.lane.b32.xlu0 %v2817_v27, %s7786_s14  ;;  %v9304_v44 = vpop.f32.mrb[10].mxu0  ;;  %v6888_v61 = vpop.f32.mrb[10].mxu1 }
 0x1c1   : > { %10322 = vst [vmem:[#allocation11_spill] sm:$0xff] %v9304_v44  ;;  %v9307_v47 = vpop.f32.mrb[11].mxu0  ;;  %v2668_v25 = vpop.f32.mrb[11].mxu1  ;;  %7052 = vmatmul.mubr.msk.f32.gmra.mrb[52].mxu0 %vm507_vm2, %v7754_v58  ;;  %7252 = vmatmul.mubr.msk.f32.gmra.mrb[52].mxu1 %vm507_vm2, %v10286_v14  ;;  %v2820_v58 = vadd.f32 %v6888_v61, %v9220_v40 }
 0x1c2   : > { %10323 = vst [vmem:[#allocation14_spill] sm:$0xff] %v9307_v47  ;;  %v2819_v15 = vadd.f32 %v9220_v40, %v2668_v25  ;;  %7254 = vmatprep.mubr.msk.f32.mxu1 %vm507_vm2, %v8287_v56  ;;  %7054 = vmatprep.mubr.msk.f32.mxu0 %vm507_vm2, %v7755_v12  ;;  %v7756_v47 = vld [vmem:[%s7856_s30 + $0x140] sm:$0xff] }
 0x1c3   : > { %2891 = vrot.lane.b32.xlu1 %v2818_v11, %s7786_s14  ;;  %v7757_v11 = vld [vmem:[%s7856_s30 + $0x150] sm:$0xff] }
 0x1c4   : > { %2893 = vrot.lane.b32.xlu0 %v2819_v15, %s7786_s14  ;;  %v9320_v38 = vpop.f32.mrb[12].mxu0  ;;  %v6891_v27 = vpop.f32.mrb[12].mxu1 }
 0x1c5   : > { %10324 = vst [vmem:[#allocation15_spill] sm:$0xff] %v9320_v38  ;;  %v9323_v44 = vpop.f32.mrb[13].mxu0  ;;  %v2678_v25 = vpop.f32.mrb[13].mxu1  ;;  %7055 = vmatmul.mubr.msk.f32.gmra.mrb[54].mxu0 %vm507_vm2, %v7756_v47  ;;  %7255 = vmatmul.mubr.msk.f32.gmra.mrb[54].mxu1 %vm507_vm2, %v8306_v52  ;;  %v2822_v47 = vadd.f32 %v6891_v27, %v9220_v40  ;;  %v3763_v27 = vrot.slane %v9144_v3, 1 }
 0x1c6   : > { %10325 = vst [vmem:[#allocation18_spill] sm:$0xff] %v9323_v44  ;;  %v2821_v12 = vadd.f32 %v9220_v40, %v2678_v25  ;;  %7257 = vmatprep.mubr.msk.f32.mxu1 %vm507_vm2, %v10290_v16  ;;  %7057 = vmatprep.mubr.msk.f32.mxu0 %vm507_vm2, %v7757_v11  ;;  %v7758_v25 = vld [vmem:[%s7856_s30 + $0x158] sm:$0xff] }
 0x1c7   : > { %2895 = vrot.lane.b32.xlu1 %v2820_v58, %s7786_s14  ;;  %v7759_v58 = vld [vmem:[%s7856_s30 + $0x168] sm:$0xff]  ;;  %s5990_s30 = sshll.u32 %s10369_s15, 9 }
 0x1c8   : > { %2897 = vrot.lane.b32.xlu0 %v2821_v12, %s7786_s14  ;;  %v9336_v61 = vpop.f32.mrb[14].mxu0  ;;  %v6894_v15 = vpop.f32.mrb[14].mxu1  ;;  %v3764_v12 = vrot.slane %v9147_v37, 1  ;;  %s9579_s21 = scalar_lea.vmem %s10047_s4, %s5990_s30 }
 0x1c9   : > { %10326 = vst [vmem:[#allocation19_spill] sm:$0xff] %v9336_v61  ;;  %v9339_v38 = vpop.f32.mrb[15].mxu0  ;;  %v2688_v44 = vpop.f32.mrb[15].mxu1  ;;  %7058 = vmatmul.mubr.msk.f32.gmra.mrb[56].mxu0 %vm507_vm2, %v7758_v25  ;;  %7258 = vmatmul.mubr.msk.f32.gmra.mrb[56].mxu1 %vm507_vm2, %v8335_v6 }
 0x1ca   : > { %10327 = vst [vmem:[#allocation22_spill] sm:$0xff] %v9339_v38  ;;  %v2823_v11 = vadd.f32 %v9220_v40, %v2688_v44  ;;  %7260 = vmatprep.mubr.msk.f32.mxu1 %vm507_vm2, %v8341_v41  ;;  %7060 = vmatprep.mubr.msk.f32.mxu0 %vm507_vm2, %v7759_v58  ;;  %v2824_v38 = vadd.f32 %v6894_v15, %v9220_v40 }
 0x1cb   : > { %2899 = vrot.lane.b32.xlu1 %v2822_v47, %s7786_s14  ;;  %v9371_v15 = vsel %vm424_vm1, %v3763_v27, %v3764_v12 }
 0x1cc   : > { %2901 = vrot.lane.b32.xlu0 %v2823_v11, %s7786_s14  ;;  %v9354_v25 = vpop.f32.mrb[16].mxu0  ;;  %v6897_v61 = vpop.f32.mrb[16].mxu1  ;;  %v3766_v11 = vrot.slane %v9154_v33, 1 }
 0x1cd   : > { %10328 = vst [vmem:[#allocation23_spill] sm:$0xff] %v9354_v25  ;;  %v9357_v44 = vpop.f32.mrb[17].mxu0  ;;  %v2698_v36 = vpop.f32.mrb[17].mxu1  ;;  %7061 = vmatmul.mubr.msk.f32.gmra.mrb[58].mxu0 %vm507_vm2, %v7760_v62  ;;  %7261 = vmatmul.mubr.msk.f32.gmra.mrb[58].mxu1 %vm507_vm2, %v8355_v32 }
 0x1ce   : > { %10329 = vst [vmem:[#allocation47_spill] sm:$0xff] %v9357_v44  ;;  %v2825_v47 = vadd.f32 %v9220_v40, %v2698_v36  ;;  %7263 = vmatprep.mubr.msk.f32.mxu1 %vm507_vm2, %v8664_v45  ;;  %7063 = vmatprep.mubr.msk.f32.mxu0 %vm507_vm2, %v10311_v29  ;;  %v2826_v36 = vadd.f32 %v6897_v61, %v9220_v40 }
 0x1cf   : > { %2903 = vrot.lane.b32.xlu1 %v2824_v38, %s7786_s14  ;;  %v9389_v29 = vsel %vm424_vm1, %v3764_v12, %v3766_v11 }
 0x1d0   : > { %2905 = vrot.lane.b32.xlu0 %v2825_v47, %s7786_s14  ;;  %v9374_v62 = vpop.f32.mrb[18].mxu0  ;;  %v6900_v58 = vpop.f32.mrb[18].mxu1 }
 0x1d1   : > { %v9377_v25 = vpop.f32.mrb[19].mxu0  ;;  %v2708_v44 = vpop.f32.mrb[19].mxu1  ;;  %7064 = vmatmul.mubr.msk.f32.gmra.mrb[60].mxu0 %vm507_vm2, %v10312_v1  ;;  %7264 = vmatmul.mubr.msk.f32.gmra.mrb[60].mxu1 %vm507_vm2, %v8675_v46  ;;  %v2828_v61 = vadd.f32 %v6900_v58, %v9220_v40 }
 0x1d2   : > { %v2827_v33 = vadd.f32 %v9220_v40, %v2708_v44  ;;  %7266 = vmatprep.mubr.msk.f32.mxu1 %vm507_vm2, %v9371_v15  ;;  %7066 = vmatprep.mubr.msk.f32.mxu0 %vm507_vm2, %v9144_v3 }
 0x1d3   : > { %2907 = vrot.lane.b32.xlu1 %v2826_v36, %s7786_s14 }
 0x1d4   : > { %2909 = vrot.lane.b32.xlu0 %v2827_v33, %s7786_s14  ;;  %v9393_v38 = vpop.f32.mrb[20].mxu0  ;;  %v6903_v1 = vpop.f32.mrb[20].mxu1 }
 0x1d5   : > { %v9396_v27 = vpop.f32.mrb[21].mxu0  ;;  %v2718_v44 = vpop.f32.mrb[21].mxu1  ;;  %7067 = vmatmul.mubr.msk.f32.gmra.mrb[62].mxu0 %vm507_vm2, %v9147_v37  ;;  %7267 = vmatmul.mubr.msk.f32.gmra.mrb[62].mxu1 %vm507_vm2, %v9389_v29  ;;  %v2830_v37 = vadd.f32 %v6903_v1, %v9220_v40 }
 0x1d6   : > { %v2829_v3 = vadd.f32 %v9220_v40, %v2718_v44  ;;  %7271 = vmatprep.mubr.msk.f32.mxu1 %vm507_vm2, %v10256_v7  ;;  %7071 = vmatprep.mubr.msk.f32.mxu0 %vm507_vm2, %v7935_v42 }
 0x1d7   : > { %2911 = vrot.lane.b32.xlu1 %v2828_v61, %s7786_s14 }
 0x1d8   : > { %2913 = vrot.lane.b32.xlu0 %v2829_v3, %s7786_s14  ;;  %v9409_v12 = vpop.f32.mrb[22].mxu0  ;;  %v6906_v47 = vpop.f32.mrb[22].mxu1 }
 0x1d9   : > { %v9412_v11 = vpop.f32.mrb[23].mxu0  ;;  %v2728_v58 = vpop.f32.mrb[23].mxu1  ;;  %7072 = vmatmul.mubr.msk.f32.vlgmr.msra.gmra.mrb[32].mxu0 %vm507_vm2, %v7962_v53  ;;  %7272 = vmatmul.mubr.msk.f32.vlgmr.msra.gmra.mrb[32].mxu1 %vm507_vm2, %v10257_v22  ;;  %v2832_v53 = vadd.f32 %v6906_v47, %v9220_v40 }
 0x1da   : > { %v2831_v42 = vadd.f32 %v9220_v40, %v2728_v58  ;;  %7274 = vmatprep.mubr.msk.f32.mxu1 %vm507_vm2, %v10258_v54  ;;  %7074 = vmatprep.mubr.msk.f32.mxu0 %vm507_vm2, %v7970_v57  ;;  %v10350_v58 = vld [vmem:[#allocation5_spill] sm:$0xff] }
 0x1db   : > { %2915 = vrot.lane.b32.xlu1 %v2830_v37, %s7786_s14 }
 0x1dc   : > { %2917 = vrot.lane.b32.xlu0 %v2831_v42, %s7786_s14  ;;  %v9425_v7 = vpop.f32.mrb[24].mxu0  ;;  %v6909_v36 = vpop.f32.mrb[24].mxu1  ;;  %v1643_v42 = vadd.f32 %v9220_v40, %v10350_v58 }
 0x1dd   : > { %v9428_v33 = vpop.f32.mrb[25].mxu0  ;;  %v2738_v22 = vpop.f32.mrb[25].mxu1  ;;  %7075 = vmatmul.mubr.msk.f32.gmra.mrb[34].mxu0 %vm507_vm2, %v7989_v0  ;;  %7275 = vmatmul.mubr.msk.f32.gmra.mrb[34].mxu1 %vm507_vm2, %v10259_v60  ;;  %v2834_v0 = vadd.f32 %v6909_v36, %v9220_v40 }
 0x1de   : > { %v2833_v57 = vadd.f32 %v9220_v40, %v2738_v22  ;;  %7277 = vmatprep.mubr.msk.f32.mxu1 %vm507_vm2, %v10260_v23  ;;  %7077 = vmatprep.mubr.msk.f32.mxu0 %vm507_vm2, %v7999_v2 }
 0x1df   : > { %2919 = vrot.lane.b32.xlu1 %v2832_v53, %s7786_s14 }
 0x1e0   : > { %2921 = vrot.lane.b32.xlu0 %v2833_v57, %s7786_s14  ;;  %v9441_v54 = vpop.f32.mrb[26].mxu0  ;;  %v6912_v1 = vpop.f32.mrb[26].mxu1 }
 0x1e1   : > { %v9444_v61 = vpop.f32.mrb[27].mxu0  ;;  %v2748_v60 = vpop.f32.mrb[27].mxu1  ;;  %7078 = vmatmul.mubr.msk.f32.gmra.mrb[36].mxu0 %vm507_vm2, %v8024_v20  ;;  %7278 = vmatmul.mubr.msk.f32.gmra.mrb[36].mxu1 %vm507_vm2, %v10261_v34  ;;  %v2836_v20 = vadd.f32 %v6912_v1, %v9220_v40  ;;  %v10351_v1 = vld [vmem:[#allocation4_spill] sm:$0xff] }
 0x1e2   : > { %v2835_v2 = vadd.f32 %v9220_v40, %v2748_v60  ;;  %7280 = vmatprep.mubr.msk.f32.mxu1 %vm507_vm2, %v10262_v9  ;;  %7080 = vmatprep.mubr.msk.f32.mxu0 %vm507_vm2, %v8033_v31  ;;  %v10352_v60 = vld [vmem:[#allocation7_spill] sm:$0xff] }
 0x1e3   : > { %2923 = vrot.lane.b32.xlu1 %v2834_v0, %s7786_s14  ;;  %v1644_v0 = vadd.f32 %v10351_v1, %v9220_v40 }
 0x1e4   : > { %2925 = vrot.lane.b32.xlu0 %v2835_v2, %s7786_s14  ;;  %v9457_v23 = vpop.f32.mrb[28].mxu0  ;;  %v6915_v44 = vpop.f32.mrb[28].mxu1  ;;  %v1645_v2 = vadd.f32 %v9220_v40, %v10352_v60 }
 0x1e5   : > { %v9460_v3 = vpop.f32.mrb[29].mxu0  ;;  %v2758_v34 = vpop.f32.mrb[29].mxu1  ;;  %7081 = vmatmul.mubr.msk.f32.gmra.mrb[38].mxu0 %vm507_vm2, %v8058_v43  ;;  %7281 = vmatmul.mubr.msk.f32.gmra.mrb[38].mxu1 %vm507_vm2, %v10263_v10  ;;  %v2838_v43 = vadd.f32 %v6915_v44, %v9220_v40 }
 0x1e6   : > { %v2837_v31 = vadd.f32 %v9220_v40, %v2758_v34  ;;  %7283 = vmatprep.mubr.msk.f32.mxu1 %vm507_vm2, %v10264_v59  ;;  %7083 = vmatprep.mubr.msk.f32.mxu0 %vm507_vm2, %v8068_v48 }
 0x1e7   : > { %2927 = vrot.lane.b32.xlu1 %v2836_v20, %s7786_s14 }
 0x1e8   : > { %2929 = vrot.lane.b32.xlu0 %v2837_v31, %s7786_s14  ;;  %v9473_v9 = vpop.f32.mrb[30].mxu0  ;;  %v6918_v47 = vpop.f32.mrb[30].mxu1 }
 0x1e9   : > { %v9476_v37 = vpop.f32.mrb[31].mxu0  ;;  %v2768_v10 = vpop.f32.mrb[31].mxu1  ;;  %7084 = vmatmul.mubr.msk.f32.gmra.mrb[40].mxu0 %vm507_vm2, %v8093_v8  ;;  %7284 = vmatmul.mubr.msk.f32.gmra.mrb[40].mxu1 %vm507_vm2, %v10265_v13  ;;  %v2840_v59 = vadd.f32 %v6918_v47, %v9220_v40  ;;  %v10330_v8 = vld [vmem:[#allocation26_spill] sm:$0xff] }
 0x1ea   : > { %v2839_v48 = vadd.f32 %v9220_v40, %v2768_v10  ;;  %7286 = vmatprep.mubr.msk.f32.mxu1 %vm507_vm2, %v10266_v28  ;;  %7086 = vmatprep.mubr.msk.f32.mxu0 %vm507_vm2, %v8101_v17  ;;  %v10331_v17 = vld [vmem:[#allocation27_spill] sm:$0xff]  ;;  %v10353_v47 = vld [vmem:[#allocation6_spill] sm:$0xff] }
 0x1eb   : > { %2931 = vrot.lane.b32.xlu1 %v2838_v43, %s7786_s14  ;;  %v10347_v28 = vld [vmem:[#allocation43_spill] sm:$0xff]  ;;  %v1646_v43 = vadd.f32 %v10353_v47, %v9220_v40  ;;  %v10354_v10 = vld [vmem:[#allocation10_spill] sm:$0xff] }
 0x1ec   : > { %2933 = vrot.lane.b32.xlu0 %v2839_v48, %s7786_s14  ;;  %v1639_v13 = vadd.f32 %v9220_v40, %v10347_v28  ;;  %v1647_v48 = vadd.f32 %v9220_v40, %v10354_v10 }
 0x1ed   : > { %7087 = vmatmul.mubr.msk.f32.gmra.mrb[42].mxu0 %vm507_vm2, %v8120_v49  ;;  %7287 = vmatmul.mubr.msk.f32.gmra.mrb[42].mxu1 %vm507_vm2, %v10267_v19  ;;  %v10332_v49 = vld [vmem:[#allocation30_spill] sm:$0xff]  ;;  %v10345_v19 = vld [vmem:[#allocation37_spill] sm:$0xff] }
 0x1ee   : > { %7089 = vmatprep.mubr.msk.f32.mxu0 %vm507_vm2, %v8130_v51  ;;  %7289 = vmatprep.mubr.msk.f32.mxu1 %vm507_vm2, %v10268_v21  ;;  %v10333_v51 = vld [vmem:[#allocation32_spill] sm:$0xff]  ;;  %v10344_v21 = vld [vmem:[#allocation57_spill] sm:$0xff] }
 0x1ef   : > { %2935 = vrot.lane.b32.xlu1 %v2840_v59, %s7786_s14 }
 0x1f1   : > { %7090 = vmatmul.mubr.msk.f32.gmra.mrb[44].mxu0 %vm507_vm2, %v8155_v26  ;;  %7290 = vmatmul.mubr.msk.f32.gmra.mrb[44].mxu1 %vm507_vm2, %v10330_v8  ;;  %v10334_v26 = vld [vmem:[#allocation36_spill] sm:$0xff] }
 0x1f2   : > { %7092 = vmatprep.mubr.msk.f32.mxu0 %vm507_vm2, %v8163_v50  ;;  %7292 = vmatprep.mubr.msk.f32.mxu1 %vm507_vm2, %v10331_v17  ;;  %v10335_v50 = vld [vmem:[#allocation38_spill] sm:$0xff] }
 0x1f5   : > { %7093 = vmatmul.mubr.msk.f32.gmra.mrb[46].mxu0 %vm507_vm2, %v8182_v55  ;;  %7293 = vmatmul.mubr.msk.f32.gmra.mrb[46].mxu1 %vm507_vm2, %v10332_v49  ;;  %v10336_v55 = vld [vmem:[#allocation42_spill] sm:$0xff] }
 0x1f6   : > { %7095 = vmatprep.mubr.msk.f32.mxu0 %vm507_vm2, %v10236_v4  ;;  %7295 = vmatprep.mubr.msk.f32.mxu1 %vm507_vm2, %v10333_v51  ;;  %v10337_v4 = vld [vmem:[#allocation44_spill] sm:$0xff] }
 0x1f7   : > { %v10355_v51 = vld [vmem:[#allocation8_spill] sm:$0xff] }
 0x1f9   : > { %7096 = vmatmul.mubr.msk.f32.gmra.mrb[48].mxu0 %vm507_vm2, %v10238_v18  ;;  %7296 = vmatmul.mubr.msk.f32.gmra.mrb[48].mxu1 %vm507_vm2, %v10334_v26  ;;  %v10338_v18 = vld [vmem:[#allocation48_spill] sm:$0xff]  ;;  %v1648_v26 = vadd.f32 %v10355_v51, %v9220_v40 }
 0x1fa   : > { %7098 = vmatprep.mubr.msk.f32.mxu0 %vm507_vm2, %v10240_v35  ;;  %7298 = vmatprep.mubr.msk.f32.mxu1 %vm507_vm2, %v10335_v50  ;;  %v10339_v35 = vld [vmem:[#allocation49_spill] sm:$0xff]  ;;  %v10356_v50 = vld [vmem:[#allocation14_spill] sm:$0xff] }
 0x1fd   : > { %7099 = vmatmul.mubr.msk.f32.gmra.mrb[50].mxu0 %vm507_vm2, %v10242_v30  ;;  %7299 = vmatmul.mubr.msk.f32.gmra.mrb[50].mxu1 %vm507_vm2, %v10336_v55  ;;  %v10340_v30 = vld [vmem:[#allocation52_spill] sm:$0xff]  ;;  %v1649_v55 = vadd.f32 %v9220_v40, %v10356_v50 }
 0x1fe   : > { %7101 = vmatprep.mubr.msk.f32.mxu0 %vm507_vm2, %v10244_v24  ;;  %7301 = vmatprep.mubr.msk.f32.mxu1 %vm507_vm2, %v10337_v4  ;;  %v10341_v24 = vld [vmem:[#allocation54_spill] sm:$0xff] }
 0x201   : > { %7102 = vmatmul.mubr.msk.f32.gmra.mrb[52].mxu0 %vm507_vm2, %v10286_v14  ;;  %7302 = vmatmul.mubr.msk.f32.gmra.mrb[52].mxu1 %vm507_vm2, %v10338_v18 }
 0x202   : > { %7104 = vmatprep.mubr.msk.f32.mxu0 %vm507_vm2, %v8287_v56  ;;  %7304 = vmatprep.mubr.msk.f32.mxu1 %vm507_vm2, %v10339_v35  ;;  %v10342_v56 = vld [vmem:[#allocation55_spill] sm:$0xff] }
 0x205   : > { %7105 = vmatmul.mubr.msk.f32.gmra.mrb[54].mxu0 %vm507_vm2, %v8306_v52  ;;  %7305 = vmatmul.mubr.msk.f32.gmra.mrb[54].mxu1 %vm507_vm2, %v10340_v30  ;;  %v10343_v52 = vld [vmem:[#allocation56_spill] sm:$0xff] }
 0x206   : > { %7107 = vmatprep.mubr.msk.f32.mxu0 %vm507_vm2, %v10290_v16  ;;  %7307 = vmatprep.mubr.msk.f32.mxu1 %vm507_vm2, %v10341_v24  ;;  %v10357_v24 = vld [vmem:[#allocation11_spill] sm:$0xff] }
 0x209   : > { %7108 = vmatmul.mubr.msk.f32.gmra.mrb[56].mxu0 %vm507_vm2, %v8335_v6  ;;  %7308 = vmatmul.mubr.msk.f32.gmra.mrb[56].mxu1 %vm507_vm2, %v10342_v56  ;;  %v10346_v6 = vld [vmem:[#allocation41_spill] sm:$0xff]  ;;  %v1650_v56 = vadd.f32 %v10357_v24, %v9220_v40 }
 0x20a   : > { %7110 = vmatprep.mubr.msk.f32.mxu0 %vm507_vm2, %v8341_v41  ;;  %7310 = vmatprep.mubr.msk.f32.mxu1 %vm507_vm2, %v10343_v52  ;;  %v1640_v41 = vadd.f32 %v9226_v5, %v9220_v40  ;;  %v10358_v52 = vld [vmem:[#allocation18_spill] sm:$0xff] }
 0x20d   : > { %7111 = vmatmul.mubr.msk.f32.gmra.mrb[58].mxu0 %vm507_vm2, %v8355_v32  ;;  %7311 = vmatmul.mubr.msk.f32.gmra.mrb[58].mxu1 %vm507_vm2, %v10344_v21  ;;  %v1651_v21 = vadd.f32 %v9220_v40, %v10358_v52 }
 0x20e   : > { %7113 = vmatprep.mubr.msk.f32.mxu0 %vm507_vm2, %v8664_v45  ;;  %7313 = vmatprep.mubr.msk.f32.mxu1 %vm507_vm2, %v10345_v19  ;;  %v10348_v45 = vld [vmem:[#allocation2_spill] sm:$0xff] }
 0x211   : > { %7114 = vmatmul.mubr.msk.f32.gmra.mrb[60].mxu0 %vm507_vm2, %v8675_v46  ;;  %7314 = vmatmul.mubr.msk.f32.gmra.mrb[60].mxu1 %vm507_vm2, %v10346_v6  ;;  %v1642_v46 = vadd.f32 %v10348_v45, %v9220_v40 }
 0x212   : > { %7116 = vmatprep.mubr.msk.f32.mxu0 %vm507_vm2, %v9371_v15  ;;  %7316 = vmatprep.mubr.msk.f32.mxu1 %vm507_vm2, %v9164_v39  ;;  %v10349_v15 = vld [vmem:[#allocation3_spill] sm:$0xff] }
 0x215   : > { %7117 = vmatmul.mubr.msk.f32.gmra.mrb[62].mxu0 %vm507_vm2, %v9389_v29  ;;  %7317 = vmatmul.mubr.msk.f32.gmra.mrb[62].mxu1 %vm507_vm2, %v9167_v63  ;;  %v1641_v29 = vadd.f32 %v9220_v40, %v10349_v15 }
 0x221   : > { %v2876_v32 = vpop.permute.xlu0 %2875 }
 0x222   : > { %v2970_v39 = vsel %vm507_vm2, %v1640_v41, %v2876_v32 }
 0x223   : > { %3003 = vst.msk [vmem:[%s9579_s21 + $0x8] sm:$0xff] %vm3001_vm4, %v2970_v39  ;;  %v10359_v39 = vld [vmem:[#allocation15_spill] sm:$0xff] }
 0x224   : > { %v1652_v28 = vadd.f32 %v10359_v39, %v9220_v40 }
 0x225   : > { %v2874_v14 = vpop.permute.xlu0 %2873  ;;  %v2880_v16 = vpop.permute.xlu1 %2879 }
 0x226   : > { %v2969_v63 = vsel %vm507_vm2, %v1639_v13, %v2874_v14  ;;  %v2972_v5 = vsel %vm507_vm2, %v1642_v46, %v2880_v16  ;;  %v10360_v13 = vld [vmem:[#allocation22_spill] sm:$0xff] }
 0x227   : > { %3002 = vst.msk [vmem:[%s9579_s21] sm:$0xff] %vm3001_vm4, %v2969_v63  ;;  %3005 = vst.msk [vmem:[%s9579_s21 + $0x28] sm:$0xff] %vm3001_vm4, %v2972_v5  ;;  %v1653_v45 = vadd.f32 %v9220_v40, %v10360_v13  ;;  %v10361_v5 = vld [vmem:[#allocation19_spill] sm:$0xff] }
 0x228   : > { %v1654_v15 = vadd.f32 %v10361_v5, %v9220_v40 }
 0x229   : > { %v2878_v36 = vpop.permute.xlu1 %2877 }
 0x22a   : > { %v2971_v53 = vsel %vm507_vm2, %v1641_v29, %v2878_v36  ;;  %v2882_v22 = vpop.permute.xlu0 %2881  ;;  %v10362_v29 = vld [vmem:[#allocation47_spill] sm:$0xff] }
 0x22b   : > { %3004 = vst.msk [vmem:[%s9579_s21 + $0x20] sm:$0xff] %vm3001_vm4, %v2971_v53  ;;  %v2973_v57 = vsel %vm507_vm2, %v1643_v42, %v2882_v22  ;;  %v1655_v58 = vadd.f32 %v9220_v40, %v10362_v29 }
 0x22c   : > { %3006 = vst.msk [vmem:[%s9579_s21 + $0x40] sm:$0xff] %vm3001_vm4, %v2973_v57  ;;  %v10363_v57 = vld [vmem:[#allocation23_spill] sm:$0xff] }
 0x22d   : > { %v2884_v44 = vpop.permute.xlu1 %2883  ;;  %v1656_v1 = vadd.f32 %v10363_v57, %v9220_v40 }
 0x22e   : > { %v2974_v20 = vsel %vm507_vm2, %v1644_v0, %v2884_v44  ;;  %v2886_v34 = vpop.permute.xlu0 %2885  ;;  %v1657_v0 = vadd.f32 %v9220_v40, %v9377_v25 }
 0x22f   : > { %3007 = vst.msk [vmem:[%s9579_s21 + $0x48] sm:$0xff] %vm3001_vm4, %v2974_v20  ;;  %v2975_v31 = vsel %vm507_vm2, %v1645_v2, %v2886_v34  ;;  %v1658_v34 = vadd.f32 %v9374_v62, %v9220_v40  ;;  %v1661_v62 = vadd.f32 %v9220_v40, %v9412_v11 }
 0x230   : > { %3008 = vst.msk [vmem:[%s9579_s21 + $0x60] sm:$0xff] %vm3001_vm4, %v2975_v31  ;;  %v1659_v31 = vadd.f32 %v9220_v40, %v9396_v27 }
 0x231   : > { %v2888_v59 = vpop.permute.xlu1 %2887 }
 0x232   : > { %v2976_v8 = vsel %vm507_vm2, %v1646_v43, %v2888_v59  ;;  %v2890_v17 = vpop.permute.xlu0 %2889 }
 0x233   : > { %3009 = vst.msk [vmem:[%s9579_s21 + $0x68] sm:$0xff] %vm3001_vm4, %v2976_v8  ;;  %v2977_v49 = vsel %vm507_vm2, %v1647_v48, %v2890_v17  ;;  %v1660_v48 = vadd.f32 %v9393_v38, %v9220_v40  ;;  %v1663_v38 = vadd.f32 %v9220_v40, %v9428_v33 }
 0x234   : > { %3010 = vst.msk [vmem:[%s9579_s21 + $0x80] sm:$0xff] %vm3001_vm4, %v2977_v49  ;;  %v1662_v49 = vadd.f32 %v9409_v12, %v9220_v40  ;;  %v1665_v12 = vadd.f32 %v9220_v40, %v9444_v61 }
 0x235   : > { %v2892_v4 = vpop.permute.xlu1 %2891 }
 0x236   : > { %v2978_v18 = vsel %vm507_vm2, %v1648_v26, %v2892_v4  ;;  %v2894_v35 = vpop.permute.xlu0 %2893 }
 0x237   : > { %3011 = vst.msk [vmem:[%s9579_s21 + $0x88] sm:$0xff] %vm3001_vm4, %v2978_v18  ;;  %v2979_v30 = vsel %vm507_vm2, %v1649_v55, %v2894_v35  ;;  %v1664_v55 = vadd.f32 %v9425_v7, %v9220_v40  ;;  %v1667_v7 = vadd.f32 %v9220_v40, %v9460_v3 }
 0x238   : > { %3012 = vst.msk [vmem:[%s9579_s21 + $0xa0] sm:$0xff] %vm3001_vm4, %v2979_v30  ;;  %v1666_v30 = vadd.f32 %v9441_v54, %v9220_v40  ;;  %v1669_v54 = vadd.f32 %v9220_v40, %v9476_v37 }
 0x239   : > { %v2896_v19 = vpop.permute.xlu1 %2895 }
 0x23a   : > { %v2980_v6 = vsel %vm507_vm2, %v1650_v56, %v2896_v19  ;;  %v2898_v41 = vpop.permute.xlu0 %2897 }
 0x23b   : > { %3013 = vst.msk [vmem:[%s9579_s21 + $0xa8] sm:$0xff] %vm3001_vm4, %v2980_v6  ;;  %v2981_v32 = vsel %vm507_vm2, %v1651_v21, %v2898_v41  ;;  %v1668_v21 = vadd.f32 %v9457_v23, %v9220_v40 }
 0x23c   : > { %3014 = vst.msk [vmem:[%s9579_s21 + $0xc0] sm:$0xff] %vm3001_vm4, %v2981_v32  ;;  %v1670_v32 = vadd.f32 %v9473_v9, %v9220_v40 }
 0x23d   : > { %v2900_v46 = vpop.permute.xlu1 %2899 }
 0x23e   : > { %v2982_v14 = vsel %vm507_vm2, %v1652_v28, %v2900_v46  ;;  %v2902_v16 = vpop.permute.xlu0 %2901 }
 0x23f   : > { %3015 = vst.msk [vmem:[%s9579_s21 + $0xc8] sm:$0xff] %vm3001_vm4, %v2982_v14  ;;  %v2983_v63 = vsel %vm507_vm2, %v1653_v45, %v2902_v16 }
 0x240   : > { %3016 = vst.msk [vmem:[%s9579_s21 + $0xe0] sm:$0xff] %vm3001_vm4, %v2983_v63 }
 0x241   : > { %v2904_v42 = vpop.permute.xlu1 %2903 }
 0x242   : > { %v2984_v36 = vsel %vm507_vm2, %v1654_v15, %v2904_v42  ;;  %v2906_v53 = vpop.permute.xlu0 %2905 }
 0x243   : > { %3017 = vst.msk [vmem:[%s9579_s21 + $0xe8] sm:$0xff] %vm3001_vm4, %v2984_v36  ;;  %v2985_v22 = vsel %vm507_vm2, %v1655_v58, %v2906_v53 }
 0x244   : > { %3018 = vst.msk [vmem:[%s9579_s21 + $0x100] sm:$0xff] %vm3001_vm4, %v2985_v22 }
 0x245   : > { %v2908_v60 = vpop.permute.xlu1 %2907 }
 0x246   : > { %v2986_v2 = vsel %vm507_vm2, %v1656_v1, %v2908_v60  ;;  %v2910_v44 = vpop.permute.xlu0 %2909 }
 0x247   : > { %3019 = vst.msk [vmem:[%s9579_s21 + $0x108] sm:$0xff] %vm3001_vm4, %v2986_v2  ;;  %v2987_v20 = vsel %vm507_vm2, %v1657_v0, %v2910_v44 }
 0x248   : > { %3020 = vst.msk [vmem:[%s9579_s21 + $0x120] sm:$0xff] %vm3001_vm4, %v2987_v20 }
 0x249   : > { %v2912_v47 = vpop.permute.xlu1 %2911 }
 0x24a   : > { %v2988_v25 = vsel %vm507_vm2, %v1658_v34, %v2912_v47  ;;  %v2914_v43 = vpop.permute.xlu0 %2913 }
 0x24b   : > { %3021 = vst.msk [vmem:[%s9579_s21 + $0x128] sm:$0xff] %vm3001_vm4, %v2988_v25  ;;  %v2989_v10 = vsel %vm507_vm2, %v1659_v31, %v2914_v43 }
 0x24c   : > { %3022 = vst.msk [vmem:[%s9579_s21 + $0x140] sm:$0xff] %vm3001_vm4, %v2989_v10 }
 0x24d   : > { %v2916_v59 = vpop.permute.xlu1 %2915 }
 0x24e   : > { %v2990_v27 = vsel %vm507_vm2, %v1660_v48, %v2916_v59  ;;  %v2918_v8 = vpop.permute.xlu0 %2917 }
 0x24f   : > { %3023 = vst.msk [vmem:[%s9579_s21 + $0x148] sm:$0xff] %vm3001_vm4, %v2990_v27  ;;  %v2991_v17 = vsel %vm507_vm2, %v1661_v62, %v2918_v8 }
 0x250   : > { %3024 = vst.msk [vmem:[%s9579_s21 + $0x160] sm:$0xff] %vm3001_vm4, %v2991_v17 }
 0x251   : > { %v2920_v51 = vpop.permute.xlu1 %2919 }
 0x252   : > { %v2992_v11 = vsel %vm507_vm2, %v1662_v49, %v2920_v51  ;;  %v2922_v26 = vpop.permute.xlu0 %2921 }
 0x253   : > { %3025 = vst.msk [vmem:[%s9579_s21 + $0x168] sm:$0xff] %vm3001_vm4, %v2992_v11  ;;  %v2993_v50 = vsel %vm507_vm2, %v1663_v38, %v2922_v26 }
 0x254   : > { %3026 = vst.msk [vmem:[%s9579_s21 + $0x180] sm:$0xff] %vm3001_vm4, %v2993_v50 }
 0x255   : > { %v2924_v4 = vpop.permute.xlu1 %2923 }
 0x256   : > { %v2994_v33 = vsel %vm507_vm2, %v1664_v55, %v2924_v4  ;;  %v2926_v18 = vpop.permute.xlu0 %2925 }
 0x257   : > { %3027 = vst.msk [vmem:[%s9579_s21 + $0x188] sm:$0xff] %vm3001_vm4, %v2994_v33  ;;  %v2995_v35 = vsel %vm507_vm2, %v1665_v12, %v2926_v18 }
 0x258   : > { %3028 = vst.msk [vmem:[%s9579_s21 + $0x1a0] sm:$0xff] %vm3001_vm4, %v2995_v35 }
 0x259   : > { %v2928_v24 = vpop.permute.xlu1 %2927 }
 0x25a   : > { %v2996_v61 = vsel %vm507_vm2, %v1666_v30, %v2928_v24  ;;  %v2930_v56 = vpop.permute.xlu0 %2929 }
 0x25b   : > { %3029 = vst.msk [vmem:[%s9579_s21 + $0x1a8] sm:$0xff] %vm3001_vm4, %v2996_v61  ;;  %v2997_v52 = vsel %vm507_vm2, %v1667_v7, %v2930_v56 }
 0x25c   : > { %3030 = vst.msk [vmem:[%s9579_s21 + $0x1c0] sm:$0xff] %vm3001_vm4, %v2997_v52 }
 0x25d   : > { %v2932_v19 = vpop.permute.xlu1 %2931 }
 0x25e   : > { %v2998_v3 = vsel %vm507_vm2, %v1668_v21, %v2932_v19  ;;  %v2934_v6 = vpop.permute.xlu0 %2933 }
 0x25f   : > { %3031 = vst.msk [vmem:[%s9579_s21 + $0x1c8] sm:$0xff] %vm3001_vm4, %v2998_v3  ;;  %v2999_v41 = vsel %vm507_vm2, %v1669_v54, %v2934_v6 }
 0x260   : > { %3032 = vst.msk [vmem:[%s9579_s21 + $0x1e0] sm:$0xff] %vm3001_vm4, %v2999_v41 }
 0x261   : > { %v2936_v39 = vpop.permute.xlu1 %2935 }
 0x262   : > { %v3000_v23 = vsel %vm507_vm2, %v1670_v32, %v2936_v39 }
 0x263   : > { %3033 = vst.msk [vmem:[%s9579_s21 + $0x1e8] sm:$0xff] %vm3001_vm4, %v3000_v23 }
 0x2ac   : > { %v9741_v28 = vpop.f32.mrb[32].mxu0  ;;  %v7273_v37 = vpop.f32.mrb[32].mxu1 }
 0x2ad   : > { %v5060_v13 = vadd.f32 %v7273_v37, %v9220_v40  ;;  %v9744_v45 = vpop.f32.mrb[33].mxu0  ;;  %v4868_v46 = vpop.f32.mrb[33].mxu1 }
 0x2ae   : > { %v5059_v14 = vadd.f32 %v9220_v40, %v4868_v46 }
 0x2af   : > { %5125 = vrot.lane.b32.xlu1 %v5060_v13, %s7786_s14 }
 0x2b0   : > { %v7276_v9 = vpop.f32.mrb[34].mxu1  ;;  %5123 = vrot.lane.b32.xlu0 %v5059_v14, %s7786_s14  ;;  %v9749_v16 = vpop.f32.mrb[34].mxu0 }
 0x2b1   : > { %v5062_v63 = vadd.f32 %v7276_v9, %v9220_v40  ;;  %v9752_v5 = vpop.f32.mrb[35].mxu0  ;;  %v4878_v15 = vpop.f32.mrb[35].mxu1 }
 0x2b2   : > { %v5061_v29 = vadd.f32 %v9220_v40, %v4878_v15 }
 0x2b3   : > { %5129 = vrot.lane.b32.xlu1 %v5062_v63, %s7786_s14 }
 0x2b4   : > { %v7279_v58 = vpop.f32.mrb[36].mxu1  ;;  %5127 = vrot.lane.b32.xlu0 %v5061_v29, %s7786_s14  ;;  %v9757_v42 = vpop.f32.mrb[36].mxu0 }
 0x2b5   : > { %v5064_v36 = vadd.f32 %v7279_v58, %v9220_v40  ;;  %v9760_v53 = vpop.f32.mrb[37].mxu0  ;;  %v4888_v22 = vpop.f32.mrb[37].mxu1 }
 0x2b6   : > { %v5063_v57 = vadd.f32 %v9220_v40, %v4888_v22 }
 0x2b7   : > { %5133 = vrot.lane.b32.xlu1 %v5064_v36, %s7786_s14 }
 0x2b8   : > { %v7282_v1 = vpop.f32.mrb[38].mxu1  ;;  %5131 = vrot.lane.b32.xlu0 %v5063_v57, %s7786_s14  ;;  %v9765_v0 = vpop.f32.mrb[38].mxu0 }
 0x2b9   : > { %v5066_v60 = vadd.f32 %v7282_v1, %v9220_v40  ;;  %v9768_v2 = vpop.f32.mrb[39].mxu0  ;;  %v4898_v44 = vpop.f32.mrb[39].mxu1 }
 0x2ba   : > { %v5065_v20 = vadd.f32 %v9220_v40, %v4898_v44 }
 0x2bb   : > { %5137 = vrot.lane.b32.xlu1 %v5066_v60, %s7786_s14 }
 0x2bc   : > { %v7285_v34 = vpop.f32.mrb[40].mxu1  ;;  %5135 = vrot.lane.b32.xlu0 %v5065_v20, %s7786_s14  ;;  %v9773_v31 = vpop.f32.mrb[40].mxu0 }
 0x2bd   : > { %v5068_v47 = vadd.f32 %v7285_v34, %v9220_v40  ;;  %v9776_v25 = vpop.f32.mrb[41].mxu0  ;;  %v4908_v43 = vpop.f32.mrb[41].mxu1 }
 0x2be   : > { %v5067_v10 = vadd.f32 %v9220_v40, %v4908_v43 }
 0x2bf   : > { %5141 = vrot.lane.b32.xlu1 %v5068_v47, %s7786_s14 }
 0x2c0   : > { %v7288_v48 = vpop.f32.mrb[42].mxu1  ;;  %5139 = vrot.lane.b32.xlu0 %v5067_v10, %s7786_s14  ;;  %v9781_v62 = vpop.f32.mrb[42].mxu0 }
 0x2c1   : > { %v5070_v59 = vadd.f32 %v7288_v48, %v9220_v40  ;;  %v9784_v27 = vpop.f32.mrb[43].mxu0  ;;  %v4918_v8 = vpop.f32.mrb[43].mxu1 }
 0x2c2   : > { %v5069_v17 = vadd.f32 %v9220_v40, %v4918_v8 }
 0x2c3   : > { %5145 = vrot.lane.b32.xlu1 %v5070_v59, %s7786_s14 }
 0x2c4   : > { %v7291_v49 = vpop.f32.mrb[44].mxu1  ;;  %5143 = vrot.lane.b32.xlu0 %v5069_v17, %s7786_s14  ;;  %v9789_v38 = vpop.f32.mrb[44].mxu0 }
 0x2c5   : > { %v5072_v51 = vadd.f32 %v7291_v49, %v9220_v40  ;;  %v9792_v11 = vpop.f32.mrb[45].mxu0  ;;  %v4928_v26 = vpop.f32.mrb[45].mxu1 }
 0x2c6   : > { %v5071_v50 = vadd.f32 %v9220_v40, %v4928_v26 }
 0x2c7   : > { %5149 = vrot.lane.b32.xlu1 %v5072_v51, %s7786_s14 }
 0x2c8   : > { %v7294_v55 = vpop.f32.mrb[46].mxu1  ;;  %5147 = vrot.lane.b32.xlu0 %v5071_v50, %s7786_s14  ;;  %v9797_v12 = vpop.f32.mrb[46].mxu0 }
 0x2c9   : > { %v5074_v4 = vadd.f32 %v7294_v55, %v9220_v40  ;;  %v9800_v33 = vpop.f32.mrb[47].mxu0  ;;  %v4938_v18 = vpop.f32.mrb[47].mxu1 }
 0x2ca   : > { %v5073_v35 = vadd.f32 %v9220_v40, %v4938_v18 }
 0x2cb   : > { %5153 = vrot.lane.b32.xlu1 %v5074_v4, %s7786_s14 }
 0x2cc   : > { %v7297_v30 = vpop.f32.mrb[48].mxu1  ;;  %5151 = vrot.lane.b32.xlu0 %v5073_v35, %s7786_s14  ;;  %v9805_v7 = vpop.f32.mrb[48].mxu0 }
 0x2cd   : > { %v5076_v24 = vadd.f32 %v7297_v30, %v9220_v40  ;;  %v9808_v61 = vpop.f32.mrb[49].mxu0  ;;  %v4948_v56 = vpop.f32.mrb[49].mxu1 }
 0x2ce   : > { %v5075_v52 = vadd.f32 %v9220_v40, %v4948_v56  ;;  %v4034_v56 = vadd.f32 %v9220_v40, %v9744_v45 }
 0x2cf   : > { %5157 = vrot.lane.b32.xlu1 %v5076_v24, %s7786_s14  ;;  %v4035_v24 = vadd.f32 %v9741_v28, %v9220_v40  ;;  %v4036_v28 = vadd.f32 %v9220_v40, %v9752_v5 }
 0x2d0   : > { %v7300_v21 = vpop.f32.mrb[50].mxu1  ;;  %5155 = vrot.lane.b32.xlu0 %v5075_v52, %s7786_s14  ;;  %v9813_v54 = vpop.f32.mrb[50].mxu0 }
 0x2d1   : > { %v5078_v19 = vadd.f32 %v7300_v21, %v9220_v40  ;;  %v9816_v3 = vpop.f32.mrb[51].mxu0  ;;  %v4958_v6 = vpop.f32.mrb[51].mxu1 }
 0x2d2   : > { %v5077_v41 = vadd.f32 %v9220_v40, %v4958_v6 }
 0x2d3   : > { %5161 = vrot.lane.b32.xlu1 %v5078_v19, %s7786_s14 }
 0x2d4   : > { %v7303_v32 = vpop.f32.mrb[52].mxu1  ;;  %5159 = vrot.lane.b32.xlu0 %v5077_v41, %s7786_s14  ;;  %v9821_v39 = vpop.f32.mrb[52].mxu0  ;;  %v4037_v41 = vadd.f32 %v9749_v16, %v9220_v40 }
 0x2d5   : > { %v5080_v23 = vadd.f32 %v7303_v32, %v9220_v40  ;;  %v9824_v37 = vpop.f32.mrb[53].mxu0  ;;  %v4968_v13 = vpop.f32.mrb[53].mxu1 }
 0x2d6   : > { %v5079_v46 = vadd.f32 %v9220_v40, %v4968_v13 }
 0x2d7   : > { %5165 = vrot.lane.b32.xlu1 %v5080_v23, %s7786_s14 }
 0x2d8   : > { %v7306_v14 = vpop.f32.mrb[54].mxu1  ;;  %5163 = vrot.lane.b32.xlu0 %v5079_v46, %s7786_s14  ;;  %v9829_v9 = vpop.f32.mrb[54].mxu0  ;;  %v9890_v46 = vld [vmem:[%s10046_s3] ss:$0 sm:$0xff] }
 0x2d9   : > { %v5082_v63 = vadd.f32 %v7306_v14, %v9220_v40  ;;  %v9832_v15 = vpop.f32.mrb[55].mxu0  ;;  %v4978_v29 = vpop.f32.mrb[55].mxu1  ;;  %v4039_v16 = vadd.f32 %v9890_v46, %v9757_v42  ;;  %v4040_v42 = vadd.f32 %v9890_v46, %v9768_v2 }
 0x2da   : > { %v5081_v58 = vadd.f32 %v9220_v40, %v4978_v29 }
 0x2db   : > { %5169 = vrot.lane.b32.xlu1 %v5082_v63, %s7786_s14 }
 0x2dc   : > { %v7309_v36 = vpop.f32.mrb[56].mxu1  ;;  %5167 = vrot.lane.b32.xlu0 %v5081_v58, %s7786_s14  ;;  %v9837_v22 = vpop.f32.mrb[56].mxu0  ;;  %v4041_v58 = vadd.f32 %v9890_v46, %v9765_v0  ;;  %v4042_v0 = vadd.f32 %v9890_v46, %v9776_v25 }
 0x2dd   : > { %v5084_v57 = vadd.f32 %v7309_v36, %v9220_v40  ;;  %v9840_v1 = vpop.f32.mrb[57].mxu0  ;;  %v4988_v60 = vpop.f32.mrb[57].mxu1 }
 0x2de   : > { %v5083_v44 = vadd.f32 %v9220_v40, %v4988_v60 }
 0x2df   : > { %5173 = vrot.lane.b32.xlu1 %v5084_v57, %s7786_s14 }
 0x2e0   : > { %v7312_v20 = vpop.f32.mrb[58].mxu1  ;;  %5171 = vrot.lane.b32.xlu0 %v5083_v44, %s7786_s14  ;;  %v9845_v34 = vpop.f32.mrb[58].mxu0  ;;  %v4043_v44 = vadd.f32 %v9890_v46, %v9773_v31  ;;  %v4044_v31 = vadd.f32 %v9890_v46, %v9784_v27 }
 0x2e1   : > { %v5086_v47 = vadd.f32 %v7312_v20, %v9220_v40  ;;  %v9848_v43 = vpop.f32.mrb[59].mxu0  ;;  %v4998_v10 = vpop.f32.mrb[59].mxu1 }
 0x2e2   : > { %v5085_v48 = vadd.f32 %v9220_v40, %v4998_v10 }
 0x2e3   : > { %5177 = vrot.lane.b32.xlu1 %v5086_v47, %s7786_s14 }
 0x2e4   : > { %v7315_v59 = vpop.f32.mrb[60].mxu1  ;;  %5175 = vrot.lane.b32.xlu0 %v5085_v48, %s7786_s14  ;;  %v9853_v8 = vpop.f32.mrb[60].mxu0  ;;  %v4045_v48 = vadd.f32 %v9890_v46, %v9781_v62  ;;  %v4046_v62 = vadd.f32 %v9890_v46, %v9792_v11 }
 0x2e5   : > { %v5088_v17 = vadd.f32 %v7315_v59, %v9220_v40  ;;  %v9856_v49 = vpop.f32.mrb[61].mxu0  ;;  %v5008_v51 = vpop.f32.mrb[61].mxu1 }
 0x2e6   : > { %v5087_v26 = vadd.f32 %v9220_v40, %v5008_v51 }
 0x2e7   : > { %5181 = vrot.lane.b32.xlu1 %v5088_v17, %s7786_s14 }
 0x2e8   : > { %v7318_v50 = vpop.f32.mrb[62].mxu1  ;;  %5179 = vrot.lane.b32.xlu0 %v5087_v26, %s7786_s14  ;;  %v9861_v55 = vpop.f32.mrb[62].mxu0  ;;  %v4047_v26 = vadd.f32 %v9890_v46, %v9789_v38  ;;  %v4048_v38 = vadd.f32 %v9890_v46, %v9800_v33 }
 0x2e9   : > { %v5090_v4 = vadd.f32 %v7318_v50, %v9220_v40  ;;  %v9864_v18 = vpop.f32.mrb[63].mxu0  ;;  %v5018_v35 = vpop.f32.mrb[63].mxu1 }
 0x2ea   : > { %v5089_v30 = vadd.f32 %v9220_v40, %v5018_v35  ;;  %v4038_v40 = vadd.f32 %v9890_v46, %v9760_v53 }
 0x2eb   : > { %5185 = vrot.lane.b32.xlu1 %v5090_v4, %s7786_s14 }
 0x2ec   : > { %5183 = vrot.lane.b32.xlu0 %v5089_v30, %s7786_s14  ;;  %v4049_v30 = vadd.f32 %v9890_v46, %v9797_v12  ;;  %v4050_v12 = vadd.f32 %v9890_v46, %v9808_v61 }
 0x321   : > { %v5126_v52 = vpop.permute.xlu1 %5125 }
 0x322   : > { %v5220_v21 = vsel %vm507_vm2, %v4035_v24, %v5126_v52  ;;  %v5124_v19 = vpop.permute.xlu0 %5123 }
 0x323   : > { %5955 = vst.msk [vmem:[%s9579_s21 + $0x18] sm:$0xff] %vm3001_vm4, %v5220_v21  ;;  %v5219_v6 = vsel %vm507_vm2, %v4034_v56, %v5124_v19  ;;  %v4051_v21 = vadd.f32 %v9890_v46, %v9805_v7  ;;  %v4052_v7 = vadd.f32 %v9890_v46, %v9816_v3 }
 0x324   : > { %5954 = vst.msk [vmem:[%s9579_s21 + $0x10] sm:$0xff] %vm3001_vm4, %v5219_v6 }
 0x325   : > { %v5130_v45 = vpop.permute.xlu1 %5129 }
 0x326   : > { %v5222_v32 = vsel %vm507_vm2, %v4037_v41, %v5130_v45  ;;  %v5128_v23 = vpop.permute.xlu0 %5127 }
 0x327   : > { %5957 = vst.msk [vmem:[%s9579_s21 + $0x38] sm:$0xff] %vm3001_vm4, %v5222_v32  ;;  %v5221_v13 = vsel %vm507_vm2, %v4036_v28, %v5128_v23  ;;  %v4053_v28 = vadd.f32 %v9890_v46, %v9813_v54  ;;  %v4054_v54 = vadd.f32 %v9890_v46, %v9824_v37 }
 0x328   : > { %5956 = vst.msk [vmem:[%s9579_s21 + $0x30] sm:$0xff] %vm3001_vm4, %v5221_v13  ;;  %v4055_v13 = vadd.f32 %v9890_v46, %v9821_v39  ;;  %v4056_v39 = vadd.f32 %v9890_v46, %v9832_v15 }
 0x329   : > { %v5134_v5 = vpop.permute.xlu1 %5133 }
 0x32a   : > { %v5224_v14 = vsel %vm507_vm2, %v4039_v16, %v5134_v5  ;;  %v5132_v63 = vpop.permute.xlu0 %5131 }
 0x32b   : > { %5959 = vst.msk [vmem:[%s9579_s21 + $0x58] sm:$0xff] %vm3001_vm4, %v5224_v14  ;;  %v5223_v29 = vsel %vm507_vm2, %v4038_v40, %v5132_v63  ;;  %v4057_v14 = vadd.f32 %v9890_v46, %v9829_v9  ;;  %v4058_v9 = vadd.f32 %v9890_v46, %v9840_v1 }
 0x32c   : > { %5958 = vst.msk [vmem:[%s9579_s21 + $0x50] sm:$0xff] %vm3001_vm4, %v5223_v29 }
 0x32d   : > { %v5138_v36 = vpop.permute.xlu1 %5137 }
 0x32e   : > { %v5226_v53 = vsel %vm507_vm2, %v4041_v58, %v5138_v36  ;;  %v5136_v57 = vpop.permute.xlu0 %5135 }
 0x32f   : > { %5961 = vst.msk [vmem:[%s9579_s21 + $0x78] sm:$0xff] %vm3001_vm4, %v5226_v53  ;;  %v5225_v60 = vsel %vm507_vm2, %v4040_v42, %v5136_v57  ;;  %v4059_v42 = vadd.f32 %v9890_v46, %v9837_v22  ;;  %v4060_v22 = vadd.f32 %v9890_v46, %v9848_v43 }
 0x330   : > { %5960 = vst.msk [vmem:[%s9579_s21 + $0x70] sm:$0xff] %vm3001_vm4, %v5225_v60  ;;  %v4061_v60 = vadd.f32 %v9890_v46, %v9845_v34  ;;  %v4062_v34 = vadd.f32 %v9890_v46, %v9856_v49 }
 0x331   : > { %v5142_v20 = vpop.permute.xlu1 %5141 }
 0x332   : > { %v5228_v2 = vsel %vm507_vm2, %v4043_v44, %v5142_v20  ;;  %v5140_v47 = vpop.permute.xlu0 %5139 }
 0x333   : > { %5963 = vst.msk [vmem:[%s9579_s21 + $0x98] sm:$0xff] %vm3001_vm4, %v5228_v2  ;;  %v5227_v10 = vsel %vm507_vm2, %v4042_v0, %v5140_v47  ;;  %v4063_v2 = vadd.f32 %v9890_v46, %v9853_v8  ;;  %v4064_v8 = vadd.f32 %v9890_v46, %v9864_v18 }
 0x334   : > { %5962 = vst.msk [vmem:[%s9579_s21 + $0x90] sm:$0xff] %vm3001_vm4, %v5227_v10 }
 0x335   : > { %v5146_v59 = vpop.permute.xlu1 %5145 }
 0x336   : > { %v5230_v25 = vsel %vm507_vm2, %v4045_v48, %v5146_v59  ;;  %v5144_v17 = vpop.permute.xlu0 %5143 }
 0x337   : > { %5965 = vst.msk [vmem:[%s9579_s21 + $0xb8] sm:$0xff] %vm3001_vm4, %v5230_v25  ;;  %v5229_v51 = vsel %vm507_vm2, %v4044_v31, %v5144_v17  ;;  %v4065_v31 = vadd.f32 %v9890_v46, %v9861_v55 }
 0x338   : > { %5964 = vst.msk [vmem:[%s9579_s21 + $0xb0] sm:$0xff] %vm3001_vm4, %v5229_v51 }
 0x339   : > { %v5150_v50 = vpop.permute.xlu1 %5149 }
 0x33a   : > { %v5232_v27 = vsel %vm507_vm2, %v4047_v26, %v5150_v50  ;;  %v5148_v4 = vpop.permute.xlu0 %5147 }
 0x33b   : > { %5967 = vst.msk [vmem:[%s9579_s21 + $0xd8] sm:$0xff] %vm3001_vm4, %v5232_v27  ;;  %v5231_v35 = vsel %vm507_vm2, %v4046_v62, %v5148_v4 }
 0x33c   : > { %5966 = vst.msk [vmem:[%s9579_s21 + $0xd0] sm:$0xff] %vm3001_vm4, %v5231_v35 }
 0x33d   : > { %v5154_v24 = vpop.permute.xlu1 %5153 }
 0x33e   : > { %v5234_v11 = vsel %vm507_vm2, %v4049_v30, %v5154_v24  ;;  %v5152_v56 = vpop.permute.xlu0 %5151 }
 0x33f   : > { %5969 = vst.msk [vmem:[%s9579_s21 + $0xf8] sm:$0xff] %vm3001_vm4, %v5234_v11  ;;  %v5233_v52 = vsel %vm507_vm2, %v4048_v38, %v5152_v56 }
 0x340   : > { %5968 = vst.msk [vmem:[%s9579_s21 + $0xf0] sm:$0xff] %vm3001_vm4, %v5233_v52 }
 0x341   : > { %v5158_v19 = vpop.permute.xlu1 %5157 }
 0x342   : > { %v5236_v33 = vsel %vm507_vm2, %v4051_v21, %v5158_v19  ;;  %v5156_v6 = vpop.permute.xlu0 %5155 }
 0x343   : > { %5971 = vst.msk [vmem:[%s9579_s21 + $0x118] sm:$0xff] %vm3001_vm4, %v5236_v33  ;;  %v5235_v41 = vsel %vm507_vm2, %v4050_v12, %v5156_v6 }
 0x344   : > { %5970 = vst.msk [vmem:[%s9579_s21 + $0x110] sm:$0xff] %vm3001_vm4, %v5235_v41 }
 0x345   : > { %v5162_v45 = vpop.permute.xlu1 %5161 }
 0x346   : > { %v5238_v61 = vsel %vm507_vm2, %v4053_v28, %v5162_v45  ;;  %v5160_v32 = vpop.permute.xlu0 %5159 }
 0x347   : > { %5973 = vst.msk [vmem:[%s9579_s21 + $0x138] sm:$0xff] %vm3001_vm4, %v5238_v61  ;;  %v5237_v23 = vsel %vm507_vm2, %v4052_v7, %v5160_v32 }
 0x348   : > { %5972 = vst.msk [vmem:[%s9579_s21 + $0x130] sm:$0xff] %vm3001_vm4, %v5237_v23 }
 0x349   : > { %v5166_v16 = vpop.permute.xlu1 %5165 }
 0x34a   : > { %v5240_v3 = vsel %vm507_vm2, %v4055_v13, %v5166_v16  ;;  %v5164_v40 = vpop.permute.xlu0 %5163 }
 0x34b   : > { %5975 = vst.msk [vmem:[%s9579_s21 + $0x158] sm:$0xff] %vm3001_vm4, %v5240_v3  ;;  %v5239_v5 = vsel %vm507_vm2, %v4054_v54, %v5164_v40 }
 0x34c   : > { %5974 = vst.msk [vmem:[%s9579_s21 + $0x150] sm:$0xff] %vm3001_vm4, %v5239_v5 }
 0x34d   : > { %v5170_v63 = vpop.permute.xlu1 %5169 }
 0x34e   : > { %v5242_v37 = vsel %vm507_vm2, %v4057_v14, %v5170_v63  ;;  %v5168_v29 = vpop.permute.xlu0 %5167 }
 0x34f   : > { %5977 = vst.msk [vmem:[%s9579_s21 + $0x178] sm:$0xff] %vm3001_vm4, %v5242_v37  ;;  %v5241_v58 = vsel %vm507_vm2, %v4056_v39, %v5168_v29 }
 0x350   : > { %5976 = vst.msk [vmem:[%s9579_s21 + $0x170] sm:$0xff] %vm3001_vm4, %v5241_v58 }
 0x351   : > { %v5174_v36 = vpop.permute.xlu1 %5173 }
 0x352   : > { %v5244_v15 = vsel %vm507_vm2, %v4059_v42, %v5174_v36  ;;  %v5172_v53 = vpop.permute.xlu0 %5171 }
 0x353   : > { %5979 = vst.msk [vmem:[%s9579_s21 + $0x198] sm:$0xff] %vm3001_vm4, %v5244_v15  ;;  %v5243_v57 = vsel %vm507_vm2, %v4058_v9, %v5172_v53 }
 0x354   : > { %5978 = vst.msk [vmem:[%s9579_s21 + $0x190] sm:$0xff] %vm3001_vm4, %v5243_v57 }
 0x355   : > { %v5178_v44 = vpop.permute.xlu1 %5177 }
 0x356   : > { %v5246_v1 = vsel %vm507_vm2, %v4061_v60, %v5178_v44  ;;  %v5176_v0 = vpop.permute.xlu0 %5175 }
 0x357   : > { %5981 = vst.msk [vmem:[%s9579_s21 + $0x1b8] sm:$0xff] %vm3001_vm4, %v5246_v1  ;;  %v5245_v20 = vsel %vm507_vm2, %v4060_v22, %v5176_v0 }
 0x358   : > { %5980 = vst.msk [vmem:[%s9579_s21 + $0x1b0] sm:$0xff] %vm3001_vm4, %v5245_v20 }
 0x359   : > { %v5182_v47 = vpop.permute.xlu1 %5181 }
 0x35a   : > { %v5248_v43 = vsel %vm507_vm2, %v4063_v2, %v5182_v47  ;;  %v5180_v10 = vpop.permute.xlu0 %5179 }
 0x35b   : > { %5983 = vst.msk [vmem:[%s9579_s21 + $0x1d8] sm:$0xff] %vm3001_vm4, %v5248_v43  ;;  %v5247_v48 = vsel %vm507_vm2, %v4062_v34, %v5180_v10 }
 0x35c   : > { %5982 = vst.msk [vmem:[%s9579_s21 + $0x1d0] sm:$0xff] %vm3001_vm4, %v5247_v48 }
 0x35d   : > { %v5186_v59 = vpop.permute.xlu1 %5185 }
 0x35e   : > { %v5250_v25 = vsel %vm507_vm2, %v4065_v31, %v5186_v59  ;;  %v5184_v49 = vpop.permute.xlu0 %5183 }
 0x35f   : > { %5985 = vst.msk [vmem:[%s9579_s21 + $0x1f8] sm:$0xff] %vm3001_vm4, %v5250_v25  ;;  %v5249_v17 = vsel %vm507_vm2, %v4064_v8, %v5184_v49 }
 0x360   : > { %5984 = vst.msk [vmem:[%s9579_s21 + $0x1f0] sm:$0xff] %vm3001_vm4, %v5249_v17 }
 0x361 PF: > { %s14_s17 = sadd.s32 1, %s7784_s17   ;;  %s10364_s15 = smov %s7780_s16 }
 0x362   : > { %p11_p5 = scmp.ge.s32.totalorder %s14_s17, 4   ;;  %s10365_s16 = smov %s10367_s18 }
 0x364   :  { %13 = sbr.rel (!%p11_p5) target bundleno = 2 (0x2), region = 85 }

</bundles_post_ra>
